<compile_context>
chip_gen: v5e
topology: v5e:2x2
jax: 0.10.0
libtpu: 0.0.40
codegen_flags: <defaults>
</compile_context>

<pallas_src>
import jax
import jax.numpy as jnp
from jax.experimental import pallas as pl
from jax.experimental.pallas import tpu as pltpu


POOL_H = 112                  # facenet input spatial size
POOL_LANES = 128              # lane-dense padded width (112 -> 128)
ROWS_PER_IMG = 3 * POOL_H     # 336 rows per sample fed to the extractor
FEAT_DIM = 512
EMBED_K = POOL_LANES          # 128 (last 16 lanes are zero padding)


# ----------------------------------------------------------------------------
# Combined adaptive-pool matrices (pool -> crop -> pool fused algebraically).
# PyTorch AdaptiveAvgPool2d bin i covers [floor(i*I/O), ceil((i+1)*I/O)).
# ----------------------------------------------------------------------------
def _pool_matrix(out_size, in_size):
    i = jnp.arange(out_size)
    starts = (i * in_size) // out_size
    ends = ((i + 1) * in_size + out_size - 1) // out_size       # ceil div
    idx = jnp.arange(in_size)
    mask = (idx[None, :] >= starts[:, None]) & (idx[None, :] < ends[:, None])
    counts = (ends - starts).astype(jnp.float32)
    return mask.astype(jnp.float32) / counts[:, None]           # (out, in)


def _combined_pool_matrices(H, W):
    p112 = _pool_matrix(POOL_H, 188)                            # (112, 188)
    if H != 256:                                                # self.pool branch
        ph = _pool_matrix(256, H)
        pw = _pool_matrix(256, W)
    else:
        ph = jnp.eye(H, dtype=jnp.float32)
        pw = jnp.eye(W, dtype=jnp.float32)
    ah = p112 @ ph[35:223, :]                                   # (112, H)
    aw = p112 @ pw[32:220, :]                                   # (112, W)
    aw_pad = jnp.concatenate(
        [aw, jnp.zeros((POOL_LANES - POOL_H, W), jnp.float32)], axis=0)
    # (112, H) and (W, 128) — bf16 matmul operands, f32 accumulation in-kernel.
    return ah.astype(jnp.bfloat16), aw_pad.T.astype(jnp.bfloat16)


# ----------------------------------------------------------------------------
# Kernel 1: fused pool->crop->pool per sample, lane-dense padded output.
# ----------------------------------------------------------------------------
def _fused_pool(x, ah, awt):
    """x: (N, 3*H, W) bf16 -> (N, 336, 128) bf16 (pooled, cropped, lane-padded)."""
    N, threeH, W = x.shape
    H = threeH // 3

    def kernel(x_ref, ah_ref, awt_ref, o_ref):
        # W-axis pooling for all 3 channel planes in one matmul: (3H, W)@(W, 128)
        t = jnp.dot(x_ref[0], awt_ref[...],
                    preferred_element_type=jnp.float32).astype(jnp.bfloat16)
        for c in range(3):                                      # H-axis per plane
            o_ref[0, c * POOL_H:(c + 1) * POOL_H, :] = jnp.dot(
                ah_ref[...], t[c * H:(c + 1) * H, :],
                preferred_element_type=jnp.float32).astype(jnp.bfloat16)

    return pl.pallas_call(
        kernel,
        out_shape=jax.ShapeDtypeStruct((N, ROWS_PER_IMG, POOL_LANES),
                                       jnp.bfloat16),
        grid=(N,),
        in_specs=[
            pl.BlockSpec((1, threeH, W), lambda i: (i, 0, 0)),
            pl.BlockSpec((POOL_H, H), lambda i: (0, 0)),
            pl.BlockSpec((W, POOL_LANES), lambda i: (0, 0)),
        ],
        out_specs=pl.BlockSpec((1, ROWS_PER_IMG, POOL_LANES),
                               lambda i: (i, 0, 0)),
        compiler_params=pltpu.CompilerParams(
            dimension_semantics=("parallel",)),
    )(x, ah, awt)


# ----------------------------------------------------------------------------
# Kernel 2: fused feature extraction (synthetic facenet stand-in) + id loss.
# Grid over the B (pred_i, gt_i) pairs; loss accumulated in a (1,1) output.
# ----------------------------------------------------------------------------
def _feat_loss(pooled, params, B):
    """pooled: (2B, 336, 128) bf16, rows [0,B)=pred, [B,2B)=gt. Returns (1,1)."""
    w1 = params["w1"].astype(jnp.bfloat16)          # (128, 512)
    w2 = params["w2"].astype(jnp.bfloat16)          # (512, 512)
    b1, alpha, b2 = params["b1"], params["alpha"], params["b2"]   # (1,512) f32
    inv_count = 1.0 / B

    def kernel(xp_ref, xg_ref, w1_ref, b1_ref, a_ref, w2_ref, b2_ref, o_ref):
        @pl.when(pl.program_id(0) == 0)
        def _():
            o_ref[...] = jnp.zeros_like(o_ref)

        def feat(x):                                 # x: (336, 128) bf16
            h = jnp.dot(x, w1_ref[...],
                        preferred_element_type=jnp.float32) + b1_ref[...]
            h = jnp.where(h > 0, h, a_ref[...] * h)              # PReLU (f32)
            m = jnp.mean(h, axis=0, keepdims=True)               # (1, 512)
            f = jnp.dot(m.astype(jnp.bfloat16), w2_ref[...],
                        preferred_element_type=jnp.float32) + b2_ref[...]
            ssq = jnp.sum(f * f, axis=-1, keepdims=True)
            return f * jax.lax.rsqrt(jnp.maximum(ssq, 1e-12))    # eps-guarded

        fp = feat(xp_ref[0])                                     # pred feature
        fg = feat(xg_ref[0])                                     # gt feature
        d = jnp.sum(fp * fg, axis=-1, keepdims=True)             # (1, 1) dot
        o_ref[...] += (1.0 - d) * inv_count

    return pl.pallas_call(
        kernel,
        out_shape=jax.ShapeDtypeStruct((1, 1), jnp.float32),
        grid=(B,),
        in_specs=[
            pl.BlockSpec((1, ROWS_PER_IMG, POOL_LANES), lambda i: (i, 0, 0)),
            pl.BlockSpec((1, ROWS_PER_IMG, POOL_LANES), lambda i: (i + B, 0, 0)),
            pl.BlockSpec((EMBED_K, FEAT_DIM), lambda i: (0, 0)),
            pl.BlockSpec((1, FEAT_DIM), lambda i: (0, 0)),
            pl.BlockSpec((1, FEAT_DIM), lambda i: (0, 0)),
            pl.BlockSpec((FEAT_DIM, FEAT_DIM), lambda i: (0, 0)),
            pl.BlockSpec((1, FEAT_DIM), lambda i: (0, 0)),
        ],
        out_specs=pl.BlockSpec((1, 1), lambda i: (0, 0)),
        compiler_params=pltpu.CompilerParams(
            dimension_semantics=("arbitrary",)),     # output revisited (accumulator)
    )(pooled, pooled, w1, b1, alpha, w2, b2)


# ----------------------------------------------------------------------------
# Parameters for the synthetic feature extractor.
# ----------------------------------------------------------------------------
def make_params(seed: int = 42):
    key = jax.random.PRNGKey(seed)
    k1, k2 = jax.random.split(key)
    return {
        "w1": jax.random.normal(k1, (EMBED_K, FEAT_DIM), jnp.float32) * 0.05,
        "b1": jnp.zeros((1, FEAT_DIM), jnp.float32),
        "alpha": jnp.full((1, FEAT_DIM), 0.25, jnp.float32),     # PReLU slope
        "w2": jax.random.normal(k2, (FEAT_DIM, FEAT_DIM), jnp.float32) * 0.05,
        "b2": jnp.zeros((1, FEAT_DIM), jnp.float32),
    }


@jax.jit
def id_loss_forward(pred: jnp.ndarray, gt: jnp.ndarray, params):
    """Returns (loss, sim_improvement) like IDLossModel.forward."""
    B, C, H, W = pred.shape
    assert C == 3 and gt.shape == pred.shape
    # Reference detaches the gt features; detaching the gt input gives the
    # same forward value and the same gradient flow to `pred`.
    gt = jax.lax.stop_gradient(gt)

    x = jnp.concatenate([pred, gt], axis=0).astype(jnp.bfloat16)   # (2B,3,H,W)
    x = x.reshape(2 * B, 3 * H, W)                                 # free reshape

    ah, awt = _combined_pool_matrices(H, W)
    pooled = _fused_pool(x, ah, awt)                               # (2B,336,128)

    loss = _feat_loss(pooled, params, B)[0, 0]
    sim_improvement = jnp.float32(0.0)     # always 0 / count in the reference
    return loss, sim_improvement


if __name__ == "__main__":
    key = jax.random.PRNGKey(0)
    kp, kg = jax.random.split(key)
    # small face images; H != 256 exercises the first adaptive-pool branch
    pred = jax.random.normal(kp, (2, 3, 64, 64), jnp.float32)
    gt = jax.random.normal(kg, (2, 3, 64, 64), jnp.float32)

    params = make_params()
    loss, sim_imp = id_loss_forward(pred, gt, params)
    jax.block_until_ready((loss, sim_imp))
    assert loss.shape == () and sim_imp.shape == ()
    assert bool(jnp.isfinite(loss))
    print("KERNEL_OK")
</pallas_src>

<mosaic_0001>
module attributes {stable_mosaic.version = 11 : i64} {
  func.func @kernel(%arg0: i32, %arg1: memref<1x192x64xbf16, #tpu.memory_space<vmem>>, %arg2: memref<112x64xbf16, #tpu.memory_space<vmem>>, %arg3: memref<64x128xbf16, #tpu.memory_space<vmem>>, %arg4: memref<1x336x128xbf16, #tpu.memory_space<vmem>>) attributes {dimension_semantics = [#tpu.dimension_semantics<parallel>], iteration_bounds = array<i64: 4>, scalar_prefetch = 0 : i64, scratch_operands = 0 : i64, tpu.core_type = #tpu.core_type<tc>, window_params = [{transform_indices = @transform_0, window_bounds = array<i64: 1, 192, 64>}, {pipeline_mode = #tpu.pipeline_mode<synchronous>, transform_indices = @transform_1, window_bounds = array<i64: 112, 64>}, {pipeline_mode = #tpu.pipeline_mode<synchronous>, transform_indices = @transform_2, window_bounds = array<i64: 64, 128>}, {transform_indices = @transform_3, window_bounds = array<i64: 1, 336, 128>}]} {
    %c0 = arith.constant 0 : index
    %c0_0 = arith.constant 0 : index
    %c0_1 = arith.constant 0 : index
    %0 = vector.load %arg1[%c0, %c0_0, %c0_1] : memref<1x192x64xbf16, #tpu.memory_space<vmem>>, vector<1x192x64xbf16>
    %1 = vector.shape_cast %0 : vector<1x192x64xbf16> to vector<192x64xbf16>
    %c0_2 = arith.constant 0 : index
    %c0_3 = arith.constant 0 : index
    %2 = vector.load %arg3[%c0_2, %c0_3] : memref<64x128xbf16, #tpu.memory_space<vmem>>, vector<64x128xbf16>
    %cst = arith.constant dense<0.000000e+00> : vector<192x128xf32>
    %3 = tpu.matmul %1, %2, %cst {dimension_numbers = #tpu.dot_dimension_numbers<[1], [0], [0], [1], [0, 0, 1, 1], [], []>} : vector<192x64xbf16>, vector<64x128xbf16>, vector<192x128xf32> -> vector<192x128xf32>
    %4 = arith.truncf %3 : vector<192x128xf32> to vector<192x128xbf16>
    %c0_4 = arith.constant 0 : index
    %c0_5 = arith.constant 0 : index
    %5 = vector.load %arg2[%c0_4, %c0_5] : memref<112x64xbf16, #tpu.memory_space<vmem>>, vector<112x64xbf16>
    %6 = vector.extract_strided_slice %4 {offsets = [0, 0], sizes = [64, 128], strides = [1, 1]} : vector<192x128xbf16> to vector<64x128xbf16>
    %cst_6 = arith.constant dense<0.000000e+00> : vector<112x128xf32>
    %7 = tpu.matmul %5, %6, %cst_6 {dimension_numbers = #tpu.dot_dimension_numbers<[1], [0], [0], [1], [0, 0, 1, 1], [], []>} : vector<112x64xbf16>, vector<64x128xbf16>, vector<112x128xf32> -> vector<112x128xf32>
    %8 = arith.truncf %7 : vector<112x128xf32> to vector<112x128xbf16>
    %c0_7 = arith.constant 0 : index
    %c0_8 = arith.constant 0 : index
    %c0_9 = arith.constant 0 : index
    %9 = vector.load %arg4[%c0_7, %c0_8, %c0_9] : memref<1x336x128xbf16, #tpu.memory_space<vmem>>, vector<1x112x128xbf16>
    %10 = vector.shape_cast %9 : vector<1x112x128xbf16> to vector<112x128xbf16>
    %11 = vector.shape_cast %8 : vector<112x128xbf16> to vector<1x112x128xbf16>
    tpu.vector_store %arg4[%c0_7, %c0_8, %c0_9], %11 {strides = array<i32>} : memref<1x336x128xbf16, #tpu.memory_space<vmem>>, vector<1x112x128xbf16>,
    %c0_10 = arith.constant 0 : index
    %c0_11 = arith.constant 0 : index
    %12 = vector.load %arg2[%c0_10, %c0_11] : memref<112x64xbf16, #tpu.memory_space<vmem>>, vector<112x64xbf16>
    %13 = vector.extract_strided_slice %4 {offsets = [64, 0], sizes = [64, 128], strides = [1, 1]} : vector<192x128xbf16> to vector<64x128xbf16>
    %cst_12 = arith.constant dense<0.000000e+00> : vector<112x128xf32>
    %14 = tpu.matmul %12, %13, %cst_12 {dimension_numbers = #tpu.dot_dimension_numbers<[1], [0], [0], [1], [0, 0, 1, 1], [], []>} : vector<112x64xbf16>, vector<64x128xbf16>, vector<112x128xf32> -> vector<112x128xf32>
    %15 = arith.truncf %14 : vector<112x128xf32> to vector<112x128xbf16>
    %c0_13 = arith.constant 0 : index
    %c112 = arith.constant 112 : index
    %c0_14 = arith.constant 0 : index
    %16 = vector.load %arg4[%c0_13, %c112, %c0_14] : memref<1x336x128xbf16, #tpu.memory_space<vmem>>, vector<1x112x128xbf16>
    %17 = vector.shape_cast %16 : vector<1x112x128xbf16> to vector<112x128xbf16>
    %18 = vector.shape_cast %15 : vector<112x128xbf16> to vector<1x112x128xbf16>
    tpu.vector_store %arg4[%c0_13, %c112, %c0_14], %18 {strides = array<i32>} : memref<1x336x128xbf16, #tpu.memory_space<vmem>>, vector<1x112x128xbf16>,
    %c0_15 = arith.constant 0 : index
    %c0_16 = arith.constant 0 : index
    %19 = vector.load %arg2[%c0_15, %c0_16] : memref<112x64xbf16, #tpu.memory_space<vmem>>, vector<112x64xbf16>
    %20 = vector.extract_strided_slice %4 {offsets = [128, 0], sizes = [64, 128], strides = [1, 1]} : vector<192x128xbf16> to vector<64x128xbf16>
    %cst_17 = arith.constant dense<0.000000e+00> : vector<112x128xf32>
    %21 = tpu.matmul %19, %20, %cst_17 {dimension_numbers = #tpu.dot_dimension_numbers<[1], [0], [0], [1], [0, 0, 1, 1], [], []>} : vector<112x64xbf16>, vector<64x128xbf16>, vector<112x128xf32> -> vector<112x128xf32>
    %22 = arith.truncf %21 : vector<112x128xf32> to vector<112x128xbf16>
    %c0_18 = arith.constant 0 : index
    %c224 = arith.constant 224 : index
    %c0_19 = arith.constant 0 : index
    %23 = vector.load %arg4[%c0_18, %c224, %c0_19] : memref<1x336x128xbf16, #tpu.memory_space<vmem>>, vector<1x112x128xbf16>
    %24 = vector.shape_cast %23 : vector<1x112x128xbf16> to vector<112x128xbf16>
    %25 = vector.shape_cast %22 : vector<112x128xbf16> to vector<1x112x128xbf16>
    tpu.vector_store %arg4[%c0_18, %c224, %c0_19], %25 {strides = array<i32>} : memref<1x336x128xbf16, #tpu.memory_space<vmem>>, vector<1x112x128xbf16>,
    return
  }
  func.func @transform_0(%arg0: i32) -> (i32, i32, i32) {
    %c0_i32 = arith.constant 0 : i32
    %c0_i32_0 = arith.constant 0 : i32
    %c0_i32_1 = arith.constant 0 : i32
    return %arg0, %c0_i32, %c0_i32_0 : i32, i32, i32
  }
  func.func @transform_1(%arg0: i32) -> (i32, i32) {
    %c0_i32 = arith.constant 0 : i32
    %c0_i32_0 = arith.constant 0 : i32
    %c0_i32_1 = arith.constant 0 : i32
    return %c0_i32, %c0_i32_0 : i32, i32
  }
  func.func @transform_2(%arg0: i32) -> (i32, i32) {
    %c0_i32 = arith.constant 0 : i32
    %c0_i32_0 = arith.constant 0 : i32
    %c0_i32_1 = arith.constant 0 : i32
    return %c0_i32, %c0_i32_0 : i32, i32
  }
  func.func @transform_3(%arg0: i32) -> (i32, i32, i32) {
    %c0_i32 = arith.constant 0 : i32
    %c0_i32_0 = arith.constant 0 : i32
    %c0_i32_1 = arith.constant 0 : i32
    return %arg0, %c0_i32, %c0_i32_0 : i32, i32, i32
  }
}

module attributes {stable_mosaic.version = 11 : i64} {
  func.func @kernel(%arg0: i32, %arg1: memref<1x336x128xbf16, #tpu.memory_space<vmem>>, %arg2: memref<1x336x128xbf16, #tpu.memory_space<vmem>>, %arg3: memref<128x512xbf16, #tpu.memory_space<vmem>>, %arg4: memref<1x512xf32, #tpu.memory_space<vmem>>, %arg5: memref<1x512xf32, #tpu.memory_space<vmem>>, %arg6: memref<512x512xbf16, #tpu.memory_space<vmem>>, %arg7: memref<1x512xf32, #tpu.memory_space<vmem>>, %arg8: memref<1x1xf32, #tpu.memory_space<vmem>>) attributes {dimension_semantics = [#tpu.dimension_semantics<arbitrary>], iteration_bounds = array<i64: 2>, scalar_prefetch = 0 : i64, scratch_operands = 0 : i64, tpu.core_type = #tpu.core_type<tc>, window_params = [{transform_indices = @transform_0, window_bounds = array<i64: 1, 336, 128>}, {transform_indices = @transform_1, window_bounds = array<i64: 1, 336, 128>}, {pipeline_mode = #tpu.pipeline_mode<synchronous>, transform_indices = @transform_2, window_bounds = array<i64: 128, 512>}, {pipeline_mode = #tpu.pipeline_mode<synchronous>, transform_indices = @transform_3, window_bounds = array<i64: 1, 512>}, {pipeline_mode = #tpu.pipeline_mode<synchronous>, transform_indices = @transform_4, window_bounds = array<i64: 1, 512>}, {pipeline_mode = #tpu.pipeline_mode<synchronous>, transform_indices = @transform_5, window_bounds = array<i64: 512, 512>}, {pipeline_mode = #tpu.pipeline_mode<synchronous>, transform_indices = @transform_6, window_bounds = array<i64: 1, 512>}, {pipeline_mode = #tpu.pipeline_mode<synchronous>, transform_indices = @transform_7, window_bounds = array<i64: 1, 1>}]} {
    %c0_i32 = arith.constant 0 : i32
    %0 = arith.cmpi eq, %arg0, %c0_i32 : i32
    %1 = arith.extui %0 : i1 to i32
    %c0_i32_0 = arith.constant 0 : i32
    %2 = arith.cmpi ne, %1, %c0_i32_0 : i32
    scf.if %2 {
      %cst_46 = arith.constant 0.000000e+00 : f32
      %73 = vector.broadcast %cst_46 : f32 to vector<1x1xf32>
      %c0_47 = arith.constant 0 : index
      %c0_48 = arith.constant 0 : index
      %74 = vector.load %arg8[%c0_47, %c0_48] : memref<1x1xf32, #tpu.memory_space<vmem>>, vector<1x1xf32>
      tpu.vector_store %arg8[%c0_47, %c0_48], %73 {strides = array<i32>} : memref<1x1xf32, #tpu.memory_space<vmem>>, vector<1x1xf32>,
    } else {
    }
    %c0 = arith.constant 0 : index
    %c0_1 = arith.constant 0 : index
    %c0_2 = arith.constant 0 : index
    %3 = vector.load %arg1[%c0, %c0_1, %c0_2] : memref<1x336x128xbf16, #tpu.memory_space<vmem>>, vector<1x336x128xbf16>
    %4 = vector.shape_cast %3 : vector<1x336x128xbf16> to vector<336x128xbf16>
    %c0_3 = arith.constant 0 : index
    %c0_4 = arith.constant 0 : index
    %5 = vector.load %arg3[%c0_3, %c0_4] : memref<128x512xbf16, #tpu.memory_space<vmem>>, vector<128x512xbf16>
    %cst = arith.constant dense<0.000000e+00> : vector<336x512xf32>
    %6 = tpu.matmul %4, %5, %cst {dimension_numbers = #tpu.dot_dimension_numbers<[1], [0], [0], [1], [0, 0, 1, 1], [], []>} : vector<336x128xbf16>, vector<128x512xbf16>, vector<336x512xf32> -> vector<336x512xf32>
    %c0_5 = arith.constant 0 : index
    %c0_6 = arith.constant 0 : index
    %7 = vector.load %arg4[%c0_5, %c0_6] : memref<1x512xf32, #tpu.memory_space<vmem>>, vector<1x512xf32>
    %8 = vector.broadcast %7 : vector<1x512xf32> to vector<336x512xf32>
    %9 = arith.addf %6, %8 : vector<336x512xf32>
    %cst_7 = arith.constant 0.000000e+00 : f32
    %10 = vector.broadcast %cst_7 : f32 to vector<336x512xf32>
    %11 = arith.cmpf ogt, %9, %10 : vector<336x512xf32>
    %c0_8 = arith.constant 0 : index
    %c0_9 = arith.constant 0 : index
    %12 = vector.load %arg5[%c0_8, %c0_9] : memref<1x512xf32, #tpu.memory_space<vmem>>, vector<1x512xf32>
    %13 = vector.broadcast %12 : vector<1x512xf32> to vector<336x512xf32>
    %14 = arith.mulf %13, %9 : vector<336x512xf32>
    %15 = arith.select %11, %9, %14 : vector<336x512xi1>, vector<336x512xf32>
    %cst_10 = arith.constant dense<0.000000e+00> : vector<512xf32>
    %16 = vector.multi_reduction <add>, %15, %cst_10 [0] : vector<336x512xf32> to vector<512xf32>
    %17 = vector.shape_cast %16 : vector<512xf32> to vector<1x512xf32>
    %cst_11 = arith.constant 3.360000e+02 : f32
    %18 = vector.broadcast %cst_11 : f32 to vector<1x512xf32>
    %19 = arith.divf %17, %18 : vector<1x512xf32>
    %20 = arith.truncf %19 : vector<1x512xf32> to vector<1x512xbf16>
    %c0_12 = arith.constant 0 : index
    %c0_13 = arith.constant 0 : index
    %21 = vector.load %arg6[%c0_12, %c0_13] : memref<512x512xbf16, #tpu.memory_space<vmem>>, vector<512x512xbf16>
    %cst_14 = arith.constant dense<0.000000e+00> : vector<1x512xf32>
    %22 = tpu.matmul %20, %21, %cst_14 {dimension_numbers = #tpu.dot_dimension_numbers<[1], [0], [0], [1], [0, 0, 1, 1], [], []>} : vector<1x512xbf16>, vector<512x512xbf16>, vector<1x512xf32> -> vector<1x512xf32>
    %c0_15 = arith.constant 0 : index
    %c0_16 = arith.constant 0 : index
    %23 = vector.load %arg7[%c0_15, %c0_16] : memref<1x512xf32, #tpu.memory_space<vmem>>, vector<1x512xf32>
    %24 = arith.addf %22, %23 : vector<1x512xf32>
    %25 = arith.mulf %24, %24 : vector<1x512xf32>
    %cst_17 = arith.constant dense<0.000000e+00> : vector<1xf32>
    %26 = vector.multi_reduction <add>, %25, %cst_17 [1] : vector<1x512xf32> to vector<1xf32>
    %27 = vector.shape_cast %26 : vector<1xf32> to vector<1x1xf32>
    %cst_18 = arith.constant 9.99999996E-13 : f32
    %28 = vector.broadcast %cst_18 : f32 to vector<1x1xf32>
    %29 = arith.maximumf %27, %28 : vector<1x1xf32>
    %30 = math.rsqrt %29 : vector<1x1xf32>
    %31 = vector.broadcast %30 : vector<1x1xf32> to vector<1x512xf32>
    %32 = arith.mulf %24, %31 : vector<1x512xf32>
    %c0_19 = arith.constant 0 : index
    %c0_20 = arith.constant 0 : index
    %c0_21 = arith.constant 0 : index
    %33 = vector.load %arg2[%c0_19, %c0_20, %c0_21] : memref<1x336x128xbf16, #tpu.memory_space<vmem>>, vector<1x336x128xbf16>
    %34 = vector.shape_cast %33 : vector<1x336x128xbf16> to vector<336x128xbf16>
    %c0_22 = arith.constant 0 : index
    %c0_23 = arith.constant 0 : index
    %35 = vector.load %arg3[%c0_22, %c0_23] : memref<128x512xbf16, #tpu.memory_space<vmem>>, vector<128x512xbf16>
    %cst_24 = arith.constant dense<0.000000e+00> : vector<336x512xf32>
    %36 = tpu.matmul %34, %35, %cst_24 {dimension_numbers = #tpu.dot_dimension_numbers<[1], [0], [0], [1], [0, 0, 1, 1], [], []>} : vector<336x128xbf16>, vector<128x512xbf16>, vector<336x512xf32> -> vector<336x512xf32>
    %c0_25 = arith.constant 0 : index
    %c0_26 = arith.constant 0 : index
    %37 = vector.load %arg4[%c0_25, %c0_26] : memref<1x512xf32, #tpu.memory_space<vmem>>, vector<1x512xf32>
    %38 = vector.broadcast %37 : vector<1x512xf32> to vector<336x512xf32>
    %39 = arith.addf %36, %38 : vector<336x512xf32>
    %cst_27 = arith.constant 0.000000e+00 : f32
    %40 = vector.broadcast %cst_27 : f32 to vector<336x512xf32>
    %41 = arith.cmpf ogt, %39, %40 : vector<336x512xf32>
    %c0_28 = arith.constant 0 : index
    %c0_29 = arith.constant 0 : index
    %42 = vector.load %arg5[%c0_28, %c0_29] : memref<1x512xf32, #tpu.memory_space<vmem>>, vector<1x512xf32>
    %43 = vector.broadcast %42 : vector<1x512xf32> to vector<336x512xf32>
    %44 = arith.mulf %43, %39 : vector<336x512xf32>
    %45 = arith.select %41, %39, %44 : vector<336x512xi1>, vector<336x512xf32>
    %cst_30 = arith.constant dense<0.000000e+00> : vector<512xf32>
    %46 = vector.multi_reduction <add>, %45, %cst_30 [0] : vector<336x512xf32> to vector<512xf32>
    %47 = vector.shape_cast %46 : vector<512xf32> to vector<1x512xf32>
    %cst_31 = arith.constant 3.360000e+02 : f32
    %48 = vector.broadcast %cst_31 : f32 to vector<1x512xf32>
    %49 = arith.divf %47, %48 : vector<1x512xf32>
    %50 = arith.truncf %49 : vector<1x512xf32> to vector<1x512xbf16>
    %c0_32 = arith.constant 0 : index
    %c0_33 = arith.constant 0 : index
    %51 = vector.load %arg6[%c0_32, %c0_33] : memref<512x512xbf16, #tpu.memory_space<vmem>>, vector<512x512xbf16>
    %cst_34 = arith.constant dense<0.000000e+00> : vector<1x512xf32>
    %52 = tpu.matmul %50, %51, %cst_34 {dimension_numbers = #tpu.dot_dimension_numbers<[1], [0], [0], [1], [0, 0, 1, 1], [], []>} : vector<1x512xbf16>, vector<512x512xbf16>, vector<1x512xf32> -> vector<1x512xf32>
    %c0_35 = arith.constant 0 : index
    %c0_36 = arith.constant 0 : index
    %53 = vector.load %arg7[%c0_35, %c0_36] : memref<1x512xf32, #tpu.memory_space<vmem>>, vector<1x512xf32>
    %54 = arith.addf %52, %53 : vector<1x512xf32>
    %55 = arith.mulf %54, %54 : vector<1x512xf32>
    %cst_37 = arith.constant dense<0.000000e+00> : vector<1xf32>
    %56 = vector.multi_reduction <add>, %55, %cst_37 [1] : vector<1x512xf32> to vector<1xf32>
    %57 = vector.shape_cast %56 : vector<1xf32> to vector<1x1xf32>
    %cst_38 = arith.constant 9.99999996E-13 : f32
    %58 = vector.broadcast %cst_38 : f32 to vector<1x1xf32>
    %59 = arith.maximumf %57, %58 : vector<1x1xf32>
    %60 = math.rsqrt %59 : vector<1x1xf32>
    %61 = vector.broadcast %60 : vector<1x1xf32> to vector<1x512xf32>
    %62 = arith.mulf %54, %61 : vector<1x512xf32>
    %63 = arith.mulf %32, %62 : vector<1x512xf32>
    %cst_39 = arith.constant dense<0.000000e+00> : vector<1xf32>
    %64 = vector.multi_reduction <add>, %63, %cst_39 [1] : vector<1x512xf32> to vector<1xf32>
    %65 = vector.shape_cast %64 : vector<1xf32> to vector<1x1xf32>
    %c0_40 = arith.constant 0 : index
    %c0_41 = arith.constant 0 : index
    %66 = vector.load %arg8[%c0_40, %c0_41] : memref<1x1xf32, #tpu.memory_space<vmem>>, vector<1x1xf32>
    %cst_42 = arith.constant 1.000000e+00 : f32
    %67 = vector.broadcast %cst_42 : f32 to vector<1x1xf32>
    %68 = arith.subf %67, %65 : vector<1x1xf32>
    %cst_43 = arith.constant 5.000000e-01 : f32
    %69 = vector.broadcast %cst_43 : f32 to vector<1x1xf32>
    %70 = arith.mulf %68, %69 : vector<1x1xf32>
    %71 = arith.addf %66, %70 : vector<1x1xf32>
    %c0_44 = arith.constant 0 : index
    %c0_45 = arith.constant 0 : index
    %72 = vector.load %arg8[%c0_44, %c0_45] : memref<1x1xf32, #tpu.memory_space<vmem>>, vector<1x1xf32>
    tpu.vector_store %arg8[%c0_44, %c0_45], %71 {strides = array<i32>} : memref<1x1xf32, #tpu.memory_space<vmem>>, vector<1x1xf32>,
    return
  }
  func.func @transform_0(%arg0: i32) -> (i32, i32, i32) {
    %c0_i32 = arith.constant 0 : i32
    %c0_i32_0 = arith.constant 0 : i32
    %c0_i32_1 = arith.constant 0 : i32
    return %arg0, %c0_i32, %c0_i32_0 : i32, i32, i32
  }
  func.func @transform_1(%arg0: i32) -> (i32, i32, i32) {
    %c2_i32 = arith.constant 2 : i32
    %0 = arith.addi %arg0, %c2_i32 : i32
    %c0_i32 = arith.constant 0 : i32
    %c0_i32_0 = arith.constant 0 : i32
    %c0_i32_1 = arith.constant 0 : i32
    return %0, %c0_i32, %c0_i32_0 : i32, i32, i32
  }
  func.func @transform_2(%arg0: i32) -> (i32, i32) {
    %c0_i32 = arith.constant 0 : i32
    %c0_i32_0 = arith.constant 0 : i32
    %c0_i32_1 = arith.constant 0 : i32
    return %c0_i32, %c0_i32_0 : i32, i32
  }
  func.func @transform_3(%arg0: i32) -> (i32, i32) {
    %c0_i32 = arith.constant 0 : i32
    %c0_i32_0 = arith.constant 0 : i32
    %c0_i32_1 = arith.constant 0 : i32
    return %c0_i32, %c0_i32_0 : i32, i32
  }
  func.func @transform_4(%arg0: i32) -> (i32, i32) {
    %c0_i32 = arith.constant 0 : i32
    %c0_i32_0 = arith.constant 0 : i32
    %c0_i32_1 = arith.constant 0 : i32
    return %c0_i32, %c0_i32_0 : i32, i32
  }
  func.func @transform_5(%arg0: i32) -> (i32, i32) {
    %c0_i32 = arith.constant 0 : i32
    %c0_i32_0 = arith.constant 0 : i32
    %c0_i32_1 = arith.constant 0 : i32
    return %c0_i32, %c0_i32_0 : i32, i32
  }
  func.func @transform_6(%arg0: i32) -> (i32, i32) {
    %c0_i32 = arith.constant 0 : i32
    %c0_i32_0 = arith.constant 0 : i32
    %c0_i32_1 = arith.constant 0 : i32
    return %c0_i32, %c0_i32_0 : i32, i32
  }
  func.func @transform_7(%arg0: i32) -> (i32, i32) {
    %c0_i32 = arith.constant 0 : i32
    %c0_i32_0 = arith.constant 0 : i32
    %c0_i32_1 = arith.constant 0 : i32
    return %c0_i32, %c0_i32_0 : i32, i32
  }
}

</mosaic_0001>

<bundles_post_ra>
// kernel: id_loss_forward.2
= control target key start
LH: loop header
LB: loop body
LE: loop exit
PB: predicated region body
PF: predicated region fallthrough
CT: control target
= control target key end

     0   :  { %s1369_s12 = smov 0   ;;  %s1525_s0 = inlined_call_operand.vmem [shape: bf16[4,192,64], index: 0, kind: input, shape index: {}]   ;;  %s1526_s1 = inlined_call_operand.vmem [shape: bf16[112,64], index: 1, kind: input, shape index: {}]   ;;  %s1527_s2 = inlined_call_operand.vmem [shape: bf16[64,128], index: 2, kind: input, shape index: {}]   ;;  %s1528_s3 = inlined_call_operand.vmem [shape: bf16[4,336,128], index: 3, kind: output, shape index: {}]  }
   0x1 LB: > { %s971_s13 = sadd.s32 4294967295, %s1347_s12   ;;  %p975_p0 = scmp.ge.s32.totalorder %s1347_s12, 1  ;;  %s1347_s12 = sphi %s1369_s12, %s13_s12  }
   0x2   : > { %p137_p1 = scmp.lt.s32.totalorder %s1347_s12, 5 }
   0x4   : > { %p138_p2 = pnand %p975_p0, %p137_p1 }
   0x5   : > { %p161_p3 = scmp.lt.s32.totalorder (!%p138_p2), %s971_s13, 3 }
   0x6   : > { %141 = sbr.rel (%p138_p2) target bundleno = 537 (0x219), region = 32 }
   0xb   : > { %v1176_v0 = vld [vmem:[%s1527_s2 + $0x18] sm:$0xff]  ;;  %v1175_v1 = vld [vmem:[%s1527_s2 + $0x10] sm:$0xff]  ;;  %s1530_s13 = smov (!%p161_p3, %s971_s13), 3  ;;  %v1174_v2 = vld [vmem:[%s1527_s2 + $0x8] sm:$0xff]  ;;  %vm288_vm0 = vcmask 523264  }
   0xc   : > { %329 = vmatpush.bf16.msra.mxu0 %v1176_v0  ;;  %1324 = vmatpush.bf16.msra.mxu2 %v1176_v0  ;;  %s1331_s20 = smul.u32 96, %s1530_s13  ;;  %v1173_v3 = vld [vmem:[%s1527_s2] sm:$0xff] }
   0xd   : > { %1323 = vmatpush.bf16.msra.mxu1 %v1176_v0  ;;  %s1332_s18 = smul.u32 168, %s1530_s13 }
   0xe   : > { %s165_s25 = scalar_lea.vmem %s1525_s0, %s1331_s20 }
   0xf   : > { %v1161_v4 = vld [vmem:[%s165_s25] sm:$0xff]  ;;  %v1162_v5 = vld [vmem:[%s165_s25 + $0x8] sm:$0xff]  ;;  %v1163_v6 = vld [vmem:[%s165_s25 + $0x10] sm:$0xff]  ;;  %s1499_s21 = scalar_lea.vmem %s1528_s3, %s1332_s18 }
  0x10   : > { %330 = vmatpush.bf16.msra.mxu0 %v1175_v1  ;;  %1326 = vmatpush.bf16.msra.mxu2 %v1175_v1  ;;  %v1171_v7 = vld [vmem:[%s165_s25 + $0x50] sm:$0xff]  ;;  %v1164_v8 = vld [vmem:[%s165_s25 + $0x18] sm:$0xff]  ;;  %v1165_v10 = vld [vmem:[%s165_s25 + $0x20] sm:$0xff] }
  0x11   : > { %1325 = vmatpush.bf16.msra.mxu1 %v1175_v1  ;;  %v1172_v9 = vld [vmem:[%s165_s25 + $0x58] sm:$0xff]  ;;  %v1166_v11 = vld [vmem:[%s165_s25 + $0x28] sm:$0xff]  ;;  %v1167_v13 = vld [vmem:[%s165_s25 + $0x30] sm:$0xff] }
  0x12   : > { %v1170_v12 = vld [vmem:[%s165_s25 + $0x48] sm:$0xff]  ;;  %v1168_v14 = vld [vmem:[%s165_s25 + $0x38] sm:$0xff]  ;;  %v1169_v15 = vld [vmem:[%s165_s25 + $0x40] sm:$0xff] }
  0x14   : > { %331 = vmatpush.bf16.msra.mxu0 %v1174_v2  ;;  %1328 = vmatpush.bf16.msra.mxu2 %v1174_v2 }
  0x15   : > { %1327 = vmatpush.bf16.msra.mxu1 %v1174_v2 }
  0x18   : > { %332 = vmatpush.bf16.msra.mxu0 %v1173_v3  ;;  %1330 = vmatpush.bf16.msra.mxu2 %v1173_v3 }
  0x19   : > { %1329 = vmatpush.bf16.msra.mxu1 %v1173_v3 }
  0x1b   : > { %1042 = vmatmul.msk.bf16.vlgmr.msra.gmra.mxu0 %vm288_vm0, %v1161_v4  ;;  %1052 = vmatmul.msk.bf16.vlgmr.msra.gmra.mxu2 %vm288_vm0, %v1171_v7  ;;  %v1177_v7 = vld [vmem:[%s1526_s1] sm:$0xff] }
  0x1c   : > { %1051 = vmatmul.msk.bf16.vlgmr.msra.gmra.mxu1 %vm288_vm0, %v1170_v12 }
  0x2b   : > { %1043 = vmatmul.msk.bf16.gmra.mxu0 %vm288_vm0, %v1162_v5  ;;  %1053 = vmatmul.msk.bf16.gmra.mxu2 %vm288_vm0, %v1172_v9 }
  0x3b   : > { %1044 = vmatmul.msk.bf16.gmra.mxu0 %vm288_vm0, %v1163_v6 }
  0x4b   : > { %1045 = vmatmul.msk.bf16.gmra.mxu0 %vm288_vm0, %v1164_v8 }
  0x5b   : > { %1046 = vmatmul.msk.bf16.gmra.mxu0 %vm288_vm0, %v1165_v10 }
  0x6b   : > { %1047 = vmatmul.msk.bf16.gmra.mxu0 %vm288_vm0, %v1166_v11 }
  0x7b   : > { %1048 = vmatmul.msk.bf16.gmra.mxu0 %vm288_vm0, %v1167_v13 }
  0x8b   : > { %1049 = vmatmul.msk.bf16.gmra.mxu0 %vm288_vm0, %v1168_v14 }
  0x98   : > { %v334_v16 = vpop.f32.mrf.mxu0 }
  0x99   : > { %v394_v47 = vpack.c.bf16 %v334_v16, %v334_v16  ;;  %v379_v61 = vpop.f32.mrf.mxu1 }
  0x9a   : > { %v412_v0 = vpack.c.bf16 %v379_v61, %v379_v61 }
  0x9b   : > { %1050 = vmatmul.msk.bf16.gmra.mxu0 %vm288_vm0, %v1169_v15  ;;  %v475_v56 = vunpack.c.l.b16 %v394_v47  ;;  %v1187_v47 = vld [vmem:[%s1526_s1 + $0x18] sm:$0xff] }
  0x9c   : > { %v809_v2 = vunpack.c.l.b16 %v412_v0 }
  0x9e   : > { %v384_v22 = vpop.f32.mrf.mxu2 }
  0x9f   : > { %v414_v43 = vpack.c.bf16 %v384_v22, %v384_v22 }
  0xa0   : > { %v336_v17 = vpop.f32.mrf.mxu0 }
  0xa1   : > { %v395_v38 = vpack.c.bf16 %v336_v17, %v336_v17  ;;  %v811_v53 = vunpack.c.l.b16 %v414_v43  ;;  %v381_v63 = vpop.f32.mrf.mxu1  ;;  %v1180_v43 = vld [vmem:[%s1526_s1 + $0x18] sm:$0xff] }
  0xa2   : > { %v413_v1 = vpack.c.bf16 %v381_v63, %v381_v63 }
  0xa3   : > { %v476_v51 = vunpack.c.l.b16 %v395_v38 }
  0xa4   : > { %v810_v3 = vunpack.c.l.b16 %v413_v1 }
  0xa5   : > { %v483_v58 = vpack.c.b16 %v476_v51, %v475_v56  ;;  %v1195_v51 = vld [vmem:[%s1526_s1 + $0x20] sm:$0xff] }
  0xa6   : > { %v386_v24 = vpop.f32.mrf.mxu2  ;;  %v816_v5 = vpack.c.b16 %v810_v3, %v809_v2 }
  0xa7   : > { %v415_v44 = vpack.c.bf16 %v386_v24, %v386_v24 }
  0xa8   : > { %v339_v18 = vpop.f32.mrf.mxu0 }
  0xa9   : > { %v396_v37 = vpack.c.bf16 %v339_v18, %v339_v18  ;;  %v812_v54 = vunpack.c.l.b16 %v415_v44  ;;  %v1186_v44 = vld [vmem:[%s1526_s1 + $0x10] sm:$0xff] }
  0xab   : > { %v477_v48 = vunpack.c.l.b16 %v396_v37  ;;  %v817_v59 = vpack.c.b16 %v812_v54, %v811_v53  ;;  %v1189_v53 = vld [vmem:[%s1526_s1 + $0x28] sm:$0xff] }
  0xac   : > { %v1196_v54 = vld [vmem:[%s1526_s1 + $0x28] sm:$0xff] }
  0xae   : > { %v389_v28 = vpop.f32.mrf.mxu2 }
  0xaf   : > { %v416_v45 = vpack.c.bf16 %v389_v28, %v389_v28 }
  0xb0   : > { %v341_v19 = vpop.f32.mrf.mxu0 }
  0xb1   : > { %v397_v33 = vpack.c.bf16 %v341_v19, %v341_v19  ;;  %v813_v49 = vunpack.c.l.b16 %v416_v45  ;;  %v1178_v19 = vld [vmem:[%s1526_s1 + $0x8] sm:$0xff]  ;;  %v1193_v45 = vld [vmem:[%s1526_s1 + $0x10] sm:$0xff] }
  0xb3   : > { %v478_v39 = vunpack.c.l.b16 %v397_v33 }
  0xb5   : > { %v484_v52 = vpack.c.b16 %v478_v39, %v477_v48  ;;  %v1191_v39 = vld [vmem:[%s1526_s1] sm:$0xff]  ;;  %v1194_v48 = vld [vmem:[%s1526_s1 + $0x18] sm:$0xff] }
  0xb6   : > { %v391_v42 = vpop.f32.mrf.mxu2 }
  0xb7   : > { %v417_v46 = vpack.c.bf16 %v391_v42, %v391_v42  ;;  %v1192_v42 = vld [vmem:[%s1526_s1 + $0x8] sm:$0xff] }
  0xb8   : > { %v344_v20 = vpop.f32.mrf.mxu0 }
  0xb9   : > { %v398_v30 = vpack.c.bf16 %v344_v20, %v344_v20  ;;  %v814_v50 = vunpack.c.l.b16 %v417_v46  ;;  %v1181_v46 = vld [vmem:[%s1526_s1 + $0x20] sm:$0xff] }
  0xbb   : > { %v479_v36 = vunpack.c.l.b16 %v398_v30  ;;  %v818_v55 = vpack.c.b16 %v814_v50, %v813_v49  ;;  %v1182_v49 = vld [vmem:[%s1526_s1 + $0x28] sm:$0xff]  ;;  %v1188_v50 = vld [vmem:[%s1526_s1 + $0x20] sm:$0xff] }
  0xbd   : > { %848 = vmatpush.bf16.msra.mxu3 %v818_v55  ;;  %v1190_v55 = vld [vmem:[%s1526_s1 + $0x30] sm:$0xff] }
  0xc0   : > { %v346_v21 = vpop.f32.mrf.mxu0 }
  0xc1   : > { %v399_v26 = vpack.c.bf16 %v346_v21, %v346_v21  ;;  %849 = vmatpush.bf16.msra.mxu3 %v817_v59 }
  0xc3   : > { %v480_v34 = vunpack.c.l.b16 %v399_v26 }
  0xc5   : > { %v485_v41 = vpack.c.b16 %v480_v34, %v479_v36  ;;  %850 = vmatpush.bf16.msra.mxu3 %v816_v5 }
  0xc8   : > { %v349_v23 = vpop.f32.mrf.mxu0 }
  0xc9   : > { %v400_v25 = vpack.c.bf16 %v349_v23, %v349_v23 }
  0xcb   : > { %v481_v31 = vunpack.c.l.b16 %v400_v25 }
  0xd0   : > { %v351_v27 = vpop.f32.mrf.mxu0 }
  0xd1   : > { %v401_v29 = vpack.c.bf16 %v351_v27, %v351_v27 }
  0xd3   : > { %v482_v32 = vunpack.c.l.b16 %v401_v29 }
  0xd5   : > { %v486_v35 = vpack.c.b16 %v482_v32, %v481_v31 }
  0xd7   : > { %516 = vmatpush.bf16.msrb.mxu1 %v486_v35  ;;  %v1184_v35 = vld [vmem:[%s1526_s1] sm:$0xff] }
  0xd8   : > { %v1407_v40 = vpop.f32.mrf.mxu0 }
  0xd9   : > { %v402_v26 = vpack.c.bf16 %v1407_v40, %v1407_v40  ;;  %v1179_v40 = vld [vmem:[%s1526_s1 + $0x10] sm:$0xff] }
  0xdb   : > { %517 = vmatpush.bf16.msrb.mxu1 %v485_v41  ;;  %v641_v30 = vunpack.c.l.b16 %v402_v26  ;;  %v1185_v41 = vld [vmem:[%s1526_s1 + $0x8] sm:$0xff] }
  0xdf   : > { %518 = vmatpush.bf16.msrb.mxu1 %v484_v52  ;;  %v1183_v52 = vld [vmem:[%s1526_s1 + $0x30] sm:$0xff] }
  0xe0   : > { %v356_v57 = vpop.f32.mrf.mxu0 }
  0xe1   : > { %v403_v23 = vpack.c.bf16 %v356_v57, %v356_v57  ;;  %v1197_v57 = vld [vmem:[%s1526_s1 + $0x30] sm:$0xff] }
  0xe3   : > { %519 = vmatpush.bf16.msrb.mxu1 %v483_v58  ;;  %v642_v28 = vunpack.c.l.b16 %v403_v23 }
  0xe5   : > { %v649_v33 = vpack.c.b16 %v642_v28, %v641_v30 }
  0xe6   : > { %1082 = vmatmul.msk.bf16.vlgmr.msrb.gmra.mxu1 %vm288_vm0, %v1177_v7 }
  0xe8   : > { %v359_v60 = vpop.f32.mrf.mxu0 }
  0xe9   : > { %v404_v20 = vpack.c.bf16 %v359_v60, %v359_v60 }
  0xeb   : > { %v643_v27 = vunpack.c.l.b16 %v404_v20 }
  0xf0   : > { %v361_v62 = vpop.f32.mrf.mxu0 }
  0xf1   : > { %v405_v16 = vpack.c.bf16 %v361_v62, %v361_v62 }
  0xf3   : > { %v644_v24 = vunpack.c.l.b16 %v405_v16 }
  0xf5   : > { %v650_v29 = vpack.c.b16 %v644_v24, %v643_v27 }
  0xf6   : > { %1083 = vmatmul.msk.bf16.gmra.mxu1 %vm288_vm0, %v1178_v19 }
  0xf8   : > { %v364_v4 = vpop.f32.mrf.mxu0 }
  0xf9   : > { %v406_v13 = vpack.c.bf16 %v364_v4, %v364_v4 }
  0xfb   : > { %v645_v21 = vunpack.c.l.b16 %v406_v13 }
 0x100   : > { %v366_v6 = vpop.f32.mrf.mxu0 }
 0x101   : > { %v407_v11 = vpack.c.bf16 %v366_v6, %v366_v6 }
 0x103   : > { %v646_v17 = vunpack.c.l.b16 %v407_v11 }
 0x105   : > { %v651_v25 = vpack.c.b16 %v646_v17, %v645_v21 }
 0x106   : > { %1084 = vmatmul.msk.bf16.gmra.mxu1 %vm288_vm0, %v1179_v40 }
 0x108   : > { %v369_v8 = vpop.f32.mrf.mxu0 }
 0x109   : > { %v408_v9 = vpack.c.bf16 %v369_v8, %v369_v8 }
 0x10b   : > { %v647_v14 = vunpack.c.l.b16 %v408_v9 }
 0x110   : > { %v371_v10 = vpop.f32.mrf.mxu0 }
 0x111   : > { %v409_v12 = vpack.c.bf16 %v371_v10, %v371_v10 }
 0x113   : > { %v648_v15 = vunpack.c.l.b16 %v409_v12 }
 0x115   : > { %v652_v18 = vpack.c.b16 %v648_v15, %v647_v14 }
 0x116   : > { %1085 = vmatmul.msk.bf16.gmra.mxu1 %vm288_vm0, %v1180_v43 }
 0x117   : > { %682 = vmatpush.bf16.msrb.mxu2 %v652_v18 }
 0x118   : > { %v374_v22 = vpop.f32.mrf.mxu0 }
 0x119   : > { %v410_v31 = vpack.c.bf16 %v374_v22, %v374_v22 }
 0x11b   : > { %683 = vmatpush.bf16.msrb.mxu2 %v651_v25  ;;  %v807_v36 = vunpack.c.l.b16 %v410_v31 }
 0x11f   : > { %684 = vmatpush.bf16.msrb.mxu2 %v650_v29 }
 0x120   : > { %v376_v32 = vpop.f32.mrf.mxu0 }
 0x121   : > { %v411_v34 = vpack.c.bf16 %v376_v32, %v376_v32 }
 0x123   : > { %685 = vmatpush.bf16.msrb.mxu2 %v649_v33  ;;  %v808_v37 = vunpack.c.l.b16 %v411_v34 }
 0x125   : > { %v815_v38 = vpack.c.b16 %v808_v37, %v807_v36 }
 0x126   : > { %1117 = vmatmul.msk.bf16.vlgmr.msrb.gmra.mxu2 %vm288_vm0, %v1184_v35  ;;  %1086 = vmatmul.msk.bf16.gmra.mxu1 %vm288_vm0, %v1181_v46 }
 0x127   : > { %851 = vmatpush.bf16.msra.mxu3 %v815_v38 }
 0x12a   : > { %1152 = vmatmul.msk.bf16.vlgmr.msra.gmra.mxu3 %vm288_vm0, %v1191_v39 }
 0x136   : > { %1118 = vmatmul.msk.bf16.gmra.mxu2 %vm288_vm0, %v1185_v41  ;;  %1087 = vmatmul.msk.bf16.gmra.mxu1 %vm288_vm0, %v1182_v49 }
 0x13a   : > { %1153 = vmatmul.msk.bf16.gmra.mxu3 %vm288_vm0, %v1192_v42 }
 0x146   : > { %1119 = vmatmul.msk.bf16.gmra.mxu2 %vm288_vm0, %v1186_v44  ;;  %1088 = vmatmul.msk.bf16.gmra.mxu1 %vm288_vm0, %v1183_v52 }
 0x14a   : > { %1154 = vmatmul.msk.bf16.gmra.mxu3 %vm288_vm0, %v1193_v45 }
 0x156   : > { %1120 = vmatmul.msk.bf16.gmra.mxu2 %vm288_vm0, %v1187_v47 }
 0x15a   : > { %1155 = vmatmul.msk.bf16.gmra.mxu3 %vm288_vm0, %v1194_v48 }
 0x163   : > { %v521_v56 = vpop.f32.mrf.mxu1 }
 0x166   : > { %1121 = vmatmul.msk.bf16.gmra.mxu2 %vm288_vm0, %v1188_v50 }
 0x16a   : > { %1156 = vmatmul.msk.bf16.gmra.mxu3 %vm288_vm0, %v1195_v51 }
 0x16b   : > { %v523_v58 = vpop.f32.mrf.mxu1 }
 0x16c   : > { %v1201_v59 = vpack.c.bf16 %v523_v58, %v521_v56 }
 0x16e   : > { %1202 = vst [vmem:[%s1499_s21] sm:$0xff] %v1201_v59  }
 0x173   : > { %v526_v60 = vpop.f32.mrf.mxu1 }
 0x176   : > { %1122 = vmatmul.msk.bf16.gmra.mxu2 %vm288_vm0, %v1189_v53 }
 0x17a   : > { %1157 = vmatmul.msk.bf16.gmra.mxu3 %vm288_vm0, %v1196_v54 }
 0x17b   : > { %v528_v61 = vpop.f32.mrf.mxu1 }
 0x17c   : > { %v1206_v62 = vpack.c.bf16 %v528_v61, %v526_v60 }
 0x17e   : > { %1303 = vst [vmem:[%s1499_s21 + $0x8] sm:$0xff] %v1206_v62  }
 0x183   : > { %v531_v63 = vpop.f32.mrf.mxu1 }
 0x186   : > { %1123 = vmatmul.msk.bf16.gmra.mxu2 %vm288_vm0, %v1190_v55 }
 0x18a   : > { %1158 = vmatmul.msk.bf16.gmra.mxu3 %vm288_vm0, %v1197_v57 }
 0x18b   : > { %v533_v2 = vpop.f32.mrf.mxu1 }
 0x18c   : > { %v1211_v3 = vpack.c.bf16 %v533_v2, %v531_v63 }
 0x18e   : > { %1304 = vst [vmem:[%s1499_s21 + $0x10] sm:$0xff] %v1211_v3  }
 0x193   : > { %v536_v7 = vpop.f32.mrf.mxu1 }
 0x19b   : > { %v538_v11 = vpop.f32.mrf.mxu1 }
 0x19c   : > { %v1216_v12 = vpack.c.bf16 %v538_v11, %v536_v7 }
 0x19e   : > { %1305 = vst [vmem:[%s1499_s21 + $0x18] sm:$0xff] %v1216_v12  }
 0x1a3   : > { %v541_v16 = vpop.f32.mrf.mxu1 }
 0x1a9   : > { %v687_v0 = vpop.f32.mrf.mxu2 }
 0x1ab   : > { %v543_v20 = vpop.f32.mrf.mxu1 }
 0x1ac   : > { %v1221_v21 = vpack.c.bf16 %v543_v20, %v541_v16 }
 0x1ad   : > { %v853_v1 = vpop.f32.mrf.mxu3 }
 0x1ae   : > { %1306 = vst [vmem:[%s1499_s21 + $0x20] sm:$0xff] %v1221_v21  }
 0x1b1   : > { %v689_v4 = vpop.f32.mrf.mxu2 }
 0x1b2   : > { %v1236_v5 = vpack.c.bf16 %v689_v4, %v687_v0 }
 0x1b3   : > { %v546_v25 = vpop.f32.mrf.mxu1 }
 0x1b4   : > { %1309 = vst [vmem:[%s1499_s21 + $0x38] sm:$0xff] %v1236_v5  }
 0x1b5   : > { %v855_v6 = vpop.f32.mrf.mxu3 }
 0x1b6   : > { %v1271_v8 = vpack.c.bf16 %v855_v6, %v853_v1 }
 0x1b8   : > { %1316 = vst [vmem:[%s1499_s21 + $0x70] sm:$0xff] %v1271_v8  }
 0x1b9   : > { %v692_v9 = vpop.f32.mrf.mxu2 }
 0x1bb   : > { %v548_v29 = vpop.f32.mrf.mxu1 }
 0x1bc   : > { %v1226_v30 = vpack.c.bf16 %v548_v29, %v546_v25 }
 0x1bd   : > { %v858_v10 = vpop.f32.mrf.mxu3 }
 0x1be   : > { %1307 = vst [vmem:[%s1499_s21 + $0x28] sm:$0xff] %v1226_v30  }
 0x1c1   : > { %v694_v13 = vpop.f32.mrf.mxu2 }
 0x1c2   : > { %v1241_v14 = vpack.c.bf16 %v694_v13, %v692_v9 }
 0x1c3   : > { %v551_v34 = vpop.f32.mrf.mxu1 }
 0x1c4   : > { %1310 = vst [vmem:[%s1499_s21 + $0x40] sm:$0xff] %v1241_v14  }
 0x1c5   : > { %v860_v15 = vpop.f32.mrf.mxu3 }
 0x1c6   : > { %v1276_v17 = vpack.c.bf16 %v860_v15, %v858_v10 }
 0x1c8   : > { %1317 = vst [vmem:[%s1499_s21 + $0x78] sm:$0xff] %v1276_v17  }
 0x1c9   : > { %v697_v18 = vpop.f32.mrf.mxu2 }
 0x1cb   : > { %v553_v38 = vpop.f32.mrf.mxu1 }
 0x1cc   : > { %v1231_v39 = vpack.c.bf16 %v553_v38, %v551_v34 }
 0x1cd   : > { %v863_v19 = vpop.f32.mrf.mxu3 }
 0x1ce   : > { %1308 = vst [vmem:[%s1499_s21 + $0x30] sm:$0xff] %v1231_v39  }
 0x1d1   : > { %v699_v22 = vpop.f32.mrf.mxu2 }
 0x1d2   : > { %v1246_v23 = vpack.c.bf16 %v699_v22, %v697_v18 }
 0x1d4   : > { %1311 = vst [vmem:[%s1499_s21 + $0x48] sm:$0xff] %v1246_v23  }
 0x1d5   : > { %v865_v24 = vpop.f32.mrf.mxu3 }
 0x1d6   : > { %v1281_v26 = vpack.c.bf16 %v865_v24, %v863_v19 }
 0x1d8   : > { %1318 = vst [vmem:[%s1499_s21 + $0x80] sm:$0xff] %v1281_v26  }
 0x1d9   : > { %v702_v27 = vpop.f32.mrf.mxu2 }
 0x1dd   : > { %v868_v28 = vpop.f32.mrf.mxu3 }
 0x1e1   : > { %v704_v31 = vpop.f32.mrf.mxu2 }
 0x1e2   : > { %v1251_v32 = vpack.c.bf16 %v704_v31, %v702_v27 }
 0x1e4   : > { %1312 = vst [vmem:[%s1499_s21 + $0x50] sm:$0xff] %v1251_v32  }
 0x1e5   : > { %v870_v33 = vpop.f32.mrf.mxu3 }
 0x1e6   : > { %v1286_v35 = vpack.c.bf16 %v870_v33, %v868_v28 }
 0x1e8   : > { %1319 = vst [vmem:[%s1499_s21 + $0x88] sm:$0xff] %v1286_v35  }
 0x1e9   : > { %v707_v36 = vpop.f32.mrf.mxu2 }
 0x1ed   : > { %v873_v37 = vpop.f32.mrf.mxu3 }
 0x1f1   : > { %v709_v40 = vpop.f32.mrf.mxu2 }
 0x1f2   : > { %v1256_v41 = vpack.c.bf16 %v709_v40, %v707_v36 }
 0x1f4   : > { %1313 = vst [vmem:[%s1499_s21 + $0x58] sm:$0xff] %v1256_v41  }
 0x1f5   : > { %v875_v42 = vpop.f32.mrf.mxu3 }
 0x1f6   : > { %v1291_v43 = vpack.c.bf16 %v875_v42, %v873_v37 }
 0x1f8   : > { %1320 = vst [vmem:[%s1499_s21 + $0x90] sm:$0xff] %v1291_v43  }
 0x1f9   : > { %v712_v44 = vpop.f32.mrf.mxu2 }
 0x1fd   : > { %v878_v45 = vpop.f32.mrf.mxu3 }
 0x201   : > { %v714_v46 = vpop.f32.mrf.mxu2 }
 0x202   : > { %v1261_v47 = vpack.c.bf16 %v714_v46, %v712_v44 }
 0x204   : > { %1314 = vst [vmem:[%s1499_s21 + $0x60] sm:$0xff] %v1261_v47  }
 0x205   : > { %v880_v48 = vpop.f32.mrf.mxu3 }
 0x206   : > { %v1296_v49 = vpack.c.bf16 %v880_v48, %v878_v45 }
 0x208   : > { %1321 = vst [vmem:[%s1499_s21 + $0x98] sm:$0xff] %v1296_v49  }
 0x209   : > { %v717_v50 = vpop.f32.mrf.mxu2 }
 0x20d   : > { %v883_v51 = vpop.f32.mrf.mxu3 }
 0x211   : > { %v719_v52 = vpop.f32.mrf.mxu2 }
 0x212   : > { %v1266_v53 = vpack.c.bf16 %v719_v52, %v717_v50 }
 0x214   : > { %1315 = vst [vmem:[%s1499_s21 + $0x68] sm:$0xff] %v1266_v53  }
 0x215   : > { %v885_v54 = vpop.f32.mrf.mxu3 }
 0x216   : > { %v1301_v55 = vpack.c.bf16 %v885_v54, %v883_v51 }
 0x218   : > { %1322 = vst [vmem:[%s1499_s21 + $0xa0] sm:$0xff] %v1301_v55  }
 0x219 PF: > { %s13_s12 = sadd.s32 1, %s1347_s12  }
 0x21a   : > { %p10_p4 = scmp.ge.s32.totalorder %s13_s12, 6  }
 0x21c   :  { %12 = sbr.rel (!%p10_p4) target bundleno = 1 (0x1), region = 62 }

// kernel: id_loss_forward.3
= control target key start
LH: loop header
LB: loop body
LE: loop exit
PB: predicated region body
PF: predicated region fallthrough
CT: control target
= control target key end

     0   :  { %12 = vsyncpa [#allocation3], 0  ;;  %s5624_s24 = smov 0   ;;  %s8303_s0 = inlined_call_operand.vmem [shape: bf16[4,336,128], index: 0, kind: input, shape index: {}, may-alias: {0,1}]   ;;  %s8304_s1 = inlined_call_operand.vmem [shape: bf16[4,336,128], index: 1, kind: input, shape index: {}, may-alias: {0,1}]   ;;  %s8305_s2 = inlined_call_operand.vmem [shape: bf16[128,512], index: 2, kind: input, shape index: {}]   ;;  %s8306_s3 = inlined_call_operand.vmem [shape: f32[1,512], index: 3, kind: input, shape index: {}]   ;;  %s8307_s4 = inlined_call_operand.vmem [shape: f32[1,512], index: 4, kind: input, shape index: {}]   ;;  %s8308_s5 = inlined_call_operand.vmem [shape: bf16[512,512], index: 5, kind: input, shape index: {}]   ;;  %s8309_s6 = inlined_call_operand.vmem [shape: f32[1,512], index: 6, kind: input, shape index: {}]   ;;  %s8310_s7 = inlined_call_operand.hbm [shape: f32[1,1], index: 7, kind: output, shape index: {}]  }
   0x1 LB: > { %s5630_s25 = sadd.s32 4294967295, %s5579_s24   ;;  %p4498_p0 = scmp.ge.s32.totalorder %s5579_s24, 1  ;;  %s5579_s24 = sphi %s5624_s24, %s18_s24  }
   0x2   : > { %p247_p1 = scmp.lt.s32.totalorder %s5579_s24, 3 }
   0x4   : > { %p248_p2 = pnand %p4498_p0, %p247_p1 }
   0x6   : > { %251 = sbr.rel (%p248_p2) target bundleno = 1597 (0x63d), region = 48 }
   0xb   : > { %p280_p3 = scmp.lt.s32.totalorder %s5630_s25, 3  ;;  %s285_s26 = sadd.s32 2, %s5630_s25 }
   0xc   : > { %p286_p4 = scmp.lt.s32.totalorder %s285_s26, 3  ;;  %p4501_p5 = scmp.ne.s32.totalorder %s5630_s25, 0 }
   0xd   : > { %s281_s27 = scalar_select %p280_p3, %s5630_s25, 3 }
   0xe   : > { %s8708_s26 = smov (!%p286_p4, %s285_s26), 3  ;;  %295 = sbr.rel (%p4501_p5) target bundleno = 21 (0x15), region = 52 }
   0xf   : > { %s5516_s28 = smul.u32 168, %s281_s27 }
  0x10   : > { %s5517_s29 = smul.u32 168, %s8708_s26 }
  0x11   : > { %s5640_s9 = scalar_lea.vmem %s8303_s0, %s5516_s28 }
  0x12   : > { %s5645_s12 = scalar_lea.vmem %s8304_s1, %s5517_s29 }
  0x13   : > { %vm296_vm0 = vcmask 0   ;;  %v5581_v0 = vmov 0.0  }
  0x14   : > { %297 = vst.msk [vmem:[#allocation2] sm:$0x1] %vm296_vm0, %v5581_v0 }
  0x15 PF: > { %v4700_v1 = vld [vmem:[%s8305_s2 + $0xe0] sm:$0xf]  ;;  %v5365_v2 = vld [vmem:[%s8305_s2 + $0xec] sm:$0xf0]  ;;  %v5363_v3 = vld [vmem:[%s8305_s2 + $0xe4] sm:$0xf] }
  0x16   : > { %v5657_v4 = vor.u32 %v5365_v2, %v4700_v1  ;;  %v4702_v5 = vld [vmem:[%s8305_s2 + $0xf0] sm:$0xf0]  ;;  %v4708_v6 = vld [vmem:[%s8305_s2 + $0xe8] sm:$0xf]  ;;  %v5366_v7 = vld [vmem:[%s8305_s2 + $0xf4] sm:$0xf0] }
  0x17   : > { %v5668_v8 = vor.u32 %v5363_v3, %v4702_v5  ;;  %v5670_v9 = vor.u32 %v5366_v7, %v4708_v6  ;;  %v5364_v10 = vld [vmem:[%s8305_s2 + $0xec] sm:$0xf]  ;;  %v4710_v11 = vld [vmem:[%s8305_s2 + $0xf8] sm:$0xf0]  ;;  %v4684_v12 = vld [vmem:[%s8305_s2 + $0xc0] sm:$0xf] }
  0x18   : > { %668 = vmatpush.bf16.msra.mxu0 %v5657_v4  ;;  %v5682_v13 = vor.u32 %v5364_v10, %v4710_v11  ;;  %v5361_v14 = vld [vmem:[%s8305_s2 + $0xcc] sm:$0xf0]  ;;  %v5359_v15 = vld [vmem:[%s8305_s2 + $0xc4] sm:$0xf]  ;;  %v4686_v16 = vld [vmem:[%s8305_s2 + $0xd0] sm:$0xf0] }
  0x19   : > { %782 = vmatpush.bf16.msra.mxu1 %v5668_v8  ;;  %896 = vmatpush.bf16.msra.mxu2 %v5670_v9  ;;  %v5695_v17 = vor.u32 %v5361_v14, %v4684_v12  ;;  %v5697_v18 = vor.u32 %v5359_v15, %v4686_v16  ;;  %v4692_v19 = vld [vmem:[%s8305_s2 + $0xc8] sm:$0xf]  ;;  %v5362_v20 = vld [vmem:[%s8305_s2 + $0xd4] sm:$0xf0]  ;;  %v5360_v21 = vld [vmem:[%s8305_s2 + $0xcc] sm:$0xf] }
  0x1a   : > { %1010 = vmatpush.bf16.msra.mxu3 %v5682_v13  ;;  %v5709_v22 = vor.u32 %v5362_v20, %v4692_v19  ;;  %v4694_v23 = vld [vmem:[%s8305_s2 + $0xd8] sm:$0xf0]  ;;  %v4668_v24 = vld [vmem:[%s8305_s2 + $0xa0] sm:$0xf]  ;;  %v5357_v25 = vld [vmem:[%s8305_s2 + $0xac] sm:$0xf0] }
  0x1b   : > { %v5720_v26 = vor.u32 %v5360_v21, %v4694_v23  ;;  %v5355_v27 = vld [vmem:[%s8305_s2 + $0xa4] sm:$0xf]  ;;  %v4670_v28 = vld [vmem:[%s8305_s2 + $0xb0] sm:$0xf0]  ;;  %v4676_v29 = vld [vmem:[%s8305_s2 + $0xa8] sm:$0xf]  ;;  %v5732_v30 = vor.u32 %v5357_v25, %v4668_v24 }
  0x1c   : > { %669 = vmatpush.bf16.msra.mxu0 %v5695_v17  ;;  %v5358_v31 = vld [vmem:[%s8305_s2 + $0xb4] sm:$0xf0]  ;;  %v5356_v32 = vld [vmem:[%s8305_s2 + $0xac] sm:$0xf]  ;;  %v4678_v33 = vld [vmem:[%s8305_s2 + $0xb8] sm:$0xf0]  ;;  %v5745_v34 = vor.u32 %v5355_v27, %v4670_v28 }
  0x1d   : > { %783 = vmatpush.bf16.msra.mxu1 %v5697_v18  ;;  %897 = vmatpush.bf16.msra.mxu2 %v5709_v22  ;;  %v5747_v35 = vor.u32 %v5358_v31, %v4676_v29  ;;  %v4652_v36 = vld [vmem:[%s8305_s2 + $0x80] sm:$0xf]  ;;  %v5353_v37 = vld [vmem:[%s8305_s2 + $0x8c] sm:$0xf0]  ;;  %v5351_v38 = vld [vmem:[%s8305_s2 + $0x84] sm:$0xf]  ;;  %v5759_v39 = vor.u32 %v5356_v32, %v4678_v33 }
  0x1e   : > { %1011 = vmatpush.bf16.msra.mxu3 %v5720_v26  ;;  %v4654_v40 = vld [vmem:[%s8305_s2 + $0x90] sm:$0xf0]  ;;  %v4660_v41 = vld [vmem:[%s8305_s2 + $0x88] sm:$0xf]  ;;  %v5354_v42 = vld [vmem:[%s8305_s2 + $0x94] sm:$0xf0]  ;;  %v5777_v45 = vor.u32 %v5353_v37, %v4652_v36 }
  0x1f   : > { %v5352_v43 = vld [vmem:[%s8305_s2 + $0x8c] sm:$0xf]  ;;  %v4662_v44 = vld [vmem:[%s8305_s2 + $0x98] sm:$0xf0]  ;;  %v5781_v46 = vor.u32 %v5351_v38, %v4654_v40  ;;  %v5783_v47 = vor.u32 %v5354_v42, %v4660_v41  ;;  %v4636_v48 = vld [vmem:[%s8305_s2 + $0x60] sm:$0xf] }
  0x20   : > { %670 = vmatpush.bf16.msra.mxu0 %v5732_v30  ;;  %v5349_v49 = vld [vmem:[%s8305_s2 + $0x6c] sm:$0xf0]  ;;  %v5347_v50 = vld [vmem:[%s8305_s2 + $0x64] sm:$0xf]  ;;  %v5795_v51 = vor.u32 %v5352_v43, %v4662_v44  ;;  %v4638_v52 = vld [vmem:[%s8305_s2 + $0x70] sm:$0xf0] }
  0x21   : > { %784 = vmatpush.bf16.msra.mxu1 %v5745_v34  ;;  %898 = vmatpush.bf16.msra.mxu2 %v5747_v35  ;;  %v4644_v53 = vld [vmem:[%s8305_s2 + $0x68] sm:$0xf]  ;;  %v5350_v54 = vld [vmem:[%s8305_s2 + $0x74] sm:$0xf0]  ;;  %v5348_v55 = vld [vmem:[%s8305_s2 + $0x6c] sm:$0xf]  ;;  %v5813_v57 = vor.u32 %v5349_v49, %v4636_v48  ;;  %v5817_v58 = vor.u32 %v5347_v50, %v4638_v52 }
  0x22   : > { %1012 = vmatpush.bf16.msra.mxu3 %v5759_v39  ;;  %v4646_v56 = vld [vmem:[%s8305_s2 + $0x78] sm:$0xf0]  ;;  %v5819_v59 = vor.u32 %v5350_v54, %v4644_v53  ;;  %v4620_v60 = vld [vmem:[%s8305_s2 + $0x40] sm:$0xf]  ;;  %v5345_v61 = vld [vmem:[%s8305_s2 + $0x4c] sm:$0xf0] }
  0x23   : > { %v5343_v62 = vld [vmem:[%s8305_s2 + $0x44] sm:$0xf]  ;;  %v5831_v63 = vor.u32 %v5348_v55, %v4646_v56  ;;  %v4622_v0 = vld [vmem:[%s8305_s2 + $0x50] sm:$0xf0]  ;;  %v4628_v1 = vld [vmem:[%s8305_s2 + $0x48] sm:$0xf]  ;;  %v5849_v6 = vor.u32 %v5345_v61, %v4620_v60 }
  0x24   : > { %671 = vmatpush.bf16.msra.mxu0 %v5777_v45  ;;  %8447 = vst [vmem:[#allocation5_spill] sm:$0xff] %v5819_v59  ;;  %v5346_v2 = vld [vmem:[%s8305_s2 + $0x54] sm:$0xf0]  ;;  %v5344_v3 = vld [vmem:[%s8305_s2 + $0x4c] sm:$0xf]  ;;  %v5856_v10 = vor.u32 %v5343_v62, %v4622_v0  ;;  %v5314_v48 = vld [vmem:[%s5640_s9] sm:$0xff] }
  0x25   : > { %785 = vmatpush.bf16.msra.mxu1 %v5781_v46  ;;  %899 = vmatpush.bf16.msra.mxu2 %v5783_v47  ;;  %8448 = vst [vmem:[#allocation6_spill] sm:$0xff] %v5831_v63  ;;  %v4630_v5 = vld [vmem:[%s8305_s2 + $0x58] sm:$0xf0]  ;;  %v4604_v7 = vld [vmem:[%s8305_s2 + $0x20] sm:$0xf]  ;;  %v5858_v11 = vor.u32 %v5346_v2, %v4628_v1  ;;  %v5315_v49 = vld [vmem:[%s5640_s9 + $0x8] sm:$0xff] }
  0x26   : > { %1013 = vmatpush.bf16.msra.mxu3 %v5795_v51  ;;  %v5341_v12 = vld [vmem:[%s8305_s2 + $0x2c] sm:$0xf0]  ;;  %v5339_v14 = vld [vmem:[%s8305_s2 + $0x24] sm:$0xf]  ;;  %v4606_v15 = vld [vmem:[%s8305_s2 + $0x30] sm:$0xf0]  ;;  %v5870_v16 = vor.u32 %v5344_v3, %v4630_v5 }
  0x27   : > { %8449 = vst [vmem:[#allocation7_spill] sm:$0xff] %v5858_v11  ;;  %v4612_v19 = vld [vmem:[%s8305_s2 + $0x28] sm:$0xf]  ;;  %v5342_v20 = vld [vmem:[%s8305_s2 + $0x34] sm:$0xf0]  ;;  %v5885_v24 = vor.u32 %v5341_v12, %v4604_v7  ;;  %v5889_v25 = vor.u32 %v5339_v14, %v4606_v15  ;;  %v5316_v50 = vld [vmem:[%s5640_s9 + $0x10] sm:$0xff] }
  0x28   : > { %672 = vmatpush.bf16.msra.mxu0 %v5813_v57  ;;  %8450 = vst [vmem:[#allocation8_spill] sm:$0xff] %v5870_v16  ;;  %v5340_v21 = vld [vmem:[%s8305_s2 + $0x2c] sm:$0xf]  ;;  %v4614_v23 = vld [vmem:[%s8305_s2 + $0x38] sm:$0xf0]  ;;  %v5891_v27 = vor.u32 %v5342_v20, %v4612_v19  ;;  %v5318_v53 = vld [vmem:[%s5640_s9 + $0x20] sm:$0xff] }
  0x29   : > { %786 = vmatpush.bf16.msra.mxu1 %v5817_v58  ;;  %900 = vmatpush.bf16.msra.mxu2 %v5819_v59  ;;  %8451 = vst [vmem:[#allocation9_spill] sm:$0xff] %v5885_v24  ;;  %v4588_v28 = vld [vmem:[%s8305_s2] sm:$0xf]  ;;  %v5337_v29 = vld [vmem:[%s8305_s2 + $0xc] sm:$0xf0]  ;;  %v5903_v32 = vor.u32 %v5340_v21, %v4614_v23  ;;  %v5317_v52 = vld [vmem:[%s5640_s9 + $0x18] sm:$0xff] }
  0x2a   : > { %1014 = vmatpush.bf16.msra.mxu3 %v5831_v63  ;;  %8452 = vst [vmem:[#allocation10_spill] sm:$0xff] %v5889_v25  ;;  %v5335_v31 = vld [vmem:[%s8305_s2 + $0x4] sm:$0xf]  ;;  %v4590_v33 = vld [vmem:[%s8305_s2 + $0x10] sm:$0xf0]  ;;  %v5921_v41 = vor.u32 %v5337_v29, %v4588_v28  ;;  %v5319_v54 = vld [vmem:[%s5640_s9 + $0x28] sm:$0xff] }
  0x2b   : > { %8453 = vst [vmem:[#allocation11_spill] sm:$0xff] %v5891_v27  ;;  %v4596_v36 = vld [vmem:[%s8305_s2 + $0x8] sm:$0xf]  ;;  %v5338_v37 = vld [vmem:[%s8305_s2 + $0x14] sm:$0xf0]  ;;  %v5925_v42 = vor.u32 %v5335_v31, %v4590_v33  ;;  %v5320_v55 = vld [vmem:[%s5640_s9 + $0x30] sm:$0xff] }
  0x2c   : > { %673 = vmatpush.bf16.msra.mxu0 %v5849_v6  ;;  %8454 = vst [vmem:[#allocation12_spill] sm:$0xff] %v5903_v32  ;;  %v5336_v38 = vld [vmem:[%s8305_s2 + $0xc] sm:$0xf]  ;;  %v4598_v40 = vld [vmem:[%s8305_s2 + $0x18] sm:$0xf0]  ;;  %v5927_v43 = vor.u32 %v5338_v37, %v4596_v36  ;;  %v5322_v62 = vld [vmem:[%s5640_s9 + $0x40] sm:$0xff] }
  0x2d   : > { %787 = vmatpush.bf16.msra.mxu1 %v5856_v10  ;;  %901 = vmatpush.bf16.msra.mxu2 %v5858_v11  ;;  %8455 = vst [vmem:[#allocation13_spill] sm:$0xff] %v5921_v41  ;;  %v5930_v44 = vor.u32 %v5336_v38, %v4598_v40  ;;  %v5321_v56 = vld [vmem:[%s5640_s9 + $0x38] sm:$0xff]  ;;  %v372_v60 = vld [vmem:[%s8306_s3] sm:$0xf]  ;;  %s4443_s11 = sshll.u32 %s8310_s7, 4  ;;  %p5522_p6 = scmp.eq.s32.totalorder %s5630_s25, 1  ;;  %s4444_s11 = int_to_ptr.hbm [resolvable:$true] %s4443_s11 }
  0x2e   : > { %1015 = vmatpush.bf16.msra.mxu3 %v5870_v16  ;;  %8456 = vst [vmem:[#allocation14_spill] sm:$0xff] %v5925_v42  ;;  %v5947_v61 = vperm.slane %v372_v60, 0  ;;  %v5950_v1 = vperm.slane %v372_v60, 1  ;;  %v1292_v3 = vld [vmem:[%s8307_s4] sm:$0xf]  ;;  %v5963_v21 = vperm.slane %v372_v60, 2 }
  0x2f   : > { %8457 = vst [vmem:[#allocation15_spill] sm:$0xff] %v5927_v43  ;;  %v5956_v7 = vperm.slane %v1292_v3, 0  ;;  %v5959_v14 = vperm.slane %v1292_v3, 1  ;;  %v5965_v29 = vperm.slane %v372_v60, 3  ;;  %v5969_v38 = vperm.slane %v1292_v3, 2 }
  0x30   : > { %674 = vmatpush.bf16.msra.mxu0 %v5885_v24  ;;  %8458 = vst [vmem:[#allocation16_spill] sm:$0xff] %v5930_v44 }
  0x31   : > { %788 = vmatpush.bf16.msra.mxu1 %v5889_v25  ;;  %902 = vmatpush.bf16.msra.mxu2 %v5891_v27  ;;  %8459 = vst [vmem:[#allocation17_spill] sm:$0xff] %v5950_v1 }
  0x32   : > { %1016 = vmatpush.bf16.msra.mxu3 %v5903_v32  ;;  %8460 = vst [vmem:[#allocation18_spill] sm:$0xff] %v5956_v7 }
  0x33   : > { %8461 = vst [vmem:[#allocation19_spill] sm:$0xff] %v5959_v14 }
  0x34   : > { %675 = vmatpush.bf16.msra.mxu0 %v5921_v41 }
  0x35   : > { %789 = vmatpush.bf16.msra.mxu1 %v5925_v42  ;;  %903 = vmatpush.bf16.msra.mxu2 %v5927_v43 }
  0x36   : > { %1017 = vmatpush.bf16.msra.mxu3 %v5930_v44 }
  0x37   : > { %676 = vmatmul.bf16.vlgmr.msra.gmra.mxu0 %v5314_v48 }
  0x38   : > { %790 = vmatmul.bf16.vlgmr.msra.gmra.mxu1 %v5314_v48  ;;  %904 = vmatmul.bf16.vlgmr.msra.gmra.mxu2 %v5314_v48 }
  0x39   : > { %1018 = vmatmul.bf16.vlgmr.msra.gmra.mxu3 %v5314_v48 }
  0x47   : > { %681 = vmatmul.bf16.gmra.mxu0 %v5315_v49 }
  0x48   : > { %795 = vmatmul.bf16.gmra.mxu1 %v5315_v49  ;;  %909 = vmatmul.bf16.gmra.mxu2 %v5315_v49 }
  0x49   : > { %1023 = vmatmul.bf16.gmra.mxu3 %v5315_v49 }
  0x57   : > { %686 = vmatmul.bf16.gmra.mxu0 %v5316_v50 }
  0x58   : > { %800 = vmatmul.bf16.gmra.mxu1 %v5316_v50  ;;  %914 = vmatmul.bf16.gmra.mxu2 %v5316_v50 }
  0x59   : > { %1028 = vmatmul.bf16.gmra.mxu3 %v5316_v50 }
  0x67   : > { %691 = vmatmul.bf16.gmra.mxu0 %v5317_v52 }
  0x68   : > { %805 = vmatmul.bf16.gmra.mxu1 %v5317_v52  ;;  %919 = vmatmul.bf16.gmra.mxu2 %v5317_v52 }
  0x69   : > { %1033 = vmatmul.bf16.gmra.mxu3 %v5317_v52 }
  0x77   : > { %696 = vmatmul.bf16.gmra.mxu0 %v5318_v53 }
  0x78   : > { %810 = vmatmul.bf16.gmra.mxu1 %v5318_v53  ;;  %924 = vmatmul.bf16.gmra.mxu2 %v5318_v53 }
  0x79   : > { %1038 = vmatmul.bf16.gmra.mxu3 %v5318_v53  ;;  %v5975_v53 = vperm.slane %v1292_v3, 3 }
  0x87   : > { %701 = vmatmul.bf16.gmra.mxu0 %v5319_v54 }
  0x88   : > { %815 = vmatmul.bf16.gmra.mxu1 %v5319_v54  ;;  %929 = vmatmul.bf16.gmra.mxu2 %v5319_v54 }
  0x89   : > { %1043 = vmatmul.bf16.gmra.mxu3 %v5319_v54 }
  0x97   : > { %706 = vmatmul.bf16.gmra.mxu0 %v5320_v55 }
  0x98   : > { %820 = vmatmul.bf16.gmra.mxu1 %v5320_v55  ;;  %934 = vmatmul.bf16.gmra.mxu2 %v5320_v55 }
  0x99   : > { %1048 = vmatmul.bf16.gmra.mxu3 %v5320_v55 }
  0xa7   : > { %711 = vmatmul.bf16.gmra.mxu0 %v5321_v56 }
  0xa8   : > { %825 = vmatmul.bf16.gmra.mxu1 %v5321_v56  ;;  %939 = vmatmul.bf16.gmra.mxu2 %v5321_v56 }
  0xa9   : > { %1053 = vmatmul.bf16.gmra.mxu3 %v5321_v56 }
  0xb4   : > { %v677_v0 = vpop.f32.mrf.mxu0 }
  0xb5   : > { %v791_v2 = vpop.f32.mrf.mxu1  ;;  %v678_v5 = vadd.f32 %v677_v0, %v5947_v61  ;;  %v5323_v0 = vld [vmem:[%s5640_s9 + $0x48] sm:$0xff] }
  0xb6   : > { %v792_v12 = vadd.f32 %v791_v2, %v5950_v1 }
  0xb7   : > { %716 = vmatmul.bf16.gmra.mxu0 %v5322_v62  ;;  %v1302_v15 = vmul.f32 %v5956_v7, %v678_v5  ;;  %vm1124_vm1 = vcmp.gt.f32.partialorder %v678_v5, 0.0 }
  0xb8   : > { %830 = vmatmul.bf16.gmra.mxu1 %v5322_v62  ;;  %944 = vmatmul.bf16.gmra.mxu2 %v5322_v62  ;;  %v1303_v20 = vmul.f32 %v5959_v14, %v792_v12  ;;  %vm1125_vm2 = vcmp.gt.f32.partialorder %v792_v12, 0.0 }
  0xb9   : > { %1058 = vmatmul.bf16.gmra.mxu3 %v5322_v62  ;;  %v1470_v37 = vsel %vm1124_vm1, %v678_v5, %v1302_v15 }
  0xba   : > { %v1471_v48 = vsel %vm1125_vm2, %v792_v12, %v1303_v20 }
  0xbb   : > { %v905_v19 = vpop.f32.mrf.mxu2 }
  0xbc   : > { %v1019_v23 = vpop.f32.mrf.mxu3  ;;  %v679_v28 = vpop.f32.mrf.mxu0  ;;  %v906_v49 = vadd.f32 %v905_v19, %v5963_v21 }
  0xbd   : > { %v680_v31 = vadd.f32 %v679_v28, %v5947_v61  ;;  %v793_v33 = vpop.f32.mrf.mxu1  ;;  %v1020_v52 = vadd.f32 %v1019_v23, %v5965_v29 }
  0xbe   : > { %v794_v36 = vadd.f32 %v793_v33, %v5950_v1  ;;  %v1304_v2 = vmul.f32 %v5969_v38, %v906_v49  ;;  %vm1126_vm5 = vcmp.gt.f32.partialorder %v906_v49, 0.0 }
  0xbf   : > { %vm1128_vm3 = vcmp.gt.f32.partialorder %v680_v31, 0.0  ;;  %v1306_v40 = vmul.f32 %v5956_v7, %v680_v31  ;;  %v1305_v19 = vmul.f32 %v5975_v53, %v1020_v52  ;;  %vm1127_vm6 = vcmp.gt.f32.partialorder %v1020_v52, 0.0 }
  0xc0   : > { %vm1129_vm4 = vcmp.gt.f32.partialorder %v794_v36, 0.0  ;;  %v1307_v50 = vmul.f32 %v5959_v14, %v794_v36 }
  0xc1   : > { %v1474_v54 = vsel %vm1128_vm3, %v680_v31, %v1306_v40 }
  0xc2   : > { %v1638_v55 = vadd.f32 %v1474_v54, %v1470_v37  ;;  %v1475_v56 = vsel %vm1129_vm4, %v794_v36, %v1307_v50  ;;  %v1472_v37 = vsel %vm1126_vm5, %v906_v49, %v1304_v2  ;;  %v1473_v50 = vsel %vm1127_vm6, %v1020_v52, %v1305_v19 }
  0xc3   : > { %v1685_v60 = vadd.f32 %v1475_v56, %v1471_v48  ;;  %v907_v62 = vpop.f32.mrf.mxu2 }
  0xc4   : > { %v908_v5 = vadd.f32 %v907_v62, %v5963_v21  ;;  %v1021_v12 = vpop.f32.mrf.mxu3  ;;  %v682_v15 = vpop.f32.mrf.mxu0 }
  0xc5   : > { %v1022_v20 = vadd.f32 %v1021_v12, %v5965_v29  ;;  %v683_v3 = vadd.f32 %v682_v15, %v5947_v61  ;;  %v796_v23 = vpop.f32.mrf.mxu1 }
  0xc6   : > { %vm1130_vm7 = vcmp.gt.f32.partialorder %v908_v5, 0.0  ;;  %v1308_v28 = vmul.f32 %v5969_v38, %v908_v5  ;;  %v797_v31 = vadd.f32 %v796_v23, %v5950_v1 }
  0xc7   : > { %vm1131_vm8 = vcmp.gt.f32.partialorder %v1022_v20, 0.0  ;;  %v1309_v33 = vmul.f32 %v5975_v53, %v1022_v20  ;;  %vm1132_vm9 = vcmp.gt.f32.partialorder %v683_v3, 0.0  ;;  %v1310_v36 = vmul.f32 %v5956_v7, %v683_v3  ;;  %721 = vmatmul.bf16.gmra.mxu0 %v5323_v0 }
  0xc8   : > { %v1476_v40 = vsel %vm1130_vm7, %v908_v5, %v1308_v28  ;;  %vm1133_vm10 = vcmp.gt.f32.partialorder %v797_v31, 0.0  ;;  %v1311_v48 = vmul.f32 %v5959_v14, %v797_v31  ;;  %835 = vmatmul.bf16.gmra.mxu1 %v5323_v0  ;;  %949 = vmatmul.bf16.gmra.mxu2 %v5323_v0 }
  0xc9   : > { %v1732_v54 = vadd.f32 %v1476_v40, %v1472_v37  ;;  %v1477_v56 = vsel %vm1131_vm8, %v1022_v20, %v1309_v33  ;;  %v1478_v62 = vsel %vm1132_vm9, %v683_v3, %v1310_v36  ;;  %1063 = vmatmul.bf16.gmra.mxu3 %v5323_v0  ;;  %v5324_v37 = vld [vmem:[%s5640_s9 + $0x50] sm:$0xff] }
  0xca   : > { %v1779_v12 = vadd.f32 %v1477_v56, %v1473_v50  ;;  %v1639_v15 = vadd.f32 %v1638_v55, %v1478_v62  ;;  %v1479_v23 = vsel %vm1133_vm10, %v797_v31, %v1311_v48  ;;  %v5084_v50 = vld [vmem:[%s8308_s5 + $0x2e0] sm:$0xf] }
  0xcb   : > { %v1686_v44 = vadd.f32 %v1685_v60, %v1479_v23  ;;  %v910_v43 = vpop.f32.mrf.mxu2 }
  0xcc   : > { %v911_v32 = vadd.f32 %v910_v43, %v5963_v21  ;;  %v1024_v27 = vpop.f32.mrf.mxu3  ;;  %v684_v49 = vpop.f32.mrf.mxu0 }
  0xcd   : > { %v1025_v2 = vadd.f32 %v1024_v27, %v5965_v29  ;;  %v685_v5 = vadd.f32 %v684_v49, %v5947_v61  ;;  %v798_v28 = vpop.f32.mrf.mxu1 }
  0xce   : > { %vm1134_vm11 = vcmp.gt.f32.partialorder %v911_v32, 0.0  ;;  %v1312_v52 = vmul.f32 %v5969_v38, %v911_v32  ;;  %v799_v0 = vadd.f32 %v798_v28, %v5950_v1 }
  0xcf   : > { %vm1135_vm12 = vcmp.gt.f32.partialorder %v1025_v2, 0.0  ;;  %v1313_v55 = vmul.f32 %v5975_v53, %v1025_v2  ;;  %vm1136_vm13 = vcmp.gt.f32.partialorder %v685_v5, 0.0  ;;  %v1314_v60 = vmul.f32 %v5956_v7, %v685_v5 }
  0xd0   : > { %v1480_v43 = vsel %vm1134_vm11, %v911_v32, %v1312_v52  ;;  %vm1137_vm14 = vcmp.gt.f32.partialorder %v799_v0, 0.0  ;;  %v1315_v19 = vmul.f32 %v5959_v14, %v799_v0  ;;  %v5461_v32 = vld [vmem:[%s8308_s5 + $0x2ec] sm:$0xf0] }
  0xd1   : > { %v1733_v27 = vadd.f32 %v1732_v54, %v1480_v43  ;;  %v1481_v20 = vsel %vm1135_vm12, %v1025_v2, %v1313_v55  ;;  %v1482_v3 = vsel %vm1136_vm13, %v685_v5, %v1314_v60  ;;  %v5212_v54 = vld [vmem:[%s8308_s5 + $0x3e0] sm:$0xf] }
  0xd2   : > { %v1780_v31 = vadd.f32 %v1779_v12, %v1481_v20  ;;  %v1640_v33 = vadd.f32 %v1639_v15, %v1482_v3  ;;  %v1483_v36 = vsel %vm1137_vm14, %v799_v0, %v1315_v19  ;;  %v6007_v15 = vor.u32 %v5461_v32, %v5084_v50 }
  0xd3   : > { %v1687_v40 = vadd.f32 %v1686_v44, %v1483_v36  ;;  %v912_v48 = vpop.f32.mrf.mxu2  ;;  %v5493_v44 = vld [vmem:[%s8308_s5 + $0x3ec] sm:$0xf0] }
  0xd4   : > { %v913_v56 = vadd.f32 %v912_v48, %v5963_v21  ;;  %v1026_v62 = vpop.f32.mrf.mxu3  ;;  %v687_v12 = vpop.f32.mrf.mxu0  ;;  %8462 = vst [vmem:[#allocation20_spill] sm:$0xff] %v6007_v15  ;;  %v6014_v5 = vor.u32 %v5493_v44, %v5212_v54  ;;  %2645 = vmatpush.bf16.msrb.mxu2 %v6007_v15 }
  0xd5   : > { %v1027_v23 = vadd.f32 %v1026_v62, %v5965_v29  ;;  %v688_v49 = vadd.f32 %v687_v12, %v5947_v61  ;;  %v801_v2 = vpop.f32.mrf.mxu1  ;;  %v4828_v62 = vld [vmem:[%s8308_s5 + $0xe0] sm:$0xf] }
  0xd6   : > { %8463 = vst [vmem:[#allocation21_spill] sm:$0xff] %v6014_v5  ;;  %vm1138_vm15 = vcmp.gt.f32.partialorder %v913_v56, 0.0  ;;  %v1316_v28 = vmul.f32 %v5969_v38, %v913_v56  ;;  %v802_v52 = vadd.f32 %v801_v2, %v5950_v1  ;;  %2658 = vmatpush.bf16.msrb.mxu3 %v6014_v5 }
  0xd7   : > { %vm1139_vm0 = vcmp.gt.f32.partialorder %v1027_v23, 0.0  ;;  %v1317_v0 = vmul.f32 %v5975_v53, %v1027_v23  ;;  %vm1140_vm1 = vcmp.gt.f32.partialorder %v688_v49, 0.0  ;;  %v1318_v55 = vmul.f32 %v5956_v7, %v688_v49  ;;  %726 = vmatmul.bf16.gmra.mxu0 %v5324_v37 }
  0xd8   : > { %v1484_v60 = vsel %vm1138_vm15, %v913_v56, %v1316_v28  ;;  %vm1141_vm2 = vcmp.gt.f32.partialorder %v802_v52, 0.0  ;;  %v1319_v43 = vmul.f32 %v5959_v14, %v802_v52  ;;  %840 = vmatmul.bf16.gmra.mxu1 %v5324_v37  ;;  %954 = vmatmul.bf16.gmra.mxu2 %v5324_v37  ;;  %v5397_v56 = vld [vmem:[%s8308_s5 + $0xec] sm:$0xf0] }
  0xd9   : > { %v1734_v19 = vadd.f32 %v1733_v27, %v1484_v60  ;;  %v1485_v20 = vsel %vm1139_vm0, %v1027_v23, %v1317_v0  ;;  %v1486_v3 = vsel %vm1140_vm1, %v688_v49, %v1318_v55  ;;  %1068 = vmatmul.bf16.gmra.mxu3 %v5324_v37  ;;  %v4956_v27 = vld [vmem:[%s8308_s5 + $0x1e0] sm:$0xf] }
  0xda   : > { %v1781_v36 = vadd.f32 %v1780_v31, %v1485_v20  ;;  %v1641_v48 = vadd.f32 %v1640_v33, %v1486_v3  ;;  %v1487_v50 = vsel %vm1141_vm2, %v802_v52, %v1319_v43  ;;  %v6033_v33 = vor.u32 %v5397_v56, %v4828_v62 }
  0xdb   : > { %v1688_v32 = vadd.f32 %v1687_v40, %v1487_v50  ;;  %v915_v54 = vpop.f32.mrf.mxu2  ;;  %v5429_v40 = vld [vmem:[%s8308_s5 + $0x1ec] sm:$0xf0] }
  0xdc   : > { %v916_v12 = vadd.f32 %v915_v54, %v5963_v21  ;;  %v1029_v37 = vpop.f32.mrf.mxu3  ;;  %v689_v31 = vpop.f32.mrf.mxu0  ;;  %8464 = vst [vmem:[#allocation22_spill] sm:$0xff] %v6033_v33  ;;  %v6040_v2 = vor.u32 %v5429_v40, %v4956_v27  ;;  %2619 = vmatpush.bf16.msrb.mxu0 %v6033_v33 }
  0xdd   : > { %v1030_v44 = vadd.f32 %v1029_v37, %v5965_v29  ;;  %v690_v23 = vadd.f32 %v689_v31, %v5947_v61  ;;  %v803_v49 = vpop.f32.mrf.mxu1  ;;  %v5325_v31 = vld [vmem:[%s5640_s9 + $0x58] sm:$0xff] }
  0xde   : > { %8465 = vst [vmem:[#allocation23_spill] sm:$0xff] %v6040_v2  ;;  %vm1142_vm3 = vcmp.gt.f32.partialorder %v916_v12, 0.0  ;;  %v1320_v28 = vmul.f32 %v5969_v38, %v916_v12  ;;  %v804_v52 = vadd.f32 %v803_v49, %v5950_v1  ;;  %2632 = vmatpush.bf16.msrb.mxu1 %v6040_v2 }
  0xdf   : > { %vm1143_vm4 = vcmp.gt.f32.partialorder %v1030_v44, 0.0  ;;  %v1321_v0 = vmul.f32 %v5975_v53, %v1030_v44  ;;  %vm1144_vm5 = vcmp.gt.f32.partialorder %v690_v23, 0.0  ;;  %v1322_v55 = vmul.f32 %v5956_v7, %v690_v23 }
  0xe0   : > { %v1488_v60 = vsel %vm1142_vm3, %v916_v12, %v1320_v28  ;;  %vm1145_vm6 = vcmp.gt.f32.partialorder %v804_v52, 0.0  ;;  %v1323_v43 = vmul.f32 %v5959_v14, %v804_v52 }
  0xe1   : > { %v1735_v20 = vadd.f32 %v1734_v19, %v1488_v60  ;;  %v1489_v3 = vsel %vm1143_vm4, %v1030_v44, %v1321_v0  ;;  %v1490_v50 = vsel %vm1144_vm5, %v690_v23, %v1322_v55 }
  0xe2   : > { %v1782_v54 = vadd.f32 %v1781_v36, %v1489_v3  ;;  %v1642_v62 = vadd.f32 %v1641_v48, %v1490_v50  ;;  %v1491_v56 = vsel %vm1145_vm6, %v804_v52, %v1323_v43 }
  0xe3   : > { %v1689_v27 = vadd.f32 %v1688_v32, %v1491_v56  ;;  %v917_v37 = vpop.f32.mrf.mxu2 }
  0xe4   : > { %v918_v40 = vadd.f32 %v917_v37, %v5963_v21  ;;  %v1031_v49 = vpop.f32.mrf.mxu3  ;;  %v692_v5 = vpop.f32.mrf.mxu0 }
  0xe5   : > { %v1032_v15 = vadd.f32 %v1031_v49, %v5965_v29  ;;  %v693_v12 = vadd.f32 %v692_v5, %v5947_v61  ;;  %v806_v28 = vpop.f32.mrf.mxu1 }
  0xe6   : > { %vm1146_vm7 = vcmp.gt.f32.partialorder %v918_v40, 0.0  ;;  %v1324_v19 = vmul.f32 %v5969_v38, %v918_v40  ;;  %v807_v44 = vadd.f32 %v806_v28, %v5950_v1 }
  0xe7   : > { %vm1147_vm8 = vcmp.gt.f32.partialorder %v1032_v15, 0.0  ;;  %v1325_v36 = vmul.f32 %v5975_v53, %v1032_v15  ;;  %vm1148_vm9 = vcmp.gt.f32.partialorder %v693_v12, 0.0  ;;  %v1326_v48 = vmul.f32 %v5956_v7, %v693_v12  ;;  %731 = vmatmul.bf16.gmra.mxu0 %v5325_v31 }
  0xe8   : > { %v1492_v32 = vsel %vm1146_vm7, %v918_v40, %v1324_v19  ;;  %vm1149_vm10 = vcmp.gt.f32.partialorder %v807_v44, 0.0  ;;  %v1327_v23 = vmul.f32 %v5959_v14, %v807_v44  ;;  %845 = vmatmul.bf16.gmra.mxu1 %v5325_v31  ;;  %959 = vmatmul.bf16.gmra.mxu2 %v5325_v31 }
  0xe9   : > { %v1736_v5 = vadd.f32 %v1735_v20, %v1492_v32  ;;  %v1493_v52 = vsel %vm1147_vm8, %v1032_v15, %v1325_v36  ;;  %v1494_v0 = vsel %vm1148_vm9, %v693_v12, %v1326_v48  ;;  %1073 = vmatmul.bf16.gmra.mxu3 %v5325_v31 }
  0xea   : > { %v1783_v55 = vadd.f32 %v1782_v54, %v1493_v52  ;;  %v1643_v60 = vadd.f32 %v1642_v62, %v1494_v0  ;;  %v1495_v43 = vsel %vm1149_vm10, %v807_v44, %v1327_v23 }
  0xeb   : > { %v1690_v3 = vadd.f32 %v1689_v27, %v1495_v43  ;;  %v920_v50 = vpop.f32.mrf.mxu2  ;;  %v5326_v43 = vld [vmem:[%s5640_s9 + $0x60] sm:$0xff] }
  0xec   : > { %v921_v56 = vadd.f32 %v920_v50, %v5963_v21  ;;  %v1034_v37 = vpop.f32.mrf.mxu3  ;;  %v694_v49 = vpop.f32.mrf.mxu0 }
  0xed   : > { %v1035_v40 = vadd.f32 %v1034_v37, %v5965_v29  ;;  %v695_v28 = vadd.f32 %v694_v49, %v5947_v61  ;;  %v808_v19 = vpop.f32.mrf.mxu1 }
  0xee   : > { %vm1150_vm11 = vcmp.gt.f32.partialorder %v921_v56, 0.0  ;;  %v1328_v20 = vmul.f32 %v5969_v38, %v921_v56  ;;  %v809_v15 = vadd.f32 %v808_v19, %v5950_v1 }
  0xef   : > { %vm1151_vm12 = vcmp.gt.f32.partialorder %v1035_v40, 0.0  ;;  %v1329_v54 = vmul.f32 %v5975_v53, %v1035_v40  ;;  %vm1152_vm13 = vcmp.gt.f32.partialorder %v695_v28, 0.0  ;;  %v1330_v62 = vmul.f32 %v5956_v7, %v695_v28 }
  0xf0   : > { %v1496_v27 = vsel %vm1150_vm11, %v921_v56, %v1328_v20  ;;  %vm1153_vm14 = vcmp.gt.f32.partialorder %v809_v15, 0.0  ;;  %v1331_v31 = vmul.f32 %v5959_v14, %v809_v15 }
  0xf1   : > { %v1737_v12 = vadd.f32 %v1736_v5, %v1496_v27  ;;  %v1497_v44 = vsel %vm1151_vm12, %v1035_v40, %v1329_v54  ;;  %v1498_v36 = vsel %vm1152_vm13, %v695_v28, %v1330_v62 }
  0xf2   : > { %v1784_v48 = vadd.f32 %v1783_v55, %v1497_v44  ;;  %v1644_v32 = vadd.f32 %v1643_v60, %v1498_v36  ;;  %v1499_v23 = vsel %vm1153_vm14, %v809_v15, %v1331_v31 }
  0xf3   : > { %v1691_v52 = vadd.f32 %v1690_v3, %v1499_v23  ;;  %v922_v0 = vpop.f32.mrf.mxu2 }
  0xf4   : > { %v923_v50 = vadd.f32 %v922_v0, %v5963_v21  ;;  %v1036_v37 = vpop.f32.mrf.mxu3  ;;  %v697_v49 = vpop.f32.mrf.mxu0  ;;  %v5068_v0 = vld [vmem:[%s8308_s5 + $0x2c0] sm:$0xf] }
  0xf5   : > { %v1037_v19 = vadd.f32 %v1036_v37, %v5965_v29  ;;  %v698_v56 = vadd.f32 %v697_v49, %v5947_v61  ;;  %v811_v20 = vpop.f32.mrf.mxu1 }
  0xf6   : > { %vm1154_vm15 = vcmp.gt.f32.partialorder %v923_v50, 0.0  ;;  %v1332_v5 = vmul.f32 %v5969_v38, %v923_v50  ;;  %v812_v40 = vadd.f32 %v811_v20, %v5950_v1 }
  0xf7   : > { %vm1155_vm0 = vcmp.gt.f32.partialorder %v1037_v19, 0.0  ;;  %v1333_v55 = vmul.f32 %v5975_v53, %v1037_v19  ;;  %vm1156_vm1 = vcmp.gt.f32.partialorder %v698_v56, 0.0  ;;  %v1334_v60 = vmul.f32 %v5956_v7, %v698_v56  ;;  %736 = vmatmul.bf16.gmra.mxu0 %v5326_v43 }
  0xf8   : > { %v1500_v3 = vsel %vm1154_vm15, %v923_v50, %v1332_v5  ;;  %vm1157_vm2 = vcmp.gt.f32.partialorder %v812_v40, 0.0  ;;  %v1335_v28 = vmul.f32 %v5959_v14, %v812_v40  ;;  %850 = vmatmul.bf16.gmra.mxu1 %v5326_v43  ;;  %964 = vmatmul.bf16.gmra.mxu2 %v5326_v43  ;;  %v5457_v50 = vld [vmem:[%s8308_s5 + $0x2cc] sm:$0xf0] }
  0xf9   : > { %v1738_v15 = vadd.f32 %v1737_v12, %v1500_v3  ;;  %v1501_v54 = vsel %vm1155_vm0, %v1037_v19, %v1333_v55  ;;  %v1502_v62 = vsel %vm1156_vm1, %v698_v56, %v1334_v60  ;;  %1078 = vmatmul.bf16.gmra.mxu3 %v5326_v43  ;;  %v6082_v19 = vor.u32 %v5457_v50, %v5068_v0  ;;  %v5489_v0 = vld [vmem:[%s8308_s5 + $0x3cc] sm:$0xf0] }
  0xfa   : > { %v1785_v27 = vadd.f32 %v1784_v48, %v1501_v54  ;;  %v1645_v31 = vadd.f32 %v1644_v32, %v1502_v62  ;;  %v1503_v44 = vsel %vm1157_vm2, %v812_v40, %v1335_v28 }
  0xfb   : > { %v1692_v36 = vadd.f32 %v1691_v52, %v1503_v44  ;;  %v925_v23 = vpop.f32.mrf.mxu2  ;;  %8466 = vst [vmem:[#allocation24_spill] sm:$0xff] %v6082_v19  ;;  %2646 = vmatpush.bf16.msrb.mxu2 %v6082_v19 }
  0xfc   : > { %v926_v37 = vadd.f32 %v925_v23, %v5963_v21  ;;  %v1039_v49 = vpop.f32.mrf.mxu3  ;;  %v699_v12 = vpop.f32.mrf.mxu0  ;;  %v5196_v23 = vld [vmem:[%s8308_s5 + $0x3c0] sm:$0xf] }
  0xfd   : > { %v1040_v48 = vadd.f32 %v1039_v49, %v5965_v29  ;;  %v700_v32 = vadd.f32 %v699_v12, %v5947_v61  ;;  %v813_v52 = vpop.f32.mrf.mxu1  ;;  %v6099_v12 = vor.u32 %v5489_v0, %v5196_v23 }
  0xfe   : > { %vm1158_vm3 = vcmp.gt.f32.partialorder %v926_v37, 0.0  ;;  %v1336_v43 = vmul.f32 %v5969_v38, %v926_v37  ;;  %v814_v56 = vadd.f32 %v813_v52, %v5950_v1 }
  0xff   : > { %vm1159_vm4 = vcmp.gt.f32.partialorder %v1040_v48, 0.0  ;;  %v1337_v20 = vmul.f32 %v5975_v53, %v1040_v48  ;;  %vm1160_vm5 = vcmp.gt.f32.partialorder %v700_v32, 0.0  ;;  %v1338_v5 = vmul.f32 %v5956_v7, %v700_v32  ;;  %8467 = vst [vmem:[#allocation25_spill] sm:$0xff] %v6099_v12  ;;  %2659 = vmatpush.bf16.msrb.mxu3 %v6099_v12 }
 0x100   : > { %v1504_v40 = vsel %vm1158_vm3, %v926_v37, %v1336_v43  ;;  %vm1161_vm6 = vcmp.gt.f32.partialorder %v814_v56, 0.0  ;;  %v1339_v55 = vmul.f32 %v5959_v14, %v814_v56  ;;  %v5327_v37 = vld [vmem:[%s5640_s9 + $0x68] sm:$0xff] }
 0x101   : > { %v1739_v60 = vadd.f32 %v1738_v15, %v1504_v40  ;;  %v1505_v3 = vsel %vm1159_vm4, %v1040_v48, %v1337_v20  ;;  %v1506_v28 = vsel %vm1160_vm5, %v700_v32, %v1338_v5  ;;  %v4812_v15 = vld [vmem:[%s8308_s5 + $0xc0] sm:$0xf] }
 0x102   : > { %v1786_v54 = vadd.f32 %v1785_v27, %v1505_v3  ;;  %v1646_v62 = vadd.f32 %v1645_v31, %v1506_v28  ;;  %v1507_v44 = vsel %vm1161_vm6, %v814_v56, %v1339_v55  ;;  %v5393_v27 = vld [vmem:[%s8308_s5 + $0xcc] sm:$0xf0] }
 0x103   : > { %v1693_v50 = vadd.f32 %v1692_v36, %v1507_v44  ;;  %v927_v49 = vpop.f32.mrf.mxu2  ;;  %v6108_v52 = vor.u32 %v5393_v27, %v4812_v15 }
 0x104   : > { %v928_v31 = vadd.f32 %v927_v49, %v5963_v21  ;;  %v1041_v48 = vpop.f32.mrf.mxu3  ;;  %v702_v32 = vpop.f32.mrf.mxu0 }
 0x105   : > { %8468 = vst [vmem:[#allocation26_spill] sm:$0xff] %v6108_v52  ;;  %v1042_v36 = vadd.f32 %v1041_v48, %v5965_v29  ;;  %v703_v43 = vadd.f32 %v702_v32, %v5947_v61  ;;  %v816_v56 = vpop.f32.mrf.mxu1  ;;  %2620 = vmatpush.bf16.msrb.mxu0 %v6108_v52  ;;  %v4940_v48 = vld [vmem:[%s8308_s5 + $0x1c0] sm:$0xf] }
 0x106   : > { %vm1162_vm7 = vcmp.gt.f32.partialorder %v928_v31, 0.0  ;;  %v1340_v20 = vmul.f32 %v5969_v38, %v928_v31  ;;  %v817_v5 = vadd.f32 %v816_v56, %v5950_v1 }
 0x107   : > { %vm1163_vm8 = vcmp.gt.f32.partialorder %v1042_v36, 0.0  ;;  %v1341_v40 = vmul.f32 %v5975_v53, %v1042_v36  ;;  %vm1164_vm9 = vcmp.gt.f32.partialorder %v703_v43, 0.0  ;;  %v1342_v55 = vmul.f32 %v5956_v7, %v703_v43  ;;  %741 = vmatmul.bf16.gmra.mxu0 %v5327_v37 }
 0x108   : > { %v1508_v3 = vsel %vm1162_vm7, %v928_v31, %v1340_v20  ;;  %vm1165_vm10 = vcmp.gt.f32.partialorder %v817_v5, 0.0  ;;  %v1343_v28 = vmul.f32 %v5959_v14, %v817_v5  ;;  %855 = vmatmul.bf16.gmra.mxu1 %v5327_v37  ;;  %969 = vmatmul.bf16.gmra.mxu2 %v5327_v37  ;;  %v5425_v31 = vld [vmem:[%s8308_s5 + $0x1cc] sm:$0xf0] }
 0x109   : > { %v1740_v44 = vadd.f32 %v1739_v60, %v1508_v3  ;;  %v1509_v23 = vsel %vm1163_vm8, %v1042_v36, %v1341_v40  ;;  %v1510_v0 = vsel %vm1164_vm9, %v703_v43, %v1342_v55  ;;  %1083 = vmatmul.bf16.gmra.mxu3 %v5327_v37  ;;  %v6125_v20 = vor.u32 %v5425_v31, %v4940_v48 }
 0x10a   : > { %v1787_v49 = vadd.f32 %v1786_v54, %v1509_v23  ;;  %v1647_v15 = vadd.f32 %v1646_v62, %v1510_v0  ;;  %v1511_v27 = vsel %vm1165_vm10, %v817_v5, %v1343_v28 }
 0x10b   : > { %v1694_v32 = vadd.f32 %v1693_v50, %v1511_v27  ;;  %v930_v56 = vpop.f32.mrf.mxu2  ;;  %8469 = vst [vmem:[#allocation27_spill] sm:$0xff] %v6125_v20  ;;  %2633 = vmatpush.bf16.msrb.mxu1 %v6125_v20 }
 0x10c   : > { %v931_v60 = vadd.f32 %v930_v56, %v5963_v21  ;;  %v1044_v36 = vpop.f32.mrf.mxu3  ;;  %v704_v43 = vpop.f32.mrf.mxu0 }
 0x10d   : > { %v1045_v54 = vadd.f32 %v1044_v36, %v5965_v29  ;;  %v705_v62 = vadd.f32 %v704_v43, %v5947_v61  ;;  %v818_v37 = vpop.f32.mrf.mxu1 }
 0x10e   : > { %vm1166_vm11 = vcmp.gt.f32.partialorder %v931_v60, 0.0  ;;  %v1344_v5 = vmul.f32 %v5969_v38, %v931_v60  ;;  %v819_v40 = vadd.f32 %v818_v37, %v5950_v1  ;;  %v5328_v37 = vld [vmem:[%s5640_s9 + $0x70] sm:$0xff] }
 0x10f   : > { %vm1167_vm12 = vcmp.gt.f32.partialorder %v1045_v54, 0.0  ;;  %v1345_v50 = vmul.f32 %v5975_v53, %v1045_v54  ;;  %vm1168_vm13 = vcmp.gt.f32.partialorder %v705_v62, 0.0  ;;  %v1346_v55 = vmul.f32 %v5956_v7, %v705_v62 }
 0x110   : > { %v1512_v3 = vsel %vm1166_vm11, %v931_v60, %v1344_v5  ;;  %vm1169_vm14 = vcmp.gt.f32.partialorder %v819_v40, 0.0  ;;  %v1347_v28 = vmul.f32 %v5959_v14, %v819_v40 }
 0x111   : > { %v1741_v23 = vadd.f32 %v1740_v44, %v1512_v3  ;;  %v1513_v0 = vsel %vm1167_vm12, %v1045_v54, %v1345_v50  ;;  %v1514_v27 = vsel %vm1168_vm13, %v705_v62, %v1346_v55 }
 0x112   : > { %v1788_v48 = vadd.f32 %v1787_v49, %v1513_v0  ;;  %v1648_v31 = vadd.f32 %v1647_v15, %v1514_v27  ;;  %v1515_v56 = vsel %vm1169_vm14, %v819_v40, %v1347_v28 }
 0x113   : > { %v1695_v36 = vadd.f32 %v1694_v32, %v1515_v56  ;;  %v932_v43 = vpop.f32.mrf.mxu2 }
 0x114   : > { %v933_v12 = vadd.f32 %v932_v43, %v5963_v21  ;;  %v1046_v19 = vpop.f32.mrf.mxu3  ;;  %v707_v20 = vpop.f32.mrf.mxu0 }
 0x115   : > { %v1047_v52 = vadd.f32 %v1046_v19, %v5965_v29  ;;  %v708_v60 = vadd.f32 %v707_v20, %v5947_v61  ;;  %v821_v5 = vpop.f32.mrf.mxu1 }
 0x116   : > { %vm1170_vm15 = vcmp.gt.f32.partialorder %v933_v12, 0.0  ;;  %v1348_v44 = vmul.f32 %v5969_v38, %v933_v12  ;;  %v822_v54 = vadd.f32 %v821_v5, %v5950_v1 }
 0x117   : > { %vm1171_vm0 = vcmp.gt.f32.partialorder %v1047_v52, 0.0  ;;  %v1349_v49 = vmul.f32 %v5975_v53, %v1047_v52  ;;  %vm1172_vm1 = vcmp.gt.f32.partialorder %v708_v60, 0.0  ;;  %v1350_v15 = vmul.f32 %v5956_v7, %v708_v60  ;;  %746 = vmatmul.bf16.gmra.mxu0 %v5328_v37 }
 0x118   : > { %v1516_v32 = vsel %vm1170_vm15, %v933_v12, %v1348_v44  ;;  %vm1173_vm2 = vcmp.gt.f32.partialorder %v822_v54, 0.0  ;;  %v1351_v62 = vmul.f32 %v5959_v14, %v822_v54  ;;  %860 = vmatmul.bf16.gmra.mxu1 %v5328_v37  ;;  %974 = vmatmul.bf16.gmra.mxu2 %v5328_v37 }
 0x119   : > { %v1742_v19 = vadd.f32 %v1741_v23, %v1516_v32  ;;  %v1517_v20 = vsel %vm1171_vm0, %v1047_v52, %v1349_v49  ;;  %v1518_v40 = vsel %vm1172_vm1, %v708_v60, %v1350_v15  ;;  %1088 = vmatmul.bf16.gmra.mxu3 %v5328_v37 }
 0x11a   : > { %v1789_v50 = vadd.f32 %v1788_v48, %v1517_v20  ;;  %v1649_v55 = vadd.f32 %v1648_v31, %v1518_v40  ;;  %v1519_v3 = vsel %vm1173_vm2, %v822_v54, %v1351_v62 }
 0x11b   : > { %v1696_v28 = vadd.f32 %v1695_v36, %v1519_v3  ;;  %v935_v0 = vpop.f32.mrf.mxu2  ;;  %v5329_v3 = vld [vmem:[%s5640_s9 + $0x78] sm:$0xff] }
 0x11c   : > { %v936_v27 = vadd.f32 %v935_v0, %v5963_v21  ;;  %v1049_v56 = vpop.f32.mrf.mxu3  ;;  %v709_v43 = vpop.f32.mrf.mxu0 }
 0x11d   : > { %v1050_v12 = vadd.f32 %v1049_v56, %v5965_v29  ;;  %v710_v5 = vadd.f32 %v709_v43, %v5947_v61  ;;  %v823_v44 = vpop.f32.mrf.mxu1 }
 0x11e   : > { %vm1174_vm3 = vcmp.gt.f32.partialorder %v936_v27, 0.0  ;;  %v1352_v23 = vmul.f32 %v5969_v38, %v936_v27  ;;  %v824_v52 = vadd.f32 %v823_v44, %v5950_v1 }
 0x11f   : > { %vm1175_vm4 = vcmp.gt.f32.partialorder %v1050_v12, 0.0  ;;  %v1353_v48 = vmul.f32 %v5975_v53, %v1050_v12  ;;  %vm1176_vm5 = vcmp.gt.f32.partialorder %v710_v5, 0.0  ;;  %v1354_v31 = vmul.f32 %v5956_v7, %v710_v5 }
 0x120   : > { %v1520_v36 = vsel %vm1174_vm3, %v936_v27, %v1352_v23  ;;  %vm1177_vm6 = vcmp.gt.f32.partialorder %v824_v52, 0.0  ;;  %v1355_v37 = vmul.f32 %v5959_v14, %v824_v52 }
 0x121   : > { %v1743_v60 = vadd.f32 %v1742_v19, %v1520_v36  ;;  %v1521_v54 = vsel %vm1175_vm4, %v1050_v12, %v1353_v48  ;;  %v1522_v49 = vsel %vm1176_vm5, %v710_v5, %v1354_v31 }
 0x122   : > { %v1790_v15 = vadd.f32 %v1789_v50, %v1521_v54  ;;  %v1650_v32 = vadd.f32 %v1649_v55, %v1522_v49  ;;  %v1523_v62 = vsel %vm1177_vm6, %v824_v52, %v1355_v37  ;;  %v5052_v49 = vld [vmem:[%s8308_s5 + $0x2a0] sm:$0xf] }
 0x123   : > { %v1697_v20 = vadd.f32 %v1696_v28, %v1523_v62  ;;  %v937_v40 = vpop.f32.mrf.mxu2  ;;  %v5453_v62 = vld [vmem:[%s8308_s5 + $0x2ac] sm:$0xf0] }
 0x124   : > { %v938_v0 = vadd.f32 %v937_v40, %v5963_v21  ;;  %v1051_v56 = vpop.f32.mrf.mxu3  ;;  %v712_v43 = vpop.f32.mrf.mxu0 }
 0x125   : > { %v1052_v44 = vadd.f32 %v1051_v56, %v5965_v29  ;;  %v713_v27 = vadd.f32 %v712_v43, %v5947_v61  ;;  %v826_v23 = vpop.f32.mrf.mxu1  ;;  %v6168_v56 = vor.u32 %v5453_v62, %v5052_v49 }
 0x126   : > { %vm1178_vm7 = vcmp.gt.f32.partialorder %v938_v0, 0.0  ;;  %v1356_v19 = vmul.f32 %v5969_v38, %v938_v0  ;;  %v827_v12 = vadd.f32 %v826_v23, %v5950_v1 }
 0x127   : > { %vm1179_vm8 = vcmp.gt.f32.partialorder %v1052_v44, 0.0  ;;  %v1357_v50 = vmul.f32 %v5975_v53, %v1052_v44  ;;  %vm1180_vm9 = vcmp.gt.f32.partialorder %v713_v27, 0.0  ;;  %v1358_v55 = vmul.f32 %v5956_v7, %v713_v27  ;;  %751 = vmatmul.bf16.gmra.mxu0 %v5329_v3  ;;  %8470 = vst [vmem:[#allocation28_spill] sm:$0xff] %v6168_v56  ;;  %2647 = vmatpush.bf16.msrb.mxu2 %v6168_v56 }
 0x128   : > { %v1524_v28 = vsel %vm1178_vm7, %v938_v0, %v1356_v19  ;;  %vm1181_vm10 = vcmp.gt.f32.partialorder %v827_v12, 0.0  ;;  %v1359_v5 = vmul.f32 %v5959_v14, %v827_v12  ;;  %865 = vmatmul.bf16.gmra.mxu1 %v5329_v3  ;;  %979 = vmatmul.bf16.gmra.mxu2 %v5329_v3 }
 0x129   : > { %v1744_v52 = vadd.f32 %v1743_v60, %v1524_v28  ;;  %v1525_v48 = vsel %vm1179_vm8, %v1052_v44, %v1357_v50  ;;  %v1526_v31 = vsel %vm1180_vm9, %v713_v27, %v1358_v55  ;;  %1093 = vmatmul.bf16.gmra.mxu3 %v5329_v3  ;;  %v5180_v60 = vld [vmem:[%s8308_s5 + $0x3a0] sm:$0xf] }
 0x12a   : > { %v1791_v36 = vadd.f32 %v1790_v15, %v1525_v48  ;;  %v1651_v37 = vadd.f32 %v1650_v32, %v1526_v31  ;;  %v1527_v54 = vsel %vm1181_vm10, %v827_v12, %v1359_v5  ;;  %v5485_v15 = vld [vmem:[%s8308_s5 + $0x3ac] sm:$0xf0] }
 0x12b   : > { %v1698_v40 = vadd.f32 %v1697_v20, %v1527_v54  ;;  %v940_v0 = vpop.f32.mrf.mxu2  ;;  %v6177_v44 = vor.u32 %v5485_v15, %v5180_v60  ;;  %v4796_v60 = vld [vmem:[%s8308_s5 + $0xa0] sm:$0xf]  ;;  %v5389_v15 = vld [vmem:[%s8308_s5 + $0xac] sm:$0xf0] }
 0x12c   : > { %v941_v32 = vadd.f32 %v940_v0, %v5963_v21  ;;  %v1054_v3 = vpop.f32.mrf.mxu3  ;;  %v714_v43 = vpop.f32.mrf.mxu0 }
 0x12d   : > { %8471 = vst [vmem:[#allocation29_spill] sm:$0xff] %v6177_v44  ;;  %v1055_v27 = vadd.f32 %v1054_v3, %v5965_v29  ;;  %v715_v20 = vadd.f32 %v714_v43, %v5947_v61  ;;  %v828_v23 = vpop.f32.mrf.mxu1  ;;  %2660 = vmatpush.bf16.msrb.mxu3 %v6177_v44 }
 0x12e   : > { %vm1182_vm11 = vcmp.gt.f32.partialorder %v941_v32, 0.0  ;;  %v1360_v19 = vmul.f32 %v5969_v38, %v941_v32  ;;  %v829_v12 = vadd.f32 %v828_v23, %v5950_v1  ;;  %v6195_v23 = vor.u32 %v5389_v15, %v4796_v60 }
 0x12f   : > { %vm1183_vm12 = vcmp.gt.f32.partialorder %v1055_v27, 0.0  ;;  %v1361_v50 = vmul.f32 %v5975_v53, %v1055_v27  ;;  %vm1184_vm13 = vcmp.gt.f32.partialorder %v715_v20, 0.0  ;;  %v1362_v55 = vmul.f32 %v5956_v7, %v715_v20 }
 0x130   : > { %v1528_v28 = vsel %vm1182_vm11, %v941_v32, %v1360_v19  ;;  %vm1185_vm14 = vcmp.gt.f32.partialorder %v829_v12, 0.0  ;;  %v1363_v5 = vmul.f32 %v5959_v14, %v829_v12  ;;  %v5330_v32 = vld [vmem:[%s5640_s9 + $0x80] sm:$0xff]  ;;  %8472 = vst [vmem:[#allocation30_spill] sm:$0xff] %v6195_v23  ;;  %2621 = vmatpush.bf16.msrb.mxu0 %v6195_v23 }
 0x131   : > { %v1745_v48 = vadd.f32 %v1744_v52, %v1528_v28  ;;  %v1529_v31 = vsel %vm1183_vm12, %v1055_v27, %v1361_v50  ;;  %v1530_v54 = vsel %vm1184_vm13, %v715_v20, %v1362_v55  ;;  %v4924_v52 = vld [vmem:[%s8308_s5 + $0x1a0] sm:$0xf] }
 0x132   : > { %v1792_v49 = vadd.f32 %v1791_v36, %v1529_v31  ;;  %v1652_v62 = vadd.f32 %v1651_v37, %v1530_v54  ;;  %v1531_v0 = vsel %vm1185_vm14, %v829_v12, %v1363_v5  ;;  %v5421_v36 = vld [vmem:[%s8308_s5 + $0x1ac] sm:$0xf0] }
 0x133   : > { %v1699_v3 = vadd.f32 %v1698_v40, %v1531_v0  ;;  %v942_v43 = vpop.f32.mrf.mxu2  ;;  %v6204_v19 = vor.u32 %v5421_v36, %v4924_v52 }
 0x134   : > { %v943_v37 = vadd.f32 %v942_v43, %v5963_v21  ;;  %v1056_v27 = vpop.f32.mrf.mxu3  ;;  %v717_v20 = vpop.f32.mrf.mxu0 }
 0x135   : > { %8473 = vst [vmem:[#allocation31_spill] sm:$0xff] %v6204_v19  ;;  %v1057_v40 = vadd.f32 %v1056_v27, %v5965_v29  ;;  %v718_v12 = vadd.f32 %v717_v20, %v5947_v61  ;;  %v831_v50 = vpop.f32.mrf.mxu1  ;;  %2634 = vmatpush.bf16.msrb.mxu1 %v6204_v19 }
 0x136   : > { %vm1186_vm15 = vcmp.gt.f32.partialorder %v943_v37, 0.0  ;;  %v1364_v55 = vmul.f32 %v5969_v38, %v943_v37  ;;  %v832_v28 = vadd.f32 %v831_v50, %v5950_v1 }
 0x137   : > { %vm1187_vm0 = vcmp.gt.f32.partialorder %v1057_v40, 0.0  ;;  %v1365_v5 = vmul.f32 %v5975_v53, %v1057_v40  ;;  %vm1188_vm1 = vcmp.gt.f32.partialorder %v718_v12, 0.0  ;;  %v1366_v31 = vmul.f32 %v5956_v7, %v718_v12  ;;  %756 = vmatmul.bf16.gmra.mxu0 %v5330_v32 }
 0x138   : > { %v1532_v54 = vsel %vm1186_vm15, %v943_v37, %v1364_v55  ;;  %vm1189_vm2 = vcmp.gt.f32.partialorder %v832_v28, 0.0  ;;  %v1367_v0 = vmul.f32 %v5959_v14, %v832_v28  ;;  %870 = vmatmul.bf16.gmra.mxu1 %v5330_v32  ;;  %984 = vmatmul.bf16.gmra.mxu2 %v5330_v32 }
 0x139   : > { %v1746_v60 = vadd.f32 %v1745_v48, %v1532_v54  ;;  %v1533_v15 = vsel %vm1187_vm0, %v1057_v40, %v1365_v5  ;;  %v1534_v43 = vsel %vm1188_vm1, %v718_v12, %v1366_v31  ;;  %1098 = vmatmul.bf16.gmra.mxu3 %v5330_v32 }
 0x13a   : > { %v1793_v52 = vadd.f32 %v1792_v49, %v1533_v15  ;;  %v1653_v36 = vadd.f32 %v1652_v62, %v1534_v43  ;;  %v1535_v27 = vsel %vm1189_vm2, %v832_v28, %v1367_v0 }
 0x13b   : > { %v1700_v20 = vadd.f32 %v1699_v3, %v1535_v27  ;;  %v945_v50 = vpop.f32.mrf.mxu2 }
 0x13c   : > { %v946_v44 = vadd.f32 %v945_v50, %v5963_v21  ;;  %v1059_v56 = vpop.f32.mrf.mxu3  ;;  %v719_v19 = vpop.f32.mrf.mxu0 }
 0x13d   : > { %v1060_v37 = vadd.f32 %v1059_v56, %v5965_v29  ;;  %v720_v55 = vadd.f32 %v719_v19, %v5947_v61  ;;  %v833_v23 = vpop.f32.mrf.mxu1 }
 0x13e   : > { %vm1190_vm3 = vcmp.gt.f32.partialorder %v946_v44, 0.0  ;;  %v1368_v48 = vmul.f32 %v5969_v38, %v946_v44  ;;  %v834_v40 = vadd.f32 %v833_v23, %v5950_v1  ;;  %v5331_v23 = vld [vmem:[%s5640_s9 + $0x88] sm:$0xff] }
 0x13f   : > { %vm1191_vm4 = vcmp.gt.f32.partialorder %v1060_v37, 0.0  ;;  %v1369_v49 = vmul.f32 %v5975_v53, %v1060_v37  ;;  %vm1192_vm5 = vcmp.gt.f32.partialorder %v720_v55, 0.0  ;;  %v1370_v62 = vmul.f32 %v5956_v7, %v720_v55 }
 0x140   : > { %v1536_v3 = vsel %vm1190_vm3, %v946_v44, %v1368_v48  ;;  %vm1193_vm6 = vcmp.gt.f32.partialorder %v834_v40, 0.0  ;;  %v1371_v32 = vmul.f32 %v5959_v14, %v834_v40 }
 0x141   : > { %v1747_v56 = vadd.f32 %v1746_v60, %v1536_v3  ;;  %v1537_v12 = vsel %vm1191_vm4, %v1060_v37, %v1369_v49  ;;  %v1538_v19 = vsel %vm1192_vm5, %v720_v55, %v1370_v62 }
 0x142   : > { %v1794_v28 = vadd.f32 %v1793_v52, %v1537_v12  ;;  %v1654_v5 = vadd.f32 %v1653_v36, %v1538_v19  ;;  %v1539_v31 = vsel %vm1193_vm6, %v834_v40, %v1371_v32 }
 0x143   : > { %v1701_v54 = vadd.f32 %v1700_v20, %v1539_v31  ;;  %v947_v0 = vpop.f32.mrf.mxu2 }
 0x144   : > { %v948_v15 = vadd.f32 %v947_v0, %v5963_v21  ;;  %v1061_v43 = vpop.f32.mrf.mxu3  ;;  %v722_v27 = vpop.f32.mrf.mxu0 }
 0x145   : > { %v1062_v50 = vadd.f32 %v1061_v43, %v5965_v29  ;;  %v723_v44 = vadd.f32 %v722_v27, %v5947_v61  ;;  %v836_v48 = vpop.f32.mrf.mxu1 }
 0x146   : > { %vm1194_vm7 = vcmp.gt.f32.partialorder %v948_v15, 0.0  ;;  %v1372_v60 = vmul.f32 %v5969_v38, %v948_v15  ;;  %v837_v37 = vadd.f32 %v836_v48, %v5950_v1 }
 0x147   : > { %vm1195_vm8 = vcmp.gt.f32.partialorder %v1062_v50, 0.0  ;;  %v1373_v52 = vmul.f32 %v5975_v53, %v1062_v50  ;;  %vm1196_vm9 = vcmp.gt.f32.partialorder %v723_v44, 0.0  ;;  %v1374_v36 = vmul.f32 %v5956_v7, %v723_v44  ;;  %761 = vmatmul.bf16.gmra.mxu0 %v5331_v23 }
 0x148   : > { %v1540_v20 = vsel %vm1194_vm7, %v948_v15, %v1372_v60  ;;  %vm1197_vm10 = vcmp.gt.f32.partialorder %v837_v37, 0.0  ;;  %v1375_v55 = vmul.f32 %v5959_v14, %v837_v37  ;;  %875 = vmatmul.bf16.gmra.mxu1 %v5331_v23  ;;  %989 = vmatmul.bf16.gmra.mxu2 %v5331_v23 }
 0x149   : > { %v1748_v40 = vadd.f32 %v1747_v56, %v1540_v20  ;;  %v1541_v49 = vsel %vm1195_vm8, %v1062_v50, %v1373_v52  ;;  %v1542_v62 = vsel %vm1196_vm9, %v723_v44, %v1374_v36  ;;  %1103 = vmatmul.bf16.gmra.mxu3 %v5331_v23  ;;  %v5332_v36 = vld [vmem:[%s5640_s9 + $0x90] sm:$0xff] }
 0x14a   : > { %v1795_v3 = vadd.f32 %v1794_v28, %v1541_v49  ;;  %v1655_v32 = vadd.f32 %v1654_v5, %v1542_v62  ;;  %v1543_v12 = vsel %vm1197_vm10, %v837_v37, %v1375_v55  ;;  %v5036_v55 = vld [vmem:[%s8308_s5 + $0x280] sm:$0xf] }
 0x14b   : > { %v1702_v19 = vadd.f32 %v1701_v54, %v1543_v12  ;;  %v950_v31 = vpop.f32.mrf.mxu2  ;;  %v5164_v49 = vld [vmem:[%s8308_s5 + $0x380] sm:$0xf] }
 0x14c   : > { %v951_v0 = vadd.f32 %v950_v31, %v5963_v21  ;;  %v1064_v43 = vpop.f32.mrf.mxu3  ;;  %v724_v27 = vpop.f32.mrf.mxu0 }
 0x14d   : > { %v1065_v15 = vadd.f32 %v1064_v43, %v5965_v29  ;;  %v725_v48 = vadd.f32 %v724_v27, %v5947_v61  ;;  %v838_v60 = vpop.f32.mrf.mxu1 }
 0x14e   : > { %vm1198_vm11 = vcmp.gt.f32.partialorder %v951_v0, 0.0  ;;  %v1376_v56 = vmul.f32 %v5969_v38, %v951_v0  ;;  %v839_v23 = vadd.f32 %v838_v60, %v5950_v1 }
 0x14f   : > { %vm1199_vm12 = vcmp.gt.f32.partialorder %v1065_v15, 0.0  ;;  %v1377_v28 = vmul.f32 %v5975_v53, %v1065_v15  ;;  %v1378_v44 = vmul.f32 %v5956_v7, %v725_v48  ;;  %vm1200_vm13 = vcmp.gt.f32.partialorder %v725_v48, 0.0 }
 0x150   : > { %v1544_v5 = vsel %vm1198_vm11, %v951_v0, %v1376_v56  ;;  %vm1201_vm14 = vcmp.gt.f32.partialorder %v839_v23, 0.0  ;;  %v1379_v52 = vmul.f32 %v5959_v14, %v839_v23  ;;  %v5481_v0 = vld [vmem:[%s8308_s5 + $0x38c] sm:$0xf0] }
 0x151   : > { %v6238_v54 = vadd.f32 %v1748_v40, %v1544_v5  ;;  %v1545_v50 = vsel %vm1199_vm12, %v1065_v15, %v1377_v28  ;;  %v5449_v40 = vld [vmem:[%s8308_s5 + $0x28c] sm:$0xf0]  ;;  %v1546_v43 = vsel %vm1200_vm13, %v725_v48, %v1378_v44  ;;  %v6262_v56 = vor.u32 %v5481_v0, %v5164_v49 }
 0x152   : > { %v6241_v37 = vadd.f32 %v1795_v3, %v1545_v50  ;;  %v6255_v31 = vor.u32 %v5449_v40, %v5036_v55  ;;  %v1547_v28 = vsel %vm1201_vm14, %v839_v23, %v1379_v52  ;;  %v1656_v48 = vadd.f32 %v1655_v32, %v1546_v43  ;;  %v4780_v32 = vld [vmem:[%s8308_s5 + $0x80] sm:$0xf]  ;;  %v5385_v0 = vld [vmem:[%s8308_s5 + $0x8c] sm:$0xf0] }
 0x153   : > { %v952_v20 = vpop.f32.mrf.mxu2  ;;  %8475 = vst [vmem:[#allocation33_spill] sm:$0xff] %v6262_v56  ;;  %2661 = vmatpush.bf16.msrb.mxu3 %v6262_v56  ;;  %v1703_v55 = vadd.f32 %v1702_v19, %v1547_v28  ;;  %v4908_v19 = vld [vmem:[%s8308_s5 + $0x180] sm:$0xf]  ;;  %v6282_v28 = vor.u32 %v5385_v0, %v4780_v32 }
 0x154   : > { %v953_v62 = vadd.f32 %v952_v20, %v5963_v21  ;;  %v1066_v3 = vpop.f32.mrf.mxu3  ;;  %v727_v12 = vpop.f32.mrf.mxu0  ;;  %8474 = vst [vmem:[#allocation32_spill] sm:$0xff] %v6255_v31  ;;  %2648 = vmatpush.bf16.msrb.mxu2 %v6255_v31 }
 0x155   : > { %v1067_v27 = vadd.f32 %v1066_v3, %v5965_v29  ;;  %v728_v15 = vadd.f32 %v727_v12, %v5947_v61  ;;  %v841_v60 = vpop.f32.mrf.mxu1  ;;  %8476 = vst [vmem:[#allocation34_spill] sm:$0xff] %v6282_v28  ;;  %2622 = vmatpush.bf16.msrb.mxu0 %v6282_v28 }
 0x156   : > { %v842_v5 = vadd.f32 %v841_v60, %v5950_v1  ;;  %v1380_v44 = vmul.f32 %v5969_v38, %v953_v62  ;;  %vm1202_vm1 = vcmp.gt.f32.partialorder %v953_v62, 0.0 }
 0x157   : > { %vm1204_vm15 = vcmp.gt.f32.partialorder %v728_v15, 0.0  ;;  %v1382_v50 = vmul.f32 %v5956_v7, %v728_v15  ;;  %766 = vmatmul.bf16.gmra.mxu0 %v5332_v36  ;;  %v1381_v23 = vmul.f32 %v5975_v53, %v1067_v27  ;;  %vm1203_vm2 = vcmp.gt.f32.partialorder %v1067_v27, 0.0 }
 0x158   : > { %vm1205_vm0 = vcmp.gt.f32.partialorder %v842_v5, 0.0  ;;  %v1383_v20 = vmul.f32 %v5959_v14, %v842_v5  ;;  %880 = vmatmul.bf16.gmra.mxu1 %v5332_v36  ;;  %994 = vmatmul.bf16.gmra.mxu2 %v5332_v36  ;;  %v1548_v43 = vsel %vm1202_vm1, %v953_v62, %v1380_v44 }
 0x159   : > { %v1550_v52 = vsel %vm1204_vm15, %v728_v15, %v1382_v50  ;;  %1108 = vmatmul.bf16.gmra.mxu3 %v5332_v36  ;;  %v1549_v50 = vsel %vm1203_vm2, %v1067_v27, %v1381_v23 }
 0x15a   : > { %v1657_v40 = vadd.f32 %v1656_v48, %v1550_v52  ;;  %v1551_v49 = vsel %vm1205_vm0, %v842_v5, %v1383_v20  ;;  %v5417_v5 = vld [vmem:[%s8308_s5 + $0x18c] sm:$0xf0]  ;;  %v1797_v23 = vadd.f32 %v6241_v37, %v1549_v50 }
 0x15b   : > { %v1704_v3 = vadd.f32 %v1703_v55, %v1551_v49  ;;  %v955_v12 = vpop.f32.mrf.mxu2  ;;  %v6289_v52 = vor.u32 %v5417_v5, %v4908_v19  ;;  %v1750_v49 = vadd.f32 %v6238_v54, %v1548_v43 }
 0x15c   : > { %v956_v36 = vadd.f32 %v955_v12, %v5963_v21  ;;  %v1069_v15 = vpop.f32.mrf.mxu3  ;;  %v729_v60 = vpop.f32.mrf.mxu0 }
 0x15d   : > { %v1070_v48 = vadd.f32 %v1069_v15, %v5965_v29  ;;  %v730_v20 = vadd.f32 %v729_v60, %v5947_v61  ;;  %v843_v55 = vpop.f32.mrf.mxu1  ;;  %8477 = vst [vmem:[#allocation35_spill] sm:$0xff] %v6289_v52  ;;  %2635 = vmatpush.bf16.msrb.mxu1 %v6289_v52 }
 0x15e   : > { %vm1206_vm3 = vcmp.gt.f32.partialorder %v956_v36, 0.0  ;;  %v1384_v62 = vmul.f32 %v5969_v38, %v956_v36  ;;  %v844_v44 = vadd.f32 %v843_v55, %v5950_v1  ;;  %v5333_v55 = vld [vmem:[%s5640_s9 + $0x98] sm:$0xff] }
 0x15f   : > { %vm1207_vm4 = vcmp.gt.f32.partialorder %v1070_v48, 0.0  ;;  %v1385_v27 = vmul.f32 %v5975_v53, %v1070_v48  ;;  %v1386_v19 = vmul.f32 %v5956_v7, %v730_v20  ;;  %vm1208_vm5 = vcmp.gt.f32.partialorder %v730_v20, 0.0 }
 0x160   : > { %v1552_v12 = vsel %vm1206_vm3, %v956_v36, %v1384_v62  ;;  %v1387_v60 = vmul.f32 %v5959_v14, %v844_v44  ;;  %vm1209_vm6 = vcmp.gt.f32.partialorder %v844_v44, 0.0 }
 0x161   : > { %v1751_v32 = vadd.f32 %v1750_v49, %v1552_v12  ;;  %v1553_v0 = vsel %vm1207_vm4, %v1070_v48, %v1385_v27  ;;  %v1554_v31 = vsel %vm1208_vm5, %v730_v20, %v1386_v19 }
 0x162   : > { %v1798_v15 = vadd.f32 %v1797_v23, %v1553_v0  ;;  %v1555_v50 = vsel %vm1209_vm6, %v844_v44, %v1387_v60  ;;  %v1658_v49 = vadd.f32 %v1657_v40, %v1554_v31 }
 0x163   : > { %v957_v5 = vpop.f32.mrf.mxu2  ;;  %v1705_v20 = vadd.f32 %v1704_v3, %v1555_v50 }
 0x164   : > { %v958_v54 = vadd.f32 %v957_v5, %v5963_v21  ;;  %v1071_v43 = vpop.f32.mrf.mxu3  ;;  %v732_v56 = vpop.f32.mrf.mxu0 }
 0x165   : > { %v1072_v52 = vadd.f32 %v1071_v43, %v5965_v29  ;;  %v733_v37 = vadd.f32 %v732_v56, %v5947_v61  ;;  %v846_v36 = vpop.f32.mrf.mxu1 }
 0x166   : > { %v847_v48 = vadd.f32 %v846_v36, %v5950_v1  ;;  %v1388_v27 = vmul.f32 %v5969_v38, %v958_v54  ;;  %vm1210_vm9 = vcmp.gt.f32.partialorder %v958_v54, 0.0 }
 0x167   : > { %vm1212_vm7 = vcmp.gt.f32.partialorder %v733_v37, 0.0  ;;  %v1390_v62 = vmul.f32 %v5956_v7, %v733_v37  ;;  %771 = vmatmul.bf16.gmra.mxu0 %v5333_v55  ;;  %v1389_v56 = vmul.f32 %v5975_v53, %v1072_v52  ;;  %vm1211_vm10 = vcmp.gt.f32.partialorder %v1072_v52, 0.0 }
 0x168   : > { %vm1213_vm8 = vcmp.gt.f32.partialorder %v847_v48, 0.0  ;;  %v1391_v23 = vmul.f32 %v5959_v14, %v847_v48  ;;  %885 = vmatmul.bf16.gmra.mxu1 %v5333_v55  ;;  %999 = vmatmul.bf16.gmra.mxu2 %v5333_v55  ;;  %v1556_v5 = vsel %vm1210_vm9, %v958_v54, %v1388_v27 }
 0x169   : > { %v1558_v12 = vsel %vm1212_vm7, %v733_v37, %v1390_v62  ;;  %1113 = vmatmul.bf16.gmra.mxu3 %v5333_v55  ;;  %v1557_v36 = vsel %vm1211_vm10, %v1072_v52, %v1389_v56 }
 0x16a   : > { %v1659_v44 = vadd.f32 %v1658_v49, %v1558_v12  ;;  %v1559_v0 = vsel %vm1213_vm8, %v847_v48, %v1391_v23  ;;  %v1752_v48 = vadd.f32 %v1751_v32, %v1556_v5  ;;  %v1799_v62 = vadd.f32 %v1798_v15, %v1557_v36 }
 0x16b   : > { %v1706_v19 = vadd.f32 %v1705_v20, %v1559_v0  ;;  %v960_v60 = vpop.f32.mrf.mxu2  ;;  %v5334_v0 = vld [vmem:[%s5640_s9 + $0xa0] sm:$0xff] }
 0x16c   : > { %v961_v31 = vadd.f32 %v960_v60, %v5963_v21  ;;  %v1074_v40 = vpop.f32.mrf.mxu3  ;;  %v734_v43 = vpop.f32.mrf.mxu0 }
 0x16d   : > { %v1075_v28 = vadd.f32 %v1074_v40, %v5965_v29  ;;  %v735_v3 = vadd.f32 %v734_v43, %v5947_v61  ;;  %v848_v50 = vpop.f32.mrf.mxu1 }
 0x16e   : > { %vm1214_vm11 = vcmp.gt.f32.partialorder %v961_v31, 0.0  ;;  %v1392_v55 = vmul.f32 %v5969_v38, %v961_v31  ;;  %v849_v37 = vadd.f32 %v848_v50, %v5950_v1 }
 0x16f   : > { %vm1215_vm12 = vcmp.gt.f32.partialorder %v1075_v28, 0.0  ;;  %v1393_v54 = vmul.f32 %v5975_v53, %v1075_v28  ;;  %v1394_v52 = vmul.f32 %v5956_v7, %v735_v3  ;;  %vm1216_vm13 = vcmp.gt.f32.partialorder %v735_v3, 0.0 }
 0x170   : > { %v1560_v49 = vsel %vm1214_vm11, %v961_v31, %v1392_v55  ;;  %v1395_v56 = vmul.f32 %v5959_v14, %v849_v37  ;;  %vm1217_vm14 = vcmp.gt.f32.partialorder %v849_v37, 0.0 }
 0x171   : > { %v1753_v27 = vadd.f32 %v1752_v48, %v1560_v49  ;;  %v1561_v23 = vsel %vm1215_vm12, %v1075_v28, %v1393_v54  ;;  %v1562_v5 = vsel %vm1216_vm13, %v735_v3, %v1394_v52 }
 0x172   : > { %v1800_v20 = vadd.f32 %v1799_v62, %v1561_v23  ;;  %v1563_v28 = vsel %vm1217_vm14, %v849_v37, %v1395_v56  ;;  %v1660_v55 = vadd.f32 %v1659_v44, %v1562_v5  ;;  %v5020_v44 = vld [vmem:[%s8308_s5 + $0x260] sm:$0xf] }
 0x173   : > { %v962_v12 = vpop.f32.mrf.mxu2  ;;  %v1707_v3 = vadd.f32 %v1706_v19, %v1563_v28  ;;  %v5148_v19 = vld [vmem:[%s8308_s5 + $0x360] sm:$0xf] }
 0x174   : > { %v963_v60 = vadd.f32 %v962_v12, %v5963_v21  ;;  %v1076_v40 = vpop.f32.mrf.mxu3  ;;  %v737_v32 = vpop.f32.mrf.mxu0  ;;  %v5445_v12 = vld [vmem:[%s8308_s5 + $0x26c] sm:$0xf0] }
 0x175   : > { %v1077_v43 = vadd.f32 %v1076_v40, %v5965_v29  ;;  %v738_v15 = vadd.f32 %v737_v32, %v5947_v61  ;;  %v851_v31 = vpop.f32.mrf.mxu1 }
 0x176   : > { %v852_v36 = vadd.f32 %v851_v31, %v5950_v1  ;;  %v1396_v48 = vmul.f32 %v5969_v38, %v963_v60  ;;  %vm1218_vm1 = vcmp.gt.f32.partialorder %v963_v60, 0.0  ;;  %v5477_v31 = vld [vmem:[%s8308_s5 + $0x36c] sm:$0xf0] }
 0x177   : > { %vm1220_vm15 = vcmp.gt.f32.partialorder %v738_v15, 0.0  ;;  %v1398_v50 = vmul.f32 %v5956_v7, %v738_v15  ;;  %776 = vmatmul.bf16.gmra.mxu0 %v5334_v0  ;;  %v1397_v62 = vmul.f32 %v5975_v53, %v1077_v43  ;;  %vm1219_vm2 = vcmp.gt.f32.partialorder %v1077_v43, 0.0 }
 0x178   : > { %vm1221_vm0 = vcmp.gt.f32.partialorder %v852_v36, 0.0  ;;  %v1399_v54 = vmul.f32 %v5959_v14, %v852_v36  ;;  %890 = vmatmul.bf16.gmra.mxu1 %v5334_v0  ;;  %1004 = vmatmul.bf16.gmra.mxu2 %v5334_v0  ;;  %v1564_v40 = vsel %vm1218_vm1, %v963_v60, %v1396_v48 }
 0x179   : > { %v1566_v49 = vsel %vm1220_vm15, %v738_v15, %v1398_v50  ;;  %1118 = vmatmul.bf16.gmra.mxu3 %v5334_v0  ;;  %v6336_v15 = vor.u32 %v5445_v12, %v5020_v44  ;;  %v1565_v28 = vsel %vm1219_vm2, %v1077_v43, %v1397_v62 }
 0x17a   : > { %v1661_v37 = vadd.f32 %v1660_v55, %v1566_v49  ;;  %v1567_v23 = vsel %vm1221_vm0, %v852_v36, %v1399_v54  ;;  %v6343_v54 = vor.u32 %v5477_v31, %v5148_v19  ;;  %v1801_v43 = vadd.f32 %v1800_v20, %v1565_v28  ;;  %v4892_v20 = vld [vmem:[%s8308_s5 + $0x160] sm:$0xf] }
 0x17b   : > { %v1708_v52 = vadd.f32 %v1707_v3, %v1567_v23  ;;  %v965_v56 = vpop.f32.mrf.mxu2  ;;  %8478 = vst [vmem:[#allocation36_spill] sm:$0xff] %v6336_v15  ;;  %2649 = vmatpush.bf16.msrb.mxu2 %v6336_v15  ;;  %v1754_v3 = vadd.f32 %v1753_v27, %v1564_v40  ;;  %v4764_v27 = vld [vmem:[%s8308_s5 + $0x60] sm:$0xf]  ;;  %v5381_v40 = vld [vmem:[%s8308_s5 + $0x6c] sm:$0xf0] }
 0x17c   : > { %v966_v0 = vadd.f32 %v965_v56, %v5963_v21  ;;  %v1079_v32 = vpop.f32.mrf.mxu3  ;;  %v739_v5 = vpop.f32.mrf.mxu0  ;;  %8479 = vst [vmem:[#allocation37_spill] sm:$0xff] %v6343_v54  ;;  %2662 = vmatpush.bf16.msrb.mxu3 %v6343_v54  ;;  %v6362_v28 = vor.u32 %v5381_v40, %v4764_v27 }
 0x17d   : > { %v1080_v36 = vadd.f32 %v1079_v32, %v5965_v29  ;;  %v740_v50 = vadd.f32 %v739_v5, %v5947_v61  ;;  %v853_v55 = vpop.f32.mrf.mxu1 }
 0x17e   : > { %vm1222_vm3 = vcmp.gt.f32.partialorder %v966_v0, 0.0  ;;  %v1400_v60 = vmul.f32 %v5969_v38, %v966_v0  ;;  %v854_v48 = vadd.f32 %v853_v55, %v5950_v1  ;;  %8480 = vst [vmem:[#allocation38_spill] sm:$0xff] %v6362_v28  ;;  %2623 = vmatpush.bf16.msrb.mxu0 %v6362_v28 }
 0x17f   : > { %vm1223_vm4 = vcmp.gt.f32.partialorder %v1080_v36, 0.0  ;;  %v1401_v49 = vmul.f32 %v5975_v53, %v1080_v36  ;;  %v1402_v44 = vmul.f32 %v5956_v7, %v740_v50  ;;  %vm1224_vm5 = vcmp.gt.f32.partialorder %v740_v50, 0.0 }
 0x180   : > { %v1568_v62 = vsel %vm1222_vm3, %v966_v0, %v1400_v60  ;;  %vm1225_vm6 = vcmp.gt.f32.partialorder %v854_v48, 0.0  ;;  %v1403_v19 = vmul.f32 %v5959_v14, %v854_v48 }
 0x181   : > { %v1755_v23 = vadd.f32 %v1754_v3, %v1568_v62  ;;  %v1569_v56 = vsel %vm1223_vm4, %v1080_v36, %v1401_v49  ;;  %v5413_v36 = vld [vmem:[%s8308_s5 + $0x16c] sm:$0xf0]  ;;  %v1570_v55 = vsel %vm1224_vm5, %v740_v50, %v1402_v44 }
 0x182   : > { %v1802_v12 = vadd.f32 %v1801_v43, %v1569_v56  ;;  %v6369_v43 = vor.u32 %v5413_v36, %v4892_v20  ;;  %v1571_v62 = vsel %vm1225_vm6, %v854_v48, %v1403_v19  ;;  %v1662_v27 = vadd.f32 %v1661_v37, %v1570_v55 }
 0x183   : > { %v967_v32 = vpop.f32.mrf.mxu2  ;;  %v1709_v40 = vadd.f32 %v1708_v52, %v1571_v62 }
 0x184   : > { %v968_v0 = vadd.f32 %v967_v32, %v5963_v21  ;;  %v1081_v5 = vpop.f32.mrf.mxu3  ;;  %v742_v31 = vpop.f32.mrf.mxu0  ;;  %8481 = vst [vmem:[#allocation39_spill] sm:$0xff] %v6369_v43  ;;  %2636 = vmatpush.bf16.msrb.mxu1 %v6369_v43 }
 0x185   : > { %v1082_v60 = vadd.f32 %v1081_v5, %v5965_v29  ;;  %v743_v3 = vadd.f32 %v742_v31, %v5947_v61  ;;  %v856_v49 = vpop.f32.mrf.mxu1 }
 0x186   : > { %v857_v56 = vadd.f32 %v856_v49, %v5950_v1  ;;  %v1404_v50 = vmul.f32 %v5969_v38, %v968_v0  ;;  %vm1226_vm9 = vcmp.gt.f32.partialorder %v968_v0, 0.0 }
 0x187   : > { %vm1228_vm7 = vcmp.gt.f32.partialorder %v743_v3, 0.0  ;;  %v1406_v32 = vmul.f32 %v5956_v7, %v743_v3  ;;  %v1405_v20 = vmul.f32 %v5975_v53, %v1082_v60  ;;  %vm1227_vm10 = vcmp.gt.f32.partialorder %v1082_v60, 0.0 }
 0x188   : > { %vm1229_vm8 = vcmp.gt.f32.partialorder %v857_v56, 0.0  ;;  %v1407_v44 = vmul.f32 %v5959_v14, %v857_v56  ;;  %v1572_v49 = vsel %vm1226_vm9, %v968_v0, %v1404_v50 }
 0x189   : > { %v1574_v48 = vsel %vm1228_vm7, %v743_v3, %v1406_v32  ;;  %v1573_v55 = vsel %vm1227_vm10, %v1082_v60, %v1405_v20  ;;  %v1756_v32 = vadd.f32 %v1755_v23, %v1572_v49 }
 0x18a   : > { %v1663_v19 = vadd.f32 %v1662_v27, %v1574_v48  ;;  %v1575_v5 = vsel %vm1229_vm8, %v857_v56, %v1407_v44  ;;  %v1803_v0 = vadd.f32 %v1802_v12, %v1573_v55 }
 0x18b   : > { %v1710_v31 = vadd.f32 %v1709_v40, %v1575_v5  ;;  %v970_v36 = vpop.f32.mrf.mxu2 }
 0x18c   : > { %v971_v54 = vadd.f32 %v970_v36, %v5963_v21  ;;  %v1084_v15 = vpop.f32.mrf.mxu3  ;;  %v744_v37 = vpop.f32.mrf.mxu0 }
 0x18d   : > { %v1085_v43 = vadd.f32 %v1084_v15, %v5965_v29  ;;  %v745_v28 = vadd.f32 %v744_v37, %v5947_v61  ;;  %v858_v52 = vpop.f32.mrf.mxu1 }
 0x18e   : > { %vm1230_vm11 = vcmp.gt.f32.partialorder %v971_v54, 0.0  ;;  %v1408_v62 = vmul.f32 %v5969_v38, %v971_v54  ;;  %v859_v3 = vadd.f32 %v858_v52, %v5950_v1 }
 0x18f   : > { %vm1231_vm12 = vcmp.gt.f32.partialorder %v1085_v43, 0.0  ;;  %v1409_v56 = vmul.f32 %v5975_v53, %v1085_v43  ;;  %v1410_v60 = vmul.f32 %v5956_v7, %v745_v28  ;;  %vm1232_vm13 = vcmp.gt.f32.partialorder %v745_v28, 0.0 }
 0x190   : > { %v1576_v27 = vsel %vm1230_vm11, %v971_v54, %v1408_v62  ;;  %v1411_v15 = vmul.f32 %v5959_v14, %v859_v3  ;;  %vm1233_vm14 = vcmp.gt.f32.partialorder %v859_v3, 0.0 }
 0x191   : > { %v1757_v50 = vadd.f32 %v1756_v32, %v1576_v27  ;;  %v1577_v44 = vsel %vm1231_vm12, %v1085_v43, %v1409_v56  ;;  %v1578_v23 = vsel %vm1232_vm13, %v745_v28, %v1410_v60 }
 0x192   : > { %v1804_v40 = vadd.f32 %v1803_v0, %v1577_v44  ;;  %v1579_v37 = vsel %vm1233_vm14, %v859_v3, %v1411_v15  ;;  %v1664_v52 = vadd.f32 %v1663_v19, %v1578_v23 }
 0x193   : > { %v972_v20 = vpop.f32.mrf.mxu2  ;;  %v1711_v56 = vadd.f32 %v1710_v31, %v1579_v37 }
 0x194   : > { %v973_v48 = vadd.f32 %v972_v20, %v5963_v21  ;;  %v1086_v5 = vpop.f32.mrf.mxu3  ;;  %v747_v36 = vpop.f32.mrf.mxu0 }
 0x195   : > { %v1087_v49 = vadd.f32 %v1086_v5, %v5965_v29  ;;  %v748_v12 = vadd.f32 %v747_v36, %v5947_v61  ;;  %v861_v54 = vpop.f32.mrf.mxu1 }
 0x196   : > { %v862_v43 = vadd.f32 %v861_v54, %v5950_v1  ;;  %v1412_v62 = vmul.f32 %v5969_v38, %v973_v48  ;;  %vm1234_vm1 = vcmp.gt.f32.partialorder %v973_v48, 0.0 }
 0x197   : > { %vm1236_vm15 = vcmp.gt.f32.partialorder %v748_v12, 0.0  ;;  %v1414_v55 = vmul.f32 %v5956_v7, %v748_v12  ;;  %v1413_v28 = vmul.f32 %v5975_v53, %v1087_v49  ;;  %vm1235_vm2 = vcmp.gt.f32.partialorder %v1087_v49, 0.0 }
 0x198   : > { %vm1237_vm0 = vcmp.gt.f32.partialorder %v862_v43, 0.0  ;;  %v1415_v32 = vmul.f32 %v5959_v14, %v862_v43  ;;  %v1580_v15 = vsel %vm1234_vm1, %v973_v48, %v1412_v62 }
 0x199   : > { %v1582_v0 = vsel %vm1236_vm15, %v748_v12, %v1414_v55  ;;  %v1581_v36 = vsel %vm1235_vm2, %v1087_v49, %v1413_v28  ;;  %v1758_v55 = vadd.f32 %v1757_v50, %v1580_v15  ;;  %v5441_v50 = vld [vmem:[%s8308_s5 + $0x24c] sm:$0xf0] }
 0x19a   : > { %v1665_v27 = vadd.f32 %v1664_v52, %v1582_v0  ;;  %v1583_v44 = vsel %vm1237_vm0, %v862_v43, %v1415_v32  ;;  %v1805_v48 = vadd.f32 %v1804_v40, %v1581_v36 }
 0x19b   : > { %v1712_v3 = vadd.f32 %v1711_v56, %v1583_v44  ;;  %v975_v60 = vpop.f32.mrf.mxu2  ;;  %v5004_v44 = vld [vmem:[%s8308_s5 + $0x240] sm:$0xf] }
 0x19c   : > { %v976_v20 = vadd.f32 %v975_v60, %v5963_v21  ;;  %v1089_v5 = vpop.f32.mrf.mxu3  ;;  %v749_v19 = vpop.f32.mrf.mxu0 }
 0x19d   : > { %v1090_v23 = vadd.f32 %v1089_v5, %v5965_v29  ;;  %v750_v54 = vadd.f32 %v749_v19, %v5947_v61  ;;  %v863_v31 = vpop.f32.mrf.mxu1 }
 0x19e   : > { %vm1238_vm3 = vcmp.gt.f32.partialorder %v976_v20, 0.0  ;;  %v1416_v37 = vmul.f32 %v5969_v38, %v976_v20  ;;  %v864_v12 = vadd.f32 %v863_v31, %v5950_v1 }
 0x19f   : > { %vm1239_vm4 = vcmp.gt.f32.partialorder %v1090_v23, 0.0  ;;  %v1417_v43 = vmul.f32 %v5975_v53, %v1090_v23  ;;  %v1418_v49 = vmul.f32 %v5956_v7, %v750_v54  ;;  %vm1240_vm5 = vcmp.gt.f32.partialorder %v750_v54, 0.0 }
 0x1a0   : > { %v1584_v52 = vsel %vm1238_vm3, %v976_v20, %v1416_v37  ;;  %v1419_v28 = vmul.f32 %v5959_v14, %v864_v12  ;;  %vm1241_vm6 = vcmp.gt.f32.partialorder %v864_v12, 0.0  ;;  %v6410_v20 = vor.u32 %v5441_v50, %v5004_v44 }
 0x1a1   : > { %v1759_v62 = vadd.f32 %v1758_v55, %v1584_v52  ;;  %v1585_v32 = vsel %vm1239_vm4, %v1090_v23, %v1417_v43  ;;  %v1586_v5 = vsel %vm1240_vm5, %v750_v54, %v1418_v49 }
 0x1a2   : > { %v1806_v56 = vadd.f32 %v1805_v48, %v1585_v32  ;;  %8482 = vst [vmem:[#allocation40_spill] sm:$0xff] %v6410_v20  ;;  %v1587_v31 = vsel %vm1241_vm6, %v864_v12, %v1419_v28  ;;  %2650 = vmatpush.bf16.msrb.mxu2 %v6410_v20  ;;  %v1666_v43 = vadd.f32 %v1665_v27, %v1586_v5  ;;  %v5473_v27 = vld [vmem:[%s8308_s5 + $0x34c] sm:$0xf0] }
 0x1a3   : > { %v977_v0 = vpop.f32.mrf.mxu2  ;;  %v1713_v54 = vadd.f32 %v1712_v3, %v1587_v31 }
 0x1a4   : > { %v978_v40 = vadd.f32 %v977_v0, %v5963_v21  ;;  %v1091_v60 = vpop.f32.mrf.mxu3  ;;  %v752_v15 = vpop.f32.mrf.mxu0  ;;  %v5132_v0 = vld [vmem:[%s8308_s5 + $0x340] sm:$0xf] }
 0x1a5   : > { %v1092_v19 = vadd.f32 %v1091_v60, %v5965_v29  ;;  %v753_v36 = vadd.f32 %v752_v15, %v5947_v61  ;;  %v866_v23 = vpop.f32.mrf.mxu1  ;;  %v6430_v3 = vor.u32 %v5473_v27, %v5132_v0  ;;  %v4748_v60 = vld [vmem:[%s8308_s5 + $0x40] sm:$0xf]  ;;  %v5377_v15 = vld [vmem:[%s8308_s5 + $0x4c] sm:$0xf0] }
 0x1a6   : > { %v867_v37 = vadd.f32 %v866_v23, %v5950_v1  ;;  %v1420_v48 = vmul.f32 %v5969_v38, %v978_v40  ;;  %vm1242_vm9 = vcmp.gt.f32.partialorder %v978_v40, 0.0 }
 0x1a7   : > { %vm1244_vm7 = vcmp.gt.f32.partialorder %v753_v36, 0.0  ;;  %v1422_v55 = vmul.f32 %v5956_v7, %v753_v36  ;;  %v1421_v32 = vmul.f32 %v5975_v53, %v1092_v19  ;;  %vm1243_vm10 = vcmp.gt.f32.partialorder %v1092_v19, 0.0  ;;  %8483 = vst [vmem:[#allocation41_spill] sm:$0xff] %v6430_v3  ;;  %2663 = vmatpush.bf16.msrb.mxu3 %v6430_v3 }
 0x1a8   : > { %vm1245_vm8 = vcmp.gt.f32.partialorder %v867_v37, 0.0  ;;  %v1423_v52 = vmul.f32 %v5959_v14, %v867_v37  ;;  %v1588_v5 = vsel %vm1242_vm9, %v978_v40, %v1420_v48 }
 0x1a9   : > { %v1590_v49 = vsel %vm1244_vm7, %v753_v36, %v1422_v55  ;;  %v1589_v55 = vsel %vm1243_vm10, %v1092_v19, %v1421_v32  ;;  %v4876_v32 = vld [vmem:[%s8308_s5 + $0x140] sm:$0xf] }
 0x1aa   : > { %v6420_v12 = vadd.f32 %v1666_v43, %v1590_v49  ;;  %v1591_v28 = vsel %vm1245_vm8, %v867_v37, %v1423_v52  ;;  %v6439_v37 = vor.u32 %v5377_v15, %v4748_v60  ;;  %v1760_v49 = vadd.f32 %v1759_v62, %v1588_v5 }
 0x1ab   : > { %v6428_v44 = vadd.f32 %v1713_v54, %v1591_v28  ;;  %v980_v50 = vpop.f32.mrf.mxu2  ;;  %v1807_v48 = vadd.f32 %v1806_v56, %v1589_v55 }
 0x1ac   : > { %v981_v36 = vadd.f32 %v980_v50, %v5963_v21  ;;  %v1094_v23 = vpop.f32.mrf.mxu3  ;;  %v754_v31 = vpop.f32.mrf.mxu0  ;;  %8484 = vst [vmem:[#allocation42_spill] sm:$0xff] %v6439_v37  ;;  %2624 = vmatpush.bf16.msrb.mxu0 %v6439_v37  ;;  %v5409_v50 = vld [vmem:[%s8308_s5 + $0x14c] sm:$0xf0] }
 0x1ad   : > { %v1095_v43 = vadd.f32 %v1094_v23, %v5965_v29  ;;  %v868_v52 = vpop.f32.mrf.mxu1  ;;  %v6454_v15 = vor.u32 %v5409_v50, %v4876_v32 }
 0x1ae   : > { %vm1246_vm11 = vcmp.gt.f32.partialorder %v981_v36, 0.0  ;;  %v1424_v54 = vmul.f32 %v5969_v38, %v981_v36 }
 0x1af   : > { %vm1247_vm12 = vcmp.gt.f32.partialorder %v1095_v43, 0.0  ;;  %v1425_v40 = vmul.f32 %v5975_v53, %v1095_v43  ;;  %8485 = vst [vmem:[#allocation43_spill] sm:$0xff] %v6454_v15  ;;  %2637 = vmatpush.bf16.msrb.mxu1 %v6454_v15 }
 0x1b0   : > { %v1592_v28 = vsel %vm1246_vm11, %v981_v36, %v1424_v54  ;;  %v755_v54 = vadd.f32 %v754_v31, %v5947_v61 }
 0x1b1   : > { %v6446_v0 = vadd.f32 %v1760_v49, %v1592_v28  ;;  %v1593_v27 = vsel %vm1247_vm12, %v1095_v43, %v1425_v40  ;;  %v869_v49 = vadd.f32 %v868_v52, %v5950_v1 }
 0x1b2   : > { %v1808_v19 = vadd.f32 %v1807_v48, %v1593_v27  ;;  %v1426_v40 = vmul.f32 %v5956_v7, %v755_v54  ;;  %vm1248_vm13 = vcmp.gt.f32.partialorder %v755_v54, 0.0 }
 0x1b3   : > { %v982_v60 = vpop.f32.mrf.mxu2  ;;  %v1427_v48 = vmul.f32 %v5959_v14, %v869_v49  ;;  %vm1249_vm14 = vcmp.gt.f32.partialorder %v869_v49, 0.0 }
 0x1b4   : > { %v1096_v62 = vpop.f32.mrf.mxu3  ;;  %v757_v5 = vpop.f32.mrf.mxu0  ;;  %v983_v28 = vadd.f32 %v982_v60, %v5963_v21  ;;  %v1594_v37 = vsel %vm1248_vm13, %v755_v54, %v1426_v40 }
 0x1b5   : > { %v871_v23 = vpop.f32.mrf.mxu1  ;;  %v1097_v32 = vadd.f32 %v1096_v62, %v5965_v29  ;;  %v758_v50 = vadd.f32 %v757_v5, %v5947_v61  ;;  %v1595_v2 = vsel %vm1249_vm14, %v869_v49, %v1427_v48  ;;  %v1668_v54 = vadd.f32 %v6420_v12, %v1594_v37 }
 0x1b6   : > { %v872_v15 = vadd.f32 %v871_v23, %v5950_v1  ;;  %vm1250_vm15 = vcmp.gt.f32.partialorder %v983_v28, 0.0  ;;  %v1428_v33 = vmul.f32 %v5969_v38, %v983_v28  ;;  %v1715_v49 = vadd.f32 %v6428_v44, %v1595_v2 }
 0x1b7   : > { %vm1251_vm0 = vcmp.gt.f32.partialorder %v1097_v32, 0.0  ;;  %v1429_v60 = vmul.f32 %v5975_v53, %v1097_v32  ;;  %vm1252_vm1 = vcmp.gt.f32.partialorder %v758_v50, 0.0  ;;  %v1430_v62 = vmul.f32 %v5956_v7, %v758_v50 }
 0x1b8   : > { %v1431_v5 = vmul.f32 %v5959_v14, %v872_v15  ;;  %vm1253_vm2 = vcmp.gt.f32.partialorder %v872_v15, 0.0  ;;  %v1596_v48 = vsel %vm1250_vm15, %v983_v28, %v1428_v33 }
 0x1b9   : > { %v1597_v16 = vsel %vm1251_vm0, %v1097_v32, %v1429_v60  ;;  %v1598_v11 = vsel %vm1252_vm1, %v758_v50, %v1430_v62  ;;  %v1762_v33 = vadd.f32 %v6446_v0, %v1596_v48  ;;  %v4732_v62 = vld [vmem:[%s8308_s5 + $0x20] sm:$0xf]  ;;  %v5405_v0 = vld [vmem:[%s8308_s5 + $0x12c] sm:$0xf0] }
 0x1ba   : > { %v1809_v44 = vadd.f32 %v1808_v19, %v1597_v16  ;;  %v1669_v37 = vadd.f32 %v1668_v54, %v1598_v11  ;;  %v4860_v11 = vld [vmem:[%s8308_s5 + $0x120] sm:$0xf] }
 0x1bb   : > { %v985_v56 = vpop.f32.mrf.mxu2  ;;  %v6518_v54 = vor.u32 %v5405_v0, %v4860_v11  ;;  %v5395_v11 = vld [vmem:[%s8308_s5 + $0xe4] sm:$0xf] }
 0x1bc   : > { %v1099_v36 = vpop.f32.mrf.mxu3  ;;  %v759_v55 = vpop.f32.mrf.mxu0  ;;  %v986_v52 = vadd.f32 %v985_v56, %v5963_v21 }
 0x1bd   : > { %v873_v43 = vpop.f32.mrf.mxu1  ;;  %v1100_v42 = vadd.f32 %v1099_v36, %v5965_v29  ;;  %v760_v23 = vadd.f32 %v759_v55, %v5947_v61  ;;  %v1599_v55 = vsel %vm1253_vm2, %v872_v15, %v1431_v5  ;;  %8488 = vst [vmem:[#allocation46_spill] sm:$0xff] %v6518_v54  ;;  %2638 = vmatpush.bf16.msrb.mxu1 %v6518_v54 }
 0x1be   : > { %v874_v41 = vadd.f32 %v873_v43, %v5950_v1  ;;  %v1432_v56 = vmul.f32 %v5969_v38, %v986_v52  ;;  %vm1254_vm3 = vcmp.gt.f32.partialorder %v986_v52, 0.0  ;;  %v1716_v28 = vadd.f32 %v1715_v49, %v1599_v55 }
 0x1bf   : > { %v1433_v43 = vmul.f32 %v5975_v53, %v1100_v42  ;;  %v1434_v63 = vmul.f32 %v5956_v7, %v760_v23  ;;  %vm1255_vm4 = vcmp.gt.f32.partialorder %v1100_v42, 0.0  ;;  %vm1256_vm5 = vcmp.gt.f32.partialorder %v760_v23, 0.0 }
 0x1c0   : > { %v1435_v59 = vmul.f32 %v5959_v14, %v874_v41  ;;  %v1600_v2 = vsel %vm1254_vm3, %v986_v52, %v1432_v56  ;;  %vm1257_vm6 = vcmp.gt.f32.partialorder %v874_v41, 0.0  ;;  %v5373_v52 = vld [vmem:[%s8308_s5 + $0x2c] sm:$0xf0] }
 0x1c1   : > { %v1601_v32 = vsel %vm1255_vm4, %v1100_v42, %v1433_v43  ;;  %v1602_v50 = vsel %vm1256_vm5, %v760_v23, %v1434_v63  ;;  %v5437_v63 = vld [vmem:[%s8308_s5 + $0x22c] sm:$0xf0]  ;;  %v5116_v23 = vld [vmem:[%s8308_s5 + $0x320] sm:$0xf] }
 0x1c2   : > { %v1603_v60 = vsel %vm1257_vm6, %v874_v41, %v1435_v59  ;;  %v4988_v59 = vld [vmem:[%s8308_s5 + $0x220] sm:$0xf]  ;;  %v6503_v41 = vor.u32 %v5373_v52, %v4732_v62  ;;  %v5469_v56 = vld [vmem:[%s8308_s5 + $0x32c] sm:$0xf0]  ;;  %v6520_v49 = vadd.f32 %v1809_v44, %v1601_v32  ;;  %v1670_v43 = vadd.f32 %v1669_v37, %v1602_v50 }
 0x1c3   : > { %v987_v27 = vpop.f32.mrf.mxu2  ;;  %v6525_v55 = vor.u32 %v5469_v56, %v5116_v23  ;;  %v5369_v44 = vld [vmem:[%s8308_s5 + $0xc] sm:$0xf0]  ;;  %v4844_v37 = vld [vmem:[%s8308_s5 + $0x100] sm:$0xf]  ;;  %v4958_v56 = vld [vmem:[%s8308_s5 + $0x1f0] sm:$0xf0] }
 0x1c4   : > { %v1101_v3 = vpop.f32.mrf.mxu3  ;;  %v762_v20 = vpop.f32.mrf.mxu0  ;;  %v988_v25 = vadd.f32 %v987_v27, %v5963_v21  ;;  %v1763_v27 = vadd.f32 %v1762_v33, %v1600_v2  ;;  %8486 = vst [vmem:[#allocation44_spill] sm:$0xff] %v6503_v41  ;;  %2625 = vmatpush.bf16.msrb.mxu0 %v6503_v41  ;;  %v6528_v2 = vadd.f32 %v1716_v28, %v1603_v60  ;;  %v5401_v52 = vld [vmem:[%s8308_s5 + $0x10c] sm:$0xf0] }
 0x1c5   : > { %v876_v31 = vpop.f32.mrf.mxu1  ;;  %v1102_v15 = vadd.f32 %v1101_v3, %v5965_v29  ;;  %v763_v3 = vadd.f32 %v762_v20, %v5947_v61  ;;  %8489 = vst [vmem:[#allocation47_spill] sm:$0xff] %v6525_v55  ;;  %2664 = vmatpush.bf16.msrb.mxu3 %v6525_v55  ;;  %v6566_v23 = vor.u32 %v5401_v52, %v4844_v37  ;;  %v4972_v52 = vld [vmem:[%s8308_s5 + $0x200] sm:$0xf] }
 0x1c6   : > { %vm1258_vm7 = vcmp.gt.f32.partialorder %v988_v25, 0.0  ;;  %v1436_v16 = vmul.f32 %v5969_v38, %v988_v25  ;;  %v877_v42 = vadd.f32 %v876_v31, %v5950_v1  ;;  %v6510_v31 = vor.u32 %v5437_v63, %v4988_v59  ;;  %v4830_v59 = vld [vmem:[%s8308_s5 + $0xf0] sm:$0xf0]  ;;  %v5427_v63 = vld [vmem:[%s8308_s5 + $0x1e4] sm:$0xf] }
 0x1c7   : > { %vm1259_vm8 = vcmp.gt.f32.partialorder %v1102_v15, 0.0  ;;  %v1437_v33 = vmul.f32 %v5975_v53, %v1102_v15  ;;  %v1438_v32 = vmul.f32 %v5956_v7, %v763_v3  ;;  %vm1260_vm9 = vcmp.gt.f32.partialorder %v763_v3, 0.0  ;;  %2639 = vmatpush.bf16.msrb.mxu1 %v6566_v23 }
 0x1c8   : > { %8487 = vst [vmem:[#allocation45_spill] sm:$0xff] %v6510_v31  ;;  %2651 = vmatpush.bf16.msrb.mxu2 %v6510_v31  ;;  %v1604_v28 = vsel %vm1258_vm7, %v988_v25, %v1436_v16  ;;  %v1439_v50 = vmul.f32 %v5959_v14, %v877_v42  ;;  %vm1261_vm10 = vcmp.gt.f32.partialorder %v877_v42, 0.0  ;;  %v6572_v55 = vor.u32 %v5395_v11, %v4830_v59 }
 0x1c9   : > { %v1606_v31 = vsel %vm1260_vm9, %v763_v3, %v1438_v32  ;;  %v6581_v37 = vor.u32 %v5427_v63, %v4958_v56  ;;  %v5423_v3 = vld [vmem:[%s8308_s5 + $0x1c4] sm:$0xf]  ;;  %v5100_v63 = vld [vmem:[%s8308_s5 + $0x300] sm:$0xf]  ;;  %v5465_v56 = vld [vmem:[%s8308_s5 + $0x30c] sm:$0xf0] }
 0x1ca   : > { %8490 = vst [vmem:[#allocation48_spill] sm:$0xff] %v6572_v55  ;;  %v1607_v54 = vsel %vm1261_vm10, %v877_v42, %v1439_v50  ;;  %v4942_v50 = vld [vmem:[%s8308_s5 + $0x1d0] sm:$0xf0] }
 0x1cb   : > { %v990_v40 = vpop.f32.mrf.mxu2  ;;  %8491 = vst [vmem:[#allocation49_spill] sm:$0xff] %v6581_v37  ;;  %2684 = vmatpush.bf16.msra.mxu1 %v6581_v37 }
 0x1cc   : > { %v1104_v36 = vpop.f32.mrf.mxu3  ;;  %v764_v24 = vpop.f32.mrf.mxu0  ;;  %v991_v19 = vadd.f32 %v990_v40, %v5963_v21 }
 0x1cd   : > { %v6481_v12 = vpop.f32.mrf.mxu1  ;;  %v1105_v20 = vadd.f32 %v1104_v36, %v5965_v29  ;;  %v765_v40 = vadd.f32 %v764_v24, %v5947_v61  ;;  %v4716_v24 = vld [vmem:[%s8308_s5] sm:$0xf] }
 0x1ce   : > { %v6548_v60 = vor.u32 %v5369_v44, %v4716_v24  ;;  %v1440_v25 = vmul.f32 %v5969_v38, %v991_v19  ;;  %vm1262_vm11 = vcmp.gt.f32.partialorder %v991_v19, 0.0  ;;  %v1764_v24 = vadd.f32 %v1763_v27, %v1604_v28  ;;  %v5391_v27 = vld [vmem:[%s8308_s5 + $0xc4] sm:$0xf] }
 0x1cf   : > { %v1441_v16 = vmul.f32 %v5975_v53, %v1105_v20  ;;  %vm1263_vm12 = vcmp.gt.f32.partialorder %v1105_v20, 0.0  ;;  %v1442_v0 = vmul.f32 %v5956_v7, %v765_v40  ;;  %v1605_v44 = vsel %vm1259_vm8, %v1102_v15, %v1437_v33  ;;  %v4814_v15 = vld [vmem:[%s8308_s5 + $0xd0] sm:$0xf0] }
 0x1d0   : > { %2626 = vmatpush.bf16.msrb.mxu0 %v6548_v60  ;;  %vm1264_vm13 = vcmp.gt.f32.partialorder %v765_v40, 0.0  ;;  %v6578_v41 = vadd.f32 %v6481_v12, %v5950_v1  ;;  %v1608_v42 = vsel %vm1262_vm11, %v991_v19, %v1440_v25  ;;  %v6598_v32 = vor.u32 %v5391_v27, %v4814_v15  ;;  %v5433_v19 = vld [vmem:[%s8308_s5 + $0x20c] sm:$0xf0] }
 0x1d1   : > { %v1609_v12 = vsel %vm1263_vm12, %v1105_v20, %v1441_v16  ;;  %v1610_v20 = vsel %vm1264_vm13, %v765_v40, %v1442_v0  ;;  %v6612_v16 = vor.u32 %v5423_v3, %v4942_v50  ;;  %v6614_v59 = vor.u32 %v5433_v19, %v4972_v52  ;;  %v5459_v40 = vld [vmem:[%s8308_s5 + $0x2e4] sm:$0xf]  ;;  %v5086_v50 = vld [vmem:[%s8308_s5 + $0x2f0] sm:$0xf0] }
 0x1d2   : > { %8492 = vst [vmem:[#allocation50_spill] sm:$0xff] %v6598_v32  ;;  %v1671_v0 = vadd.f32 %v1670_v43, %v1606_v31  ;;  %v6630_v3 = vor.u32 %v5465_v56, %v5100_v63  ;;  %v5491_v52 = vld [vmem:[%s8308_s5 + $0x3e4] sm:$0xf]  ;;  %v1718_v31 = vadd.f32 %v6528_v2, %v1607_v54  ;;  %v6642_v43 = vadd.f32 %v1764_v24, %v1608_v42  ;;  %v4798_v63 = vld [vmem:[%s8308_s5 + $0xb0] sm:$0xf0] }
 0x1d3   : > { %v992_v5 = vpop.f32.mrf.mxu2  ;;  %8493 = vst [vmem:[#allocation51_spill] sm:$0xff] %v6612_v16  ;;  %2652 = vmatpush.bf16.msrb.mxu2 %v6614_v59  ;;  %v5387_v19 = vld [vmem:[%s8308_s5 + $0xa4] sm:$0xf]  ;;  %vm1265_vm14 = vcmp.gt.f32.partialorder %v6578_v41, 0.0  ;;  %v4926_v24 = vld [vmem:[%s8308_s5 + $0x1b0] sm:$0xf0]  ;;  %2685 = vmatpush.bf16.msra.mxu1 %v6612_v16 }
 0x1d4   : > { %v1106_v48 = vpop.f32.mrf.mxu3  ;;  %v6523_v36 = vpop.f32.mrf.mxu0  ;;  %v6595_v33 = vadd.f32 %v992_v5, %v5963_v21  ;;  %2671 = vmatpush.bf16.msra.mxu0 %v6572_v55  ;;  %8494 = vst [vmem:[#allocation52_spill] sm:$0xff] %v6614_v59  ;;  %v6655_v37 = vadd.f32 %v1671_v0, %v1610_v20  ;;  %2665 = vmatpush.bf16.msrb.mxu3 %v6630_v3  ;;  %v5419_v2 = vld [vmem:[%s8308_s5 + $0x1a4] sm:$0xf]  ;;  %v4910_v59 = vld [vmem:[%s8308_s5 + $0x190] sm:$0xf0] }
 0x1d5   : > { %v6531_v62 = vpop.f32.mrf.mxu1  ;;  %v1107_v5 = vadd.f32 %v1106_v48, %v5965_v29  ;;  %v1811_v48 = vadd.f32 %v6520_v49, %v1605_v44  ;;  %v6628_v27 = vadd.f32 %v6523_v36, %v5947_v61  ;;  %8495 = vst [vmem:[#allocation53_spill] sm:$0xff] %v6630_v3  ;;  %v5214_v49 = vld [vmem:[%s8308_s5 + $0x3f0] sm:$0xf0]  ;;  %v1443_v36 = vmul.f32 %v5959_v14, %v6578_v41 }
 0x1d6   : > { %v6647_v44 = vor.u32 %v5459_v40, %v5086_v50  ;;  %v1444_v54 = vmul.f32 %v5969_v38, %v6595_v33  ;;  %vm1266_vm15 = vcmp.gt.f32.partialorder %v6595_v33, 0.0  ;;  %v6674_v20 = vor.u32 %v5491_v52, %v5214_v49  ;;  %v5455_v40 = vld [vmem:[%s8308_s5 + $0x2c4] sm:$0xf]  ;;  %v5198_v52 = vld [vmem:[%s8308_s5 + $0x3d0] sm:$0xf0] }
 0x1d7   : > { %v1812_v56 = vadd.f32 %v1811_v48, %v1609_v12  ;;  %v1445_v42 = vmul.f32 %v5975_v53, %v1107_v5  ;;  %v882_v12 = vadd.f32 %v6531_v62, %v5950_v1  ;;  %v5070_v48 = vld [vmem:[%s8308_s5 + $0x2d0] sm:$0xf0]  ;;  %vm1267_vm0 = vcmp.gt.f32.partialorder %v1107_v5, 0.0  ;;  %v5487_v50 = vld [vmem:[%s8308_s5 + $0x3c4] sm:$0xf] }
 0x1d8   : > { %8496 = vst [vmem:[#allocation54_spill] sm:$0xff] %v6647_v44  ;;  %2672 = vmatpush.bf16.msra.mxu0 %v6598_v32  ;;  %2697 = vmatpush.bf16.msra.mxu2 %v6647_v44  ;;  %vm1268_vm1 = vcmp.gt.f32.partialorder %v6628_v27, 0.0  ;;  %v6684_v62 = vor.u32 %v5387_v19, %v4798_v63  ;;  %v1611_v49 = vsel %vm1265_vm14, %v6578_v41, %v1443_v36  ;;  %v5383_v19 = vld [vmem:[%s8308_s5 + $0x84] sm:$0xf]  ;;  %v4782_v63 = vld [vmem:[%s8308_s5 + $0x90] sm:$0xf0] }
 0x1d9   : > { %8497 = vst [vmem:[#allocation55_spill] sm:$0xff] %v6674_v20  ;;  %v1446_v44 = vmul.f32 %v5956_v7, %v6628_v27  ;;  %2710 = vmatpush.bf16.msra.mxu3 %v6674_v20  ;;  %v5415_v41 = vld [vmem:[%s8308_s5 + $0x184] sm:$0xf]  ;;  %v6718_v20 = vor.u32 %v5383_v19, %v4782_v63  ;;  %v1613_v16 = vsel %vm1267_vm0, %v1107_v5, %v1445_v42  ;;  %vm1269_vm2 = vcmp.gt.f32.partialorder %v882_v12, 0.0  ;;  %v5182_v19 = vld [vmem:[%s8308_s5 + $0x3b0] sm:$0xf0] }
 0x1da   : > { %8498 = vst [vmem:[#allocation56_spill] sm:$0xff] %v6684_v62  ;;  %v1447_v32 = vmul.f32 %v5959_v14, %v882_v12  ;;  %v5483_v5 = vld [vmem:[%s8308_s5 + $0x3a4] sm:$0xf]  ;;  %v1719_v63 = vadd.f32 %v1718_v31, %v1611_v49 }
 0x1db   : > { %v995_v28 = vpop.f32.mrf.mxu2  ;;  %8502 = vst [vmem:[#allocation60_spill] sm:$0xff] %v6718_v20  ;;  %v1614_v31 = vsel %vm1268_vm1, %v6628_v27, %v1446_v44  ;;  %v5411_v49 = vld [vmem:[%s8308_s5 + $0x164] sm:$0xf]  ;;  %v5038_v44 = vld [vmem:[%s8308_s5 + $0x290] sm:$0xf0] }
 0x1dc   : > { %v1109_v11 = vpop.f32.mrf.mxu3  ;;  %v769_v25 = vpop.f32.mrf.mxu0  ;;  %v996_v0 = vadd.f32 %v995_v28, %v5963_v21  ;;  %v6699_v28 = vor.u32 %v5419_v2, %v4926_v24  ;;  %2673 = vmatpush.bf16.msra.mxu0 %v6684_v62  ;;  %v6714_v2 = vor.u32 %v5455_v40, %v5070_v48  ;;  %v6716_v24 = vor.u32 %v5487_v50, %v5198_v52  ;;  %v5451_v48 = vld [vmem:[%s8308_s5 + $0x2a4] sm:$0xf]  ;;  %v5054_v50 = vld [vmem:[%s8308_s5 + $0x2b0] sm:$0xf0] }
 0x1dd   : > { %v883_v15 = vpop.f32.mrf.mxu1  ;;  %v1110_v3 = vadd.f32 %v1109_v11, %v5965_v29  ;;  %v1612_v11 = vsel %vm1266_vm15, %v6595_v33, %v1444_v54  ;;  %v6726_v55 = vadd.f32 %v769_v25, %v5947_v61  ;;  %v6729_v40 = vor.u32 %v5415_v41, %v4910_v59 }
 0x1de   : > { %8499 = vst [vmem:[#allocation57_spill] sm:$0xff] %v6699_v28  ;;  %2686 = vmatpush.bf16.msra.mxu1 %v6699_v28  ;;  %v1448_v25 = vmul.f32 %v5969_v38, %v996_v0  ;;  %v6742_v42 = vadd.f32 %v883_v15, %v5950_v1  ;;  %2698 = vmatpush.bf16.msra.mxu2 %v6714_v2  ;;  %vm1270_vm3 = vcmp.gt.f32.partialorder %v996_v0, 0.0  ;;  %v5379_v15 = vld [vmem:[%s8308_s5 + $0x64] sm:$0xf] }
 0x1df   : > { %8500 = vst [vmem:[#allocation58_spill] sm:$0xff] %v6714_v2  ;;  %v6745_v52 = vor.u32 %v5451_v48, %v5054_v50  ;;  %v1449_v41 = vmul.f32 %v5975_v53, %v1110_v3  ;;  %2711 = vmatpush.bf16.msra.mxu3 %v6716_v24  ;;  %v6752_v28 = vor.u32 %v5483_v5, %v5182_v19  ;;  %v4766_v48 = vld [vmem:[%s8308_s5 + $0x70] sm:$0xf0]  ;;  %vm1271_vm4 = vcmp.gt.f32.partialorder %v1110_v3, 0.0 }
 0x1e0   : > { %8501 = vst [vmem:[#allocation59_spill] sm:$0xff] %v6716_v24  ;;  %v1766_v50 = vadd.f32 %v6642_v43, %v1612_v11  ;;  %v1813_v2 = vadd.f32 %v1812_v56, %v1613_v16  ;;  %2674 = vmatpush.bf16.msra.mxu0 %v6718_v20  ;;  %v4894_v5 = vld [vmem:[%s8308_s5 + $0x170] sm:$0xf0]  ;;  %v1615_v19 = vsel %vm1269_vm2, %v882_v12, %v1447_v32  ;;  %vm1272_vm5 = vcmp.gt.f32.partialorder %v6726_v55, 0.0  ;;  %v5447_v43 = vld [vmem:[%s8308_s5 + $0x284] sm:$0xf] }
 0x1e1   : > { %8503 = vst [vmem:[#allocation61_spill] sm:$0xff] %v6729_v40  ;;  %v1450_v16 = vmul.f32 %v5956_v7, %v6726_v55  ;;  %v6776_v27 = vor.u32 %v5379_v15, %v4766_v48  ;;  %v1616_v56 = vsel %vm1270_vm3, %v996_v0, %v1448_v25  ;;  %vm1273_vm6 = vcmp.gt.f32.partialorder %v6742_v42, 0.0  ;;  %v5479_v11 = vld [vmem:[%s8308_s5 + $0x384] sm:$0xf]  ;;  %v5166_v15 = vld [vmem:[%s8308_s5 + $0x390] sm:$0xf0] }
 0x1e2   : > { %8504 = vst [vmem:[#allocation62_spill] sm:$0xff] %v6745_v52  ;;  %2687 = vmatpush.bf16.msra.mxu1 %v6729_v40  ;;  %v1451_v32 = vmul.f32 %v5959_v14, %v6742_v42  ;;  %2699 = vmatpush.bf16.msra.mxu2 %v6745_v52  ;;  %v6789_v12 = vor.u32 %v5411_v49, %v4894_v5  ;;  %v5375_v5 = vld [vmem:[%s8308_s5 + $0x44] sm:$0xf]  ;;  %v4750_v52 = vld [vmem:[%s8308_s5 + $0x50] sm:$0xf0] }
 0x1e3   : > { %v997_v36 = vpop.f32.mrf.mxu2  ;;  %8505 = vst [vmem:[#allocation63_spill] sm:$0xff] %v6752_v28  ;;  %v1617_v48 = vsel %vm1271_vm4, %v1110_v3, %v1449_v41  ;;  %2712 = vmatpush.bf16.msra.mxu3 %v6752_v28  ;;  %v6805_v49 = vor.u32 %v5447_v43, %v5038_v44  ;;  %v5407_v3 = vld [vmem:[%s8308_s5 + $0x144] sm:$0xf]  ;;  %v6820_v41 = vor.u32 %v5479_v11, %v5166_v15  ;;  %v4878_v44 = vld [vmem:[%s8308_s5 + $0x150] sm:$0xf0] }
 0x1e4   : > { %v1111_v33 = vpop.f32.mrf.mxu3  ;;  %v772_v54 = vpop.f32.mrf.mxu0  ;;  %8506 = vst [vmem:[#allocation64_spill] sm:$0xff] %v6776_v27  ;;  %v6799_v0 = vadd.f32 %v997_v36, %v5963_v21  ;;  %2675 = vmatpush.bf16.msra.mxu0 %v6776_v27  ;;  %v6822_v43 = vor.u32 %v5375_v5, %v4750_v52  ;;  %v1673_v28 = vadd.f32 %v6655_v37, %v1614_v31  ;;  %v5443_v52 = vld [vmem:[%s8308_s5 + $0x264] sm:$0xf]  ;;  %v5022_v11 = vld [vmem:[%s8308_s5 + $0x270] sm:$0xf0] }
 0x1e5   : > { %v886_v59 = vpop.f32.mrf.mxu1  ;;  %8507 = vst [vmem:[#allocation65_spill] sm:$0xff] %v6789_v12  ;;  %v6802_v25 = vadd.f32 %v1111_v33, %v5965_v29  ;;  %v6817_v36 = vadd.f32 %v772_v54, %v5947_v61  ;;  %v1720_v24 = vadd.f32 %v1719_v63, %v1615_v19  ;;  %v6830_v54 = vor.u32 %v5407_v3, %v4878_v44  ;;  %v5475_v37 = vld [vmem:[%s8308_s5 + $0x364] sm:$0xf]  ;;  %v5150_v5 = vld [vmem:[%s8308_s5 + $0x370] sm:$0xf0] }
 0x1e6   : > { %8508 = vst [vmem:[#allocation66_spill] sm:$0xff] %v6805_v49  ;;  %v887_v40 = vadd.f32 %v886_v59, %v5950_v1  ;;  %2688 = vmatpush.bf16.msra.mxu1 %v6789_v12  ;;  %v6841_v63 = vadd.f32 %v1766_v50, %v1616_v56  ;;  %v6843_v59 = vadd.f32 %v1813_v2, %v1617_v48  ;;  %vm1274_vm7 = vcmp.gt.f32.partialorder %v6799_v0, 0.0  ;;  %v4734_v56 = vld [vmem:[%s8308_s5 + $0x30] sm:$0xf0] }
 0x1e7   : > { %8509 = vst [vmem:[#allocation67_spill] sm:$0xff] %v6820_v41  ;;  %v1618_v31 = vsel %vm1272_vm5, %v6726_v55, %v1450_v16  ;;  %2700 = vmatpush.bf16.msra.mxu2 %v6805_v49  ;;  %v6849_v15 = vor.u32 %v5443_v52, %v5022_v11  ;;  %v1619_v50 = vsel %vm1273_vm6, %v6742_v42, %v1451_v32  ;;  %v5371_v16 = vld [vmem:[%s8308_s5 + $0x24] sm:$0xf]  ;;  %vm1275_vm8 = vcmp.gt.f32.partialorder %v6802_v25, 0.0  ;;  %v4862_v48 = vld [vmem:[%s8308_s5 + $0x130] sm:$0xf0] }
 0x1e8   : > { %8510 = vst [vmem:[#allocation68_spill] sm:$0xff] %v6822_v43  ;;  %v1452_v2 = vmul.f32 %v5969_v38, %v6799_v0  ;;  %2713 = vmatpush.bf16.msra.mxu3 %v6820_v41  ;;  %v6861_v55 = vor.u32 %v5475_v37, %v5150_v5  ;;  %v1453_v42 = vmul.f32 %v5975_v53, %v6802_v25  ;;  %vm1276_vm9 = vcmp.gt.f32.partialorder %v6817_v36, 0.0  ;;  %v5403_v32 = vld [vmem:[%s8308_s5 + $0x124] sm:$0xf]  ;;  %v5006_v41 = vld [vmem:[%s8308_s5 + $0x250] sm:$0xf0] }
 0x1e9   : > { %8511 = vst [vmem:[#allocation69_spill] sm:$0xff] %v6830_v54  ;;  %2676 = vmatpush.bf16.msra.mxu0 %v6822_v43  ;;  %v5582_v3 = vmov 336.0   ;;  %v1454_v44 = vmul.f32 %v5956_v7, %v6817_v36  ;;  %v1455_v52 = vmul.f32 %v5959_v14, %v887_v40  ;;  %v6885_v37 = vor.u32 %v5371_v16, %v4734_v56  ;;  %v5439_v5 = vld [vmem:[%s8308_s5 + $0x244] sm:$0xf]  ;;  %v5134_v56 = vld [vmem:[%s8308_s5 + $0x350] sm:$0xf0] }
 0x1ea   : > { %8512 = vst [vmem:[#allocation70_spill] sm:$0xff] %v6849_v15  ;;  %5535 = vrcp.f32 %v5582_v3  ;;  %2689 = vmatpush.bf16.msra.mxu1 %v6830_v54  ;;  %vm1277_vm10 = vcmp.gt.f32.partialorder %v887_v40, 0.0  ;;  %v5471_v16 = vld [vmem:[%s8308_s5 + $0x344] sm:$0xf]  ;;  %v1674_v54 = vadd.f32 %v1673_v28, %v1618_v31  ;;  %v1721_v43 = vadd.f32 %v1720_v24, %v1619_v50  ;;  %v4846_v50 = vld [vmem:[%s8308_s5 + $0x110] sm:$0xf0] }
 0x1eb   : > { %v1000_v33 = vpop.f32.mrf.mxu2  ;;  %8513 = vst [vmem:[#allocation71_spill] sm:$0xff] %v6861_v55  ;;  %2701 = vmatpush.bf16.msra.mxu2 %v6849_v15  ;;  %v1621_v28 = vsel %vm1275_vm8, %v6802_v25, %v1453_v42 }
 0x1ec   : > { %v1114_v20 = vpop.f32.mrf.mxu3  ;;  %v774_v62 = vpop.f32.mrf.mxu0  ;;  %8514 = vst [vmem:[#allocation72_spill] sm:$0xff] %v6885_v37  ;;  %v1001_v3 = vadd.f32 %v1000_v33, %v5963_v21  ;;  %2714 = vmatpush.bf16.msra.mxu3 %v6861_v55  ;;  %v6906_v33 = vor.u32 %v5439_v5, %v5006_v41  ;;  %v6924_v41 = vor.u32 %v5471_v16, %v5134_v56 }
 0x1ed   : > { %v888_v19 = vpop.f32.mrf.mxu1  ;;  %v775_v11 = vadd.f32 %v774_v62, %v5947_v61  ;;  %v6896_v62 = vor.u32 %v5403_v32, %v4862_v48  ;;  %v1115_v12 = vadd.f32 %v1114_v20, %v5965_v29  ;;  %v4718_v32 = vld [vmem:[%s8308_s5 + $0x10] sm:$0xf0]  ;;  %v5399_v48 = vld [vmem:[%s8308_s5 + $0x104] sm:$0xf]  ;;  %v1620_v20 = vsel %vm1274_vm7, %v6799_v0, %v1452_v2  ;;  %2677 = vmatpush.bf16.msra.mxu0 %v6885_v37 }
 0x1ee   : > { %v889_v49 = vadd.f32 %v888_v19, %v5950_v1  ;;  %8516 = vst [vmem:[#allocation74_spill] sm:$0xff] %v6906_v33  ;;  %v5367_v19 = vld [vmem:[%s8308_s5 + $0x4] sm:$0xf]  ;;  %v1622_v5 = vsel %vm1276_vm9, %v6817_v36, %v1454_v44  ;;  %v1623_v0 = vsel %vm1277_vm10, %v887_v40, %v1455_v52  ;;  %v6937_v16 = vor.u32 %v5399_v48, %v4846_v50  ;;  %v4990_v48 = vld [vmem:[%s8308_s5 + $0x230] sm:$0xf0] }
 0x1ef   : > { %8515 = vst [vmem:[#allocation73_spill] sm:$0xff] %v6896_v62  ;;  %v6926_v31 = vor.u32 %v5367_v19, %v4718_v32  ;;  %v1458_v2 = vmul.f32 %v5956_v7, %v775_v11  ;;  %2690 = vmatpush.bf16.msra.mxu1 %v6896_v62  ;;  %v1456_v19 = vmul.f32 %v5969_v38, %v1001_v3  ;;  %vm1280_vm11 = vcmp.gt.f32.partialorder %v775_v11, 0.0  ;;  %v5435_v52 = vld [vmem:[%s8308_s5 + $0x224] sm:$0xf] }
 0x1f0   : > { %8517 = vst [vmem:[#allocation75_spill] sm:$0xff] %v6924_v41  ;;  %v6939_v56 = vpop.eup %5535  ;;  %v1459_v32 = vmul.f32 %v5959_v14, %v889_v49  ;;  %2702 = vmatpush.bf16.msra.mxu2 %v6906_v33  ;;  %vm1278_vm12 = vcmp.gt.f32.partialorder %v1001_v3, 0.0  ;;  %v1457_v40 = vmul.f32 %v5975_v53, %v1115_v12  ;;  %vm1281_vm13 = vcmp.gt.f32.partialorder %v889_v49, 0.0  ;;  %2715 = vmatpush.bf16.msra.mxu3 %v6924_v41 }
 0x1f1   : > { %8518 = vst [vmem:[#allocation76_spill] sm:$0xff] %v6926_v31  ;;  %v6955_v50 = vadd.f32 %v6841_v63, %v1620_v20  ;;  %vm1279_vm14 = vcmp.gt.f32.partialorder %v1115_v12, 0.0  ;;  %2678 = vmatpush.bf16.msra.mxu0 %v6926_v31  ;;  %v1722_v33 = vadd.f32 %v1721_v43, %v1623_v0  ;;  %v1626_v41 = vsel %vm1280_vm11, %v775_v11, %v1458_v2  ;;  %v5467_v63 = vld [vmem:[%s8308_s5 + $0x324] sm:$0xf] }
 0x1f2   : > { %8519 = vst [vmem:[#allocation77_spill] sm:$0xff] %v6937_v16  ;;  %v6964_v15 = vmul.f32 336.0, %v6939_v56  ;;  %v1624_v20 = vsel %vm1278_vm12, %v1001_v3, %v1456_v19  ;;  %v6975_v11 = vor.u32 %v5435_v52, %v4990_v48  ;;  %v1625_v0 = vsel %vm1279_vm14, %v1115_v12, %v1457_v40  ;;  %v5102_v19 = vld [vmem:[%s8308_s5 + $0x310] sm:$0xf0] }
 0x1f3   : > { %v1002_v24 = vpop.f32.mrf.mxu2  ;;  %2691 = vmatpush.bf16.msra.mxu1 %v6937_v16  ;;  %vm1831_vm9 = vweird.f32 %v6939_v56  ;;  %vm2831_vm10 = vcmask 1040384  }
 0x1f4   : > { %v1116_v25 = vpop.f32.mrf.mxu3  ;;  %v777_v42 = vpop.f32.mrf.mxu0  ;;  %v1003_v2 = vadd.f32 %v1002_v24, %v5963_v21  ;;  %2703 = vmatpush.bf16.msra.mxu2 %v6975_v11  ;;  %v1828_v62 = vsub.f32 1.0, %v6964_v15 }
 0x1f5   : > { %v778_v55 = vadd.f32 %v777_v42, %v5947_v61  ;;  %v891_v36 = vpop.f32.mrf.mxu1  ;;  %v6958_v42 = vadd.f32 %v6843_v59, %v1621_v28  ;;  %v5118_v59 = vld [vmem:[%s8308_s5 + $0x330] sm:$0xf0]  ;;  %v5431_v28 = vld [vmem:[%s8308_s5 + $0x204] sm:$0xf]  ;;  %v1117_v52 = vadd.f32 %v1116_v25, %v5965_v29 }
 0x1f6   : > { %v892_v44 = vadd.f32 %v891_v36, %v5950_v1  ;;  %v1675_v36 = vadd.f32 %v1674_v54, %v1622_v5  ;;  %v1627_v54 = vsel %vm1281_vm13, %v889_v49, %v1459_v32  ;;  %v4974_v5 = vld [vmem:[%s8308_s5 + $0x210] sm:$0xf0]  ;;  %v5463_v49 = vld [vmem:[%s8308_s5 + $0x304] sm:$0xf]  ;;  %v6993_v12 = vor.u32 %v5467_v63, %v5118_v59 }
 0x1f7   : > { %v1462_v43 = vmul.f32 %v5956_v7, %v778_v55  ;;  %vm1284_vm15 = vcmp.gt.f32.partialorder %v778_v55, 0.0  ;;  %v1723_v24 = vadd.f32 %v1722_v33, %v1627_v54  ;;  %v6997_v37 = vor.u32 %v5431_v28, %v4974_v5 }
 0x1f8   : > { %v1463_v3 = vmul.f32 %v5959_v14, %v892_v44  ;;  %v1676_v32 = vadd.f32 %v1675_v36, %v1626_v41  ;;  %vm1285_vm0 = vcmp.gt.f32.partialorder %v892_v44, 0.0  ;;  %2716 = vmatpush.bf16.msra.mxu3 %v6993_v12  ;;  %v7003_v63 = vor.u32 %v5463_v49, %v5102_v19 }
 0x1f9   : > { %v1630_v27 = vsel %vm1284_vm15, %v778_v55, %v1462_v43  ;;  %vm1282_vm1 = vcmp.gt.f32.partialorder %v1003_v2, 0.0  ;;  %v1460_v33 = vmul.f32 %v5969_v38, %v1003_v2  ;;  %vm1283_vm2 = vcmp.gt.f32.partialorder %v1117_v52, 0.0  ;;  %2704 = vmatpush.bf16.msra.mxu2 %v6997_v37 }
 0x1fa   : > { %v1631_v59 = vsel %vm1285_vm0, %v892_v44, %v1463_v3  ;;  %v1461_v54 = vmul.f32 %v5975_v53, %v1117_v52 }
 0x1fb   : > { %v1005_v48 = vpop.f32.mrf.mxu2  ;;  %v1724_v28 = vadd.f32 %v1723_v24, %v1631_v59  ;;  %v1628_v3 = vsel %vm1282_vm1, %v1003_v2, %v1460_v33 }
 0x1fc   : > { %v1006_v40 = vadd.f32 %v1005_v48, %v5963_v21  ;;  %v1119_v16 = vpop.f32.mrf.mxu3  ;;  %v779_v31 = vpop.f32.mrf.mxu0  ;;  %2717 = vmatpush.bf16.msra.mxu3 %v7003_v63  ;;  %v1769_v48 = vadd.f32 %v6955_v50, %v1624_v20 }
 0x1fd   : > { %v1120_v41 = vadd.f32 %v1119_v16, %v5965_v29  ;;  %v780_v25 = vadd.f32 %v779_v31, %v5947_v61  ;;  %v893_v36 = vpop.f32.mrf.mxu1  ;;  %v1677_v31 = vadd.f32 %v1676_v32, %v1630_v27  ;;  %v1816_v27 = vadd.f32 %v6958_v42, %v1625_v0 }
 0x1fe   : > { %v894_v15 = vadd.f32 %v893_v36, %v5950_v1  ;;  %v1464_v16 = vmul.f32 %v5969_v38, %v1006_v40  ;;  %vm1286_vm5 = vcmp.gt.f32.partialorder %v1006_v40, 0.0  ;;  %v1629_v32 = vsel %vm1283_vm2, %v1117_v52, %v1461_v54 }
 0x1ff   : > { %vm1288_vm3 = vcmp.gt.f32.partialorder %v780_v25, 0.0  ;;  %v1466_v55 = vmul.f32 %v5956_v7, %v780_v25  ;;  %v1465_v44 = vmul.f32 %v5975_v53, %v1120_v41  ;;  %vm1287_vm6 = vcmp.gt.f32.partialorder %v1120_v41, 0.0 }
 0x200   : > { %vm1289_vm4 = vcmp.gt.f32.partialorder %v894_v15, 0.0  ;;  %v1467_v43 = vmul.f32 %v5959_v14, %v894_v15  ;;  %v1632_v24 = vsel %vm1286_vm5, %v1006_v40, %v1464_v16  ;;  %v1770_v1 = vadd.f32 %v1769_v48, %v1628_v3 }
 0x201   : > { %v1634_v5 = vsel %vm1288_vm3, %v780_v25, %v1466_v55  ;;  %v1829_v55 = vmul.f32 %v6939_v56, %v1828_v62  ;;  %v1633_v2 = vsel %vm1287_vm6, %v1120_v41, %v1465_v44 }
 0x202   : > { %v1678_v49 = vadd.f32 %v1677_v31, %v1634_v5  ;;  %v1635_v19 = vsel %vm1289_vm4, %v894_v15, %v1467_v43  ;;  %v1817_v31 = vadd.f32 %v1816_v27, %v1629_v32  ;;  %v1771_v20 = vadd.f32 %v1770_v1, %v1632_v24  ;;  %v5398_v24 = vld [vmem:[%s8308_s5 + $0xf4] sm:$0xf0] }
 0x203   : > { %v1725_v36 = vadd.f32 %v1724_v28, %v1635_v19  ;;  %v1007_v14 = vpop.f32.mrf.mxu2  ;;  %v1830_v41 = vadd.f32 %v6939_v56, %v1829_v55  ;;  %v4964_v55 = vld [vmem:[%s8308_s5 + $0x1e8] sm:$0xf] }
 0x204   : > { %v1679_v59 = vrot.slane %v1678_v49, 4  ;;  %v1008_v7 = vadd.f32 %v1007_v14, %v5963_v21  ;;  %v1121_v25 = vpop.f32.mrf.mxu3  ;;  %v1818_v40 = vadd.f32 %v1817_v31, %v1633_v2 }
 0x205   : > { %v1726_v33 = vrot.slane %v1725_v36, 4  ;;  %v1122_v15 = vadd.f32 %v1121_v25, %v5965_v29  ;;  %v7027_v48 = vsel %vm1831_vm9, %v6939_v56, %v1830_v41  ;;  %v5430_v56 = vld [vmem:[%s8308_s5 + $0x1f4] sm:$0xf0] }
 0x206   : > { %v1680_v50 = vadd.f32 %v1679_v59, %v1678_v49  ;;  %vm1290_vm7 = vcmp.gt.f32.partialorder %v1008_v7, 0.0  ;;  %v1468_v42 = vmul.f32 %v5969_v38, %v1008_v7 }
 0x207   : > { %v1727_v0 = vadd.f32 %v1726_v33, %v1725_v36  ;;  %vm1291_vm8 = vcmp.gt.f32.partialorder %v1122_v15, 0.0  ;;  %v1469_v52 = vmul.f32 %v5975_v53, %v1122_v15  ;;  %v4836_v36 = vld [vmem:[%s8308_s5 + $0xe8] sm:$0xf] }
 0x208   : > { %v1681_v14 = vrot.slane %v1680_v50, 2  ;;  %v1636_v54 = vsel %vm1290_vm7, %v1008_v7, %v1468_v42 }
 0x209   : > { %v1728_v16 = vrot.slane %v1727_v0, 2  ;;  %v1772_v62 = vadd.f32 %v1771_v20, %v1636_v54  ;;  %v1637_v43 = vsel %vm1291_vm8, %v1122_v15, %v1469_v52  ;;  %v4820_v52 = vld [vmem:[%s8308_s5 + $0xc8] sm:$0xf] }
 0x20a   : > { %v1682_v28 = vadd.f32 %v1681_v14, %v1680_v50  ;;  %v1819_v44 = vadd.f32 %v1818_v40, %v1637_v43  ;;  %v7043_v50 = vor.u32 %v5398_v24, %v4836_v36  ;;  %v5394_v40 = vld [vmem:[%s8308_s5 + $0xd4] sm:$0xf0]  ;;  %v4948_v54 = vld [vmem:[%s8308_s5 + $0x1c8] sm:$0xf] }
 0x20b   : > { %v1729_v5 = vadd.f32 %v1728_v16, %v1727_v0  ;;  %v1773_v3 = vrot.slane %v1772_v62, 4  ;;  %v7047_v0 = vor.u32 %v5430_v56, %v4964_v55  ;;  %v5426_v16 = vld [vmem:[%s8308_s5 + $0x1d4] sm:$0xf0]  ;;  %v7066_v41 = vor.u32 %v5394_v40, %v4820_v52  ;;  %v4932_v36 = vld [vmem:[%s8308_s5 + $0x1a8] sm:$0xf] }
 0x20c   : > { %v1820_v49 = vrot.slane %v1819_v44, 4  ;;  %v1683_v1 = vrot.slane %v1682_v28, 1  ;;  %v5422_v24 = vld [vmem:[%s8308_s5 + $0x1b4] sm:$0xf0] }
 0x20d   : > { %v1774_v19 = vadd.f32 %v1773_v3, %v1772_v62  ;;  %v1730_v27 = vrot.slane %v1729_v5, 1  ;;  %v5220_v3 = vld [vmem:[%s8308_s5 + $0x3e8] sm:$0xf]  ;;  %v7118_v52 = vor.u32 %v5422_v24, %v4932_v36  ;;  %v5490_v40 = vld [vmem:[%s8308_s5 + $0x3d4] sm:$0xf0] }
 0x20e   : > { %v1821_v32 = vadd.f32 %v1820_v49, %v1819_v44  ;;  %v1684_v7 = vadd.f32 %v1683_v1, %v1682_v28  ;;  %v5092_v44 = vld [vmem:[%s8308_s5 + $0x2e8] sm:$0xf]  ;;  %v7078_v49 = vor.u32 %v5426_v16, %v4948_v54  ;;  %v5386_v16 = vld [vmem:[%s8308_s5 + $0x94] sm:$0xf0] }
 0x20f   : > { %v1775_v59 = vrot.slane %v1774_v19, 2  ;;  %v1731_v25 = vadd.f32 %v1730_v27, %v1729_v5  ;;  %v5462_v5 = vld [vmem:[%s8308_s5 + $0x2f4] sm:$0xf0]  ;;  %v4804_v27 = vld [vmem:[%s8308_s5 + $0xa8] sm:$0xf] }
 0x210   : > { %v1822_v2 = vrot.slane %v1821_v32, 2  ;;  %v1833_v33 = vmul.f32 %v7027_v48, %v1684_v7  ;;  %v4788_v54 = vld [vmem:[%s8308_s5 + $0x88] sm:$0xf]  ;;  %v5382_v36 = vld [vmem:[%s8308_s5 + $0x74] sm:$0xf0] }
 0x211   : > { %v1776_v15 = vadd.f32 %v1775_v59, %v1774_v19  ;;  %v1834_v31 = vmul.f32 %v7027_v48, %v1731_v25  ;;  %v5494_v19 = vld [vmem:[%s8308_s5 + $0x3f4] sm:$0xf0]  ;;  %v7097_v25 = vor.u32 %v5462_v5, %v5092_v44  ;;  %v7144_v5 = vor.u32 %v5386_v16, %v4788_v54  ;;  %v4900_v24 = vld [vmem:[%s8308_s5 + $0x168] sm:$0xf] }
 0x212   : > { %v1823_v42 = vadd.f32 %v1822_v2, %v1821_v32  ;;  %v7045_v20 = vpack.c.bf16 %v1833_v33, %v1833_v33  ;;  %v5390_v32 = vld [vmem:[%s8308_s5 + $0xb4] sm:$0xf0]  ;;  %v7102_v56 = vor.u32 %v5494_v19, %v5220_v3  ;;  %v5076_v33 = vld [vmem:[%s8308_s5 + $0x2c8] sm:$0xf] }
 0x213   : > { %v7055_v14 = vpack.c.bf16 %v1834_v31, %v1834_v31  ;;  %v1777_v62 = vrot.slane %v1776_v15, 1  ;;  %8520 = vst [vmem:[#allocation78_spill] sm:$0xff] %v7097_v25  ;;  %v7104_v2 = vor.u32 %v5390_v32, %v4804_v27  ;;  %v5204_v31 = vld [vmem:[%s8308_s5 + $0x3c8] sm:$0xf]  ;;  %v5486_v32 = vld [vmem:[%s8308_s5 + $0x3b4] sm:$0xf0] }
 0x214   : > { %2627 = vmatmul.bf16.vlgmr.msrb.gmra.mxu0 %v7045_v20  ;;  %v1824_v43 = vrot.slane %v1823_v42, 1  ;;  %8521 = vst [vmem:[#allocation79_spill] sm:$0xff] %v7102_v56  ;;  %v7142_v44 = vor.u32 %v5490_v40, %v5204_v31  ;;  %v5060_v3 = vld [vmem:[%s8308_s5 + $0x2a8] sm:$0xf]  ;;  %v5450_v40 = vld [vmem:[%s8308_s5 + $0x294] sm:$0xf0] }
 0x215   : > { %2640 = vmatmul.bf16.vlgmr.msrb.gmra.mxu1 %v7055_v14  ;;  %2723 = vmatpush.bf16.msrb.mxu0 %v7043_v50  ;;  %v1778_v28 = vadd.f32 %v1777_v62, %v1776_v15  ;;  %v5458_v15 = vld [vmem:[%s8308_s5 + $0x2d4] sm:$0xf0]  ;;  %v4916_v62 = vld [vmem:[%s8308_s5 + $0x188] sm:$0xf] }
 0x216   : > { %2736 = vmatpush.bf16.msrb.mxu1 %v7047_v0  ;;  %v1825_v1 = vadd.f32 %v1824_v43, %v1823_v42  ;;  %v5418_v43 = vld [vmem:[%s8308_s5 + $0x194] sm:$0xf0]  ;;  %8523 = vst [vmem:[#allocation81_spill] sm:$0xff] %v7142_v44  ;;  %v5188_v27 = vld [vmem:[%s8308_s5 + $0x3a8] sm:$0xf] }
 0x217   : > { %v1835_v7 = vmul.f32 %v7027_v48, %v1778_v28  ;;  %v7138_v28 = vor.u32 %v5458_v15, %v5076_v33  ;;  %v7153_v19 = vor.u32 %v5418_v43, %v4916_v62  ;;  %v7178_v15 = vor.u32 %v5486_v32, %v5188_v27  ;;  %v5044_v31 = vld [vmem:[%s8308_s5 + $0x288] sm:$0xf]  ;;  %v5482_v43 = vld [vmem:[%s8308_s5 + $0x394] sm:$0xf0] }
 0x218   : > { %v1836_v59 = vmul.f32 %v7027_v48, %v1825_v1  ;;  %v5454_v1 = vld [vmem:[%s8308_s5 + $0x2b4] sm:$0xf0]  ;;  %v5172_v62 = vld [vmem:[%s8308_s5 + $0x388] sm:$0xf] }
 0x219   : > { %2724 = vmatpush.bf16.msrb.mxu0 %v7066_v41  ;;  %v7100_v55 = vpack.c.bf16 %v1835_v7, %v1835_v7  ;;  %8522 = vst [vmem:[#allocation80_spill] sm:$0xff] %v7138_v28  ;;  %v4772_v7 = vld [vmem:[%s8308_s5 + $0x68] sm:$0xf]  ;;  %v7174_v33 = vor.u32 %v5454_v1, %v5060_v3  ;;  %v5378_v1 = vld [vmem:[%s8308_s5 + $0x54] sm:$0xf0] }
 0x21a   : > { %2737 = vmatpush.bf16.msrb.mxu1 %v7078_v49  ;;  %v7116_v42 = vpack.c.bf16 %v1836_v59, %v1836_v59  ;;  %v5414_v59 = vld [vmem:[%s8308_s5 + $0x174] sm:$0xf0]  ;;  %8525 = vst [vmem:[#allocation83_spill] sm:$0xff] %v7178_v15  ;;  %v7187_v54 = vor.u32 %v5382_v36, %v4772_v7  ;;  %v4756_v3 = vld [vmem:[%s8308_s5 + $0x48] sm:$0xf]  ;;  %v7211_v7 = vor.u32 %v5450_v40, %v5044_v31 }
 0x21b   : > { %2653 = vmatmul.bf16.vlgmr.msrb.gmra.mxu2 %v7100_v55  ;;  %8524 = vst [vmem:[#allocation82_spill] sm:$0xff] %v7174_v33  ;;  %v7189_v16 = vor.u32 %v5414_v59, %v4900_v24  ;;  %v4884_v27 = vld [vmem:[%s8308_s5 + $0x148] sm:$0xf]  ;;  %v5410_v32 = vld [vmem:[%s8308_s5 + $0x154] sm:$0xf0]  ;;  %v7215_v36 = vor.u32 %v5482_v43, %v5172_v62  ;;  %v7225_v31 = vor.u32 %v5378_v1, %v4756_v3 }
 0x21c   : > { %2666 = vmatmul.bf16.vlgmr.msrb.gmra.mxu3 %v7116_v42  ;;  %2749 = vmatpush.bf16.msrb.mxu2 %v7097_v25  ;;  %8526 = vst [vmem:[#allocation84_spill] sm:$0xff] %v7187_v54  ;;  %v5028_v24 = vld [vmem:[%s8308_s5 + $0x268] sm:$0xf]  ;;  %v5446_v59 = vld [vmem:[%s8308_s5 + $0x274] sm:$0xf0]  ;;  %v7227_v40 = vor.u32 %v5410_v32, %v4884_v27 }
 0x21d   : > { %2762 = vmatpush.bf16.msrb.mxu3 %v7102_v56  ;;  %2725 = vmatpush.bf16.msrb.mxu0 %v7104_v2  ;;  %8527 = vst [vmem:[#allocation85_spill] sm:$0xff] %v7189_v16  ;;  %v5156_v62 = vld [vmem:[%s8308_s5 + $0x368] sm:$0xf]  ;;  %v5478_v43 = vld [vmem:[%s8308_s5 + $0x374] sm:$0xf0]  ;;  %v7248_v27 = vor.u32 %v5446_v59, %v5028_v24 }
 0x21e   : > { %2738 = vmatpush.bf16.msrb.mxu1 %v7118_v52  ;;  %8528 = vst [vmem:[#allocation86_spill] sm:$0xff] %v7211_v7  ;;  %v4868_v3 = vld [vmem:[%s8308_s5 + $0x128] sm:$0xf]  ;;  %v5406_v1 = vld [vmem:[%s8308_s5 + $0x134] sm:$0xf0]  ;;  %v7251_v32 = vor.u32 %v5478_v43, %v5156_v62 }
 0x21f   : > { %8529 = vst [vmem:[#allocation87_spill] sm:$0xff] %v7215_v36  ;;  %v7266_v59 = vor.u32 %v5406_v1, %v4868_v3  ;;  %v5474_v62 = vld [vmem:[%s8308_s5 + $0x354] sm:$0xf0]  ;;  %v4724_v43 = vld [vmem:[%s8308_s5 + $0x8] sm:$0xf] }
 0x220   : > { %2750 = vmatpush.bf16.msrb.mxu2 %v7138_v28  ;;  %8530 = vst [vmem:[#allocation88_spill] sm:$0xff] %v7225_v31  ;;  %v5442_v28 = vld [vmem:[%s8308_s5 + $0x254] sm:$0xf0]  ;;  %v5396_v3 = vld [vmem:[%s8308_s5 + $0xec] sm:$0xf] }
 0x221   : > { %2763 = vmatpush.bf16.msrb.mxu3 %v7142_v44  ;;  %2726 = vmatpush.bf16.msrb.mxu0 %v7144_v5  ;;  %8531 = vst [vmem:[#allocation89_spill] sm:$0xff] %v7227_v40  ;;  %v5012_v44 = vld [vmem:[%s8308_s5 + $0x248] sm:$0xf] }
 0x222   : > { %2739 = vmatpush.bf16.msrb.mxu1 %v7153_v19  ;;  %8532 = vst [vmem:[#allocation90_spill] sm:$0xff] %v7248_v27  ;;  %v7289_v1 = vor.u32 %v5442_v28, %v5012_v44  ;;  %v4996_v28 = vld [vmem:[%s8308_s5 + $0x228] sm:$0xf]  ;;  %v5438_v44 = vld [vmem:[%s8308_s5 + $0x234] sm:$0xf0] }
 0x223   : > { %8533 = vst [vmem:[#allocation91_spill] sm:$0xff] %v7251_v32 }
 0x224   : > { %2751 = vmatpush.bf16.msrb.mxu2 %v7174_v33  ;;  %2679 = vmatmul.bf16.vlgmr.msra.gmra.mxu0 %v7045_v20  ;;  %v5374_v33 = vld [vmem:[%s8308_s5 + $0x34] sm:$0xf0]  ;;  %8534 = vst [vmem:[#allocation92_spill] sm:$0xff] %v7266_v59 }
 0x225   : > { %2764 = vmatpush.bf16.msrb.mxu3 %v7178_v15  ;;  %2692 = vmatmul.bf16.vlgmr.msra.gmra.mxu1 %v7055_v14  ;;  %v4740_v15 = vld [vmem:[%s8308_s5 + $0x28] sm:$0xf]  ;;  %8535 = vst [vmem:[#allocation93_spill] sm:$0xff] %v7289_v1 }
 0x226   : > { %2727 = vmatpush.bf16.msrb.mxu0 %v7187_v54  ;;  %2740 = vmatpush.bf16.msrb.mxu1 %v7189_v16  ;;  %v5140_v16 = vld [vmem:[%s8308_s5 + $0x348] sm:$0xf]  ;;  %v7264_v24 = vor.u32 %v5374_v33, %v4740_v15  ;;  %v5402_v15 = vld [vmem:[%s8308_s5 + $0x114] sm:$0xf0] }
 0x227   : > { %v4852_v33 = vld [vmem:[%s8308_s5 + $0x108] sm:$0xf]  ;;  %v7301_v54 = vor.u32 %v5474_v62, %v5140_v16  ;;  %v5470_v62 = vld [vmem:[%s8308_s5 + $0x334] sm:$0xf0] }
 0x228   : > { %2752 = vmatpush.bf16.msrb.mxu2 %v7211_v7  ;;  %v4838_v7 = vld [vmem:[%s8308_s5 + $0xf8] sm:$0xf0]  ;;  %v7313_v56 = vor.u32 %v5402_v15, %v4852_v33  ;;  %v5124_v16 = vld [vmem:[%s8308_s5 + $0x328] sm:$0xf]  ;;  %v5424_v33 = vld [vmem:[%s8308_s5 + $0x1cc] sm:$0xf] }
 0x229   : > { %2765 = vmatpush.bf16.msrb.mxu3 %v7215_v36  ;;  %v5370_v36 = vld [vmem:[%s8308_s5 + $0x14] sm:$0xf0]  ;;  %8536 = vst [vmem:[#allocation94_spill] sm:$0xff] %v7301_v54 }
 0x22a   : > { %2728 = vmatpush.bf16.msrb.mxu0 %v7225_v31  ;;  %2741 = vmatpush.bf16.msrb.mxu1 %v7227_v40  ;;  %v5428_v40 = vld [vmem:[%s8308_s5 + $0x1ec] sm:$0xf]  ;;  %v4966_v31 = vld [vmem:[%s8308_s5 + $0x1f8] sm:$0xf0]  ;;  %8538 = vst [vmem:[#allocation96_spill] sm:$0xff] %v7313_v56 }
 0x22b   : > { %2705 = vmatmul.bf16.vlgmr.msra.gmra.mxu2 %v7100_v55  ;;  %v7323_v25 = vor.u32 %v5428_v40, %v4966_v31  ;;  %v7341_v31 = vor.u32 %v5470_v62, %v5124_v16  ;;  %v4980_v40 = vld [vmem:[%s8308_s5 + $0x208] sm:$0xf]  ;;  %v5434_v15 = vld [vmem:[%s8308_s5 + $0x214] sm:$0xf0]  ;;  %v5094_v16 = vld [vmem:[%s8308_s5 + $0x2f8] sm:$0xf0] }
 0x22c   : > { %2718 = vmatmul.bf16.vlgmr.msra.gmra.mxu3 %v7116_v42  ;;  %2753 = vmatpush.bf16.msrb.mxu2 %v7248_v27  ;;  %v7311_v27 = vor.u32 %v5370_v36, %v4724_v43  ;;  %v7329_v36 = vor.u32 %v5438_v44, %v4996_v28  ;;  %v4822_v43 = vld [vmem:[%s8308_s5 + $0xd8] sm:$0xf0]  ;;  %v5466_v28 = vld [vmem:[%s8308_s5 + $0x314] sm:$0xf0]  ;;  %v5460_v44 = vld [vmem:[%s8308_s5 + $0x2ec] sm:$0xf] }
 0x22d   : > { %2766 = vmatpush.bf16.msrb.mxu3 %v7251_v32  ;;  %v7321_v32 = vor.u32 %v5396_v3, %v4838_v7  ;;  %8540 = vst [vmem:[#allocation98_spill] sm:$0xff] %v7323_v25  ;;  %v4950_v7 = vld [vmem:[%s8308_s5 + $0x1d8] sm:$0xf0]  ;;  %v5108_v3 = vld [vmem:[%s8308_s5 + $0x308] sm:$0xf] }
 0x22e   : > { %2729 = vmatpush.bf16.msrb.mxu0 %v7264_v24  ;;  %2742 = vmatpush.bf16.msrb.mxu1 %v7266_v59  ;;  %8537 = vst [vmem:[#allocation95_spill] sm:$0xff] %v7311_v27  ;;  %v5392_v59 = vld [vmem:[%s8308_s5 + $0xcc] sm:$0xf] }
 0x22f   : > { %8539 = vst [vmem:[#allocation97_spill] sm:$0xff] %v7321_v32  ;;  %v7365_v62 = vor.u32 %v5392_v59, %v4822_v43  ;;  %v4806_v59 = vld [vmem:[%s8308_s5 + $0xb8] sm:$0xf0]  ;;  %v5420_v43 = vld [vmem:[%s8308_s5 + $0x1ac] sm:$0xf] }
 0x230   : > { %2754 = vmatpush.bf16.msrb.mxu2 %v7289_v1  ;;  %8541 = vst [vmem:[#allocation99_spill] sm:$0xff] %v7329_v36  ;;  %v5492_v1 = vld [vmem:[%s8308_s5 + $0x3ec] sm:$0xf] }
 0x231   : > { %2767 = vmatpush.bf16.msrb.mxu3 %v7301_v54  ;;  %8542 = vst [vmem:[#allocation100_spill] sm:$0xff] %v7341_v31  ;;  %v7367_v54 = vor.u32 %v5424_v33, %v4950_v7  ;;  %v4934_v33 = vld [vmem:[%s8308_s5 + $0x1b8] sm:$0xf0]  ;;  %v7392_v7 = vor.u32 %v5466_v28, %v5108_v3 }
 0x232   : > { %2730 = vmatpush.bf16.msrb.mxu0 %v7311_v27  ;;  %2743 = vmatpush.bf16.msrb.mxu1 %v7313_v56  ;;  %v5222_v56 = vld [vmem:[%s8308_s5 + $0x3f8] sm:$0xf0]  ;;  %v5388_v27 = vld [vmem:[%s8308_s5 + $0xac] sm:$0xf]  ;;  %v7409_v28 = vor.u32 %v5420_v43, %v4934_v33 }
 0x233   : > { %8544 = vst [vmem:[#allocation102_spill] sm:$0xff] %v7392_v7  ;;  %v7407_v3 = vor.u32 %v5388_v27, %v4806_v59  ;;  %v4790_v27 = vld [vmem:[%s8308_s5 + $0x98] sm:$0xf0] }
 0x234   : > { %2755 = vmatpush.bf16.msrb.mxu2 %v7329_v36  ;;  %v5456_v36 = vld [vmem:[%s8308_s5 + $0x2cc] sm:$0xf]  ;;  %8548 = vst [vmem:[#allocation106_spill] sm:$0xff] %v7409_v28  ;;  %v4918_v59 = vld [vmem:[%s8308_s5 + $0x198] sm:$0xf0] }
 0x235   : > { %2768 = vmatpush.bf16.msrb.mxu3 %v7341_v31  ;;  %2731 = vmatmul.bf16.vlgmr.msrb.gmra.mxu0 %v7045_v20  ;;  %8547 = vst [vmem:[#allocation105_spill] sm:$0xff] %v7407_v3  ;;  %v5062_v31 = vld [vmem:[%s8308_s5 + $0x2b8] sm:$0xf0] }
 0x236   : > { %2775 = vmatpush.bf16.msra.mxu0 %v7321_v32  ;;  %2788 = vmatpush.bf16.msra.mxu1 %v7323_v25  ;;  %v7379_v32 = vor.u32 %v5434_v15, %v4980_v40  ;;  %v7394_v40 = vor.u32 %v5460_v44, %v5094_v16  ;;  %v7397_v15 = vor.u32 %v5492_v1, %v5222_v56  ;;  %v5078_v25 = vld [vmem:[%s8308_s5 + $0x2d8] sm:$0xf0]  ;;  %v5488_v56 = vld [vmem:[%s8308_s5 + $0x3cc] sm:$0xf] }
 0x237   : > { %2744 = vmatmul.bf16.vlgmr.msrb.gmra.mxu1 %v7055_v14  ;;  %v5206_v1 = vld [vmem:[%s8308_s5 + $0x3d8] sm:$0xf0]  ;;  %v5384_v44 = vld [vmem:[%s8308_s5 + $0x8c] sm:$0xf]  ;;  %v7432_v43 = vor.u32 %v5456_v36, %v5078_v25 }
 0x238   : > { %8543 = vst [vmem:[#allocation101_spill] sm:$0xff] %v7379_v32  ;;  %2756 = vmatpush.bf16.msrb.mxu2 %v7379_v32  ;;  %v5416_v16 = vld [vmem:[%s8308_s5 + $0x18c] sm:$0xf]  ;;  %v7435_v33 = vor.u32 %v5488_v56, %v5206_v1  ;;  %v5190_v56 = vld [vmem:[%s8308_s5 + $0x3b8] sm:$0xf0] }
 0x239   : > { %8545 = vst [vmem:[#allocation103_spill] sm:$0xff] %v7394_v40  ;;  %2769 = vmatpush.bf16.msrb.mxu3 %v7392_v7  ;;  %v5452_v32 = vld [vmem:[%s8308_s5 + $0x2ac] sm:$0xf]  ;;  %v7445_v7 = vor.u32 %v5384_v44, %v4790_v27  ;;  %v7447_v25 = vor.u32 %v5416_v16, %v4918_v59  ;;  %v4774_v44 = vld [vmem:[%s8308_s5 + $0x78] sm:$0xf0] }
 0x23a   : > { %8546 = vst [vmem:[#allocation104_spill] sm:$0xff] %v7397_v15  ;;  %2776 = vmatpush.bf16.msra.mxu0 %v7365_v62  ;;  %2789 = vmatpush.bf16.msra.mxu1 %v7367_v54  ;;  %v5484_v36 = vld [vmem:[%s8308_s5 + $0x3ac] sm:$0xf]  ;;  %v4902_v16 = vld [vmem:[%s8308_s5 + $0x178] sm:$0xf0]  ;;  %v7470_v59 = vor.u32 %v5452_v32, %v5062_v31 }
 0x23b   : > { %8549 = vst [vmem:[#allocation107_spill] sm:$0xff] %v7432_v43  ;;  %v5380_v1 = vld [vmem:[%s8308_s5 + $0x6c] sm:$0xf]  ;;  %2757 = vmatmul.bf16.vlgmr.msrb.gmra.mxu2 %v7100_v55 }
 0x23c   : > { %2801 = vmatpush.bf16.msra.mxu2 %v7394_v40  ;;  %8550 = vst [vmem:[#allocation108_spill] sm:$0xff] %v7435_v33  ;;  %2770 = vmatmul.bf16.vlgmr.msrb.gmra.mxu3 %v7116_v42  ;;  %v5412_v27 = vld [vmem:[%s8308_s5 + $0x16c] sm:$0xf] }
 0x23d   : > { %2814 = vmatpush.bf16.msra.mxu3 %v7397_v15  ;;  %8551 = vst [vmem:[#allocation109_spill] sm:$0xff] %v7445_v7  ;;  %v7473_v15 = vor.u32 %v5484_v36, %v5190_v56  ;;  %v5448_v40 = vld [vmem:[%s8308_s5 + $0x28c] sm:$0xf]  ;;  %v7485_v32 = vor.u32 %v5412_v27, %v4902_v16  ;;  %v5174_v36 = vld [vmem:[%s8308_s5 + $0x398] sm:$0xf0] }
 0x23e   : > { %2777 = vmatpush.bf16.msra.mxu0 %v7407_v3  ;;  %2790 = vmatpush.bf16.msra.mxu1 %v7409_v28  ;;  %8552 = vst [vmem:[#allocation110_spill] sm:$0xff] %v7447_v25  ;;  %v5046_v28 = vld [vmem:[%s8308_s5 + $0x298] sm:$0xf0]  ;;  %v7483_v3 = vor.u32 %v5380_v1, %v4774_v44  ;;  %v5480_v31 = vld [vmem:[%s8308_s5 + $0x38c] sm:$0xf] }
 0x23f   : > { %8553 = vst [vmem:[#allocation111_spill] sm:$0xff] %v7470_v59  ;;  %v5376_v56 = vld [vmem:[%s8308_s5 + $0x4c] sm:$0xf]  ;;  %v4886_v44 = vld [vmem:[%s8308_s5 + $0x158] sm:$0xf0]  ;;  %v7506_v27 = vor.u32 %v5448_v40, %v5046_v28  ;;  %v7509_v16 = vor.u32 %v5480_v31, %v5174_v36 }
 0x240   : > { %2802 = vmatpush.bf16.msra.mxu2 %v7432_v43  ;;  %8554 = vst [vmem:[#allocation112_spill] sm:$0xff] %v7473_v15  ;;  %v5408_v1 = vld [vmem:[%s8308_s5 + $0x14c] sm:$0xf]  ;;  %v5158_v31 = vld [vmem:[%s8308_s5 + $0x378] sm:$0xf0] }
 0x241   : > { %2815 = vmatpush.bf16.msra.mxu3 %v7435_v33  ;;  %8555 = vst [vmem:[#allocation113_spill] sm:$0xff] %v7483_v3  ;;  %v4758_v33 = vld [vmem:[%s8308_s5 + $0x58] sm:$0xf0]  ;;  %v5444_v43 = vld [vmem:[%s8308_s5 + $0x26c] sm:$0xf]  ;;  %v7521_v40 = vor.u32 %v5408_v1, %v4886_v44 }
 0x242   : > { %2778 = vmatpush.bf16.msra.mxu0 %v7445_v7  ;;  %2791 = vmatpush.bf16.msra.mxu1 %v7447_v25  ;;  %8556 = vst [vmem:[#allocation114_spill] sm:$0xff] %v7485_v32  ;;  %v5030_v25 = vld [vmem:[%s8308_s5 + $0x278] sm:$0xf0]  ;;  %v7519_v7 = vor.u32 %v5376_v56, %v4758_v33  ;;  %v5476_v28 = vld [vmem:[%s8308_s5 + $0x36c] sm:$0xf] }
 0x243   : > { %8557 = vst [vmem:[#allocation115_spill] sm:$0xff] %v7506_v27  ;;  %v5372_v36 = vld [vmem:[%s8308_s5 + $0x2c] sm:$0xf]  ;;  %v4870_v56 = vld [vmem:[%s8308_s5 + $0x138] sm:$0xf0]  ;;  %v7542_v1 = vor.u32 %v5444_v43, %v5030_v25  ;;  %v7545_v44 = vor.u32 %v5476_v28, %v5158_v31 }
 0x244   : > { %2803 = vmatpush.bf16.msra.mxu2 %v7470_v59  ;;  %8558 = vst [vmem:[#allocation116_spill] sm:$0xff] %v7509_v16  ;;  %v5404_v33 = vld [vmem:[%s8308_s5 + $0x12c] sm:$0xf]  ;;  %v5142_v28 = vld [vmem:[%s8308_s5 + $0x358] sm:$0xf0] }
 0x245   : > { %2816 = vmatpush.bf16.msra.mxu3 %v7473_v15  ;;  %8559 = vst [vmem:[#allocation117_spill] sm:$0xff] %v7519_v7  ;;  %v4742_v15 = vld [vmem:[%s8308_s5 + $0x38] sm:$0xf0]  ;;  %v5440_v59 = vld [vmem:[%s8308_s5 + $0x24c] sm:$0xf]  ;;  %v7557_v43 = vor.u32 %v5404_v33, %v4870_v56 }
 0x246   : > { %2779 = vmatpush.bf16.msra.mxu0 %v7483_v3  ;;  %2792 = vmatpush.bf16.msra.mxu1 %v7485_v32  ;;  %8560 = vst [vmem:[#allocation118_spill] sm:$0xff] %v7521_v40  ;;  %v5014_v32 = vld [vmem:[%s8308_s5 + $0x258] sm:$0xf0]  ;;  %v7555_v3 = vor.u32 %v5372_v36, %v4742_v15  ;;  %v5472_v25 = vld [vmem:[%s8308_s5 + $0x34c] sm:$0xf] }
 0x247   : > { %8561 = vst [vmem:[#allocation119_spill] sm:$0xff] %v7542_v1  ;;  %v5368_v31 = vld [vmem:[%s8308_s5 + $0xc] sm:$0xf]  ;;  %v4854_v36 = vld [vmem:[%s8308_s5 + $0x118] sm:$0xf0]  ;;  %v7578_v33 = vor.u32 %v5440_v59, %v5014_v32  ;;  %v7581_v56 = vor.u32 %v5472_v25, %v5142_v28 }
 0x248   : > { %2804 = vmatpush.bf16.msra.mxu2 %v7506_v27  ;;  %8562 = vst [vmem:[#allocation120_spill] sm:$0xff] %v7545_v44  ;;  %v5400_v15 = vld [vmem:[%s8308_s5 + $0x10c] sm:$0xf]  ;;  %v5126_v25 = vld [vmem:[%s8308_s5 + $0x338] sm:$0xf0] }
 0x249   : > { %2817 = vmatpush.bf16.msra.mxu3 %v7509_v16  ;;  %v4726_v16 = vld [vmem:[%s8308_s5 + $0x18] sm:$0xf0]  ;;  %8563 = vst [vmem:[#allocation121_spill] sm:$0xff] %v7578_v33  ;;  %v5436_v27 = vld [vmem:[%s8308_s5 + $0x22c] sm:$0xf]  ;;  %v7593_v59 = vor.u32 %v5400_v15, %v4854_v36 }
 0x24a   : > { %2780 = vmatpush.bf16.msra.mxu0 %v7519_v7  ;;  %2793 = vmatpush.bf16.msra.mxu1 %v7521_v40  ;;  %8564 = vst [vmem:[#allocation122_spill] sm:$0xff] %v7581_v56  ;;  %v4998_v40 = vld [vmem:[%s8308_s5 + $0x238] sm:$0xf0]  ;;  %v7591_v7 = vor.u32 %v5368_v31, %v4726_v16  ;;  %v5468_v32 = vld [vmem:[%s8308_s5 + $0x32c] sm:$0xf] }
 0x24b   : > { %8565 = vst [vmem:[#allocation123_spill] sm:$0xff] %v7593_v59  ;;  %v7602_v28 = vor.u32 %v5436_v27, %v4998_v40  ;;  %v5432_v16 = vld [vmem:[%s8308_s5 + $0x20c] sm:$0xf]  ;;  %v4982_v31 = vld [vmem:[%s8308_s5 + $0x218] sm:$0xf0] }
 0x24c   : > { %2805 = vmatpush.bf16.msra.mxu2 %v7542_v1  ;;  %v5464_v27 = vld [vmem:[%s8308_s5 + $0x30c] sm:$0xf]  ;;  %v5110_v40 = vld [vmem:[%s8308_s5 + $0x318] sm:$0xf0]  ;;  %v7624_v15 = vor.u32 %v5432_v16, %v4982_v31  ;;  %v8595_v31 = vld [vmem:[#allocation29_spill] sm:$0xff] }
 0x24d   : > { %2818 = vmatpush.bf16.msra.mxu3 %v7545_v44  ;;  %8566 = vst [vmem:[#allocation124_spill] sm:$0xff] %v7602_v28  ;;  %v7605_v44 = vor.u32 %v5468_v32, %v5126_v25  ;;  %v7628_v36 = vor.u32 %v5464_v27, %v5110_v40  ;;  %v8593_v32 = vld [vmem:[#allocation35_spill] sm:$0xff]  ;;  %v5496_v25 = vld [vmem:[%s5645_s12 + $0x8] sm:$0xff]  ;;  %v8594_v16 = vld [vmem:[#allocation28_spill] sm:$0xff] }
 0x24e   : > { %2781 = vmatpush.bf16.msra.mxu0 %v7555_v3  ;;  %2794 = vmatpush.bf16.msra.mxu1 %v7557_v43  ;;  %8568 = vst [vmem:[#allocation126_spill] sm:$0xff] %v7624_v15  ;;  %v8596_v27 = vld [vmem:[#allocation38_spill] sm:$0xff]  ;;  %v8597_v40 = vld [vmem:[#allocation39_spill] sm:$0xff] }
 0x24f   : > { %8567 = vst [vmem:[#allocation125_spill] sm:$0xff] %v7605_v44 }
 0x250   : > { %2806 = vmatpush.bf16.msra.mxu2 %v7578_v33  ;;  %8569 = vst [vmem:[#allocation127_spill] sm:$0xff] %v7628_v36 }
 0x251   : > { %2819 = vmatpush.bf16.msra.mxu3 %v7581_v56 }
 0x252   : > { %2782 = vmatpush.bf16.msra.mxu0 %v7591_v7  ;;  %2795 = vmatpush.bf16.msra.mxu1 %v7593_v59 }
 0x254   : > { %2807 = vmatpush.bf16.msra.mxu2 %v7602_v28 }
 0x255   : > { %2820 = vmatpush.bf16.msra.mxu3 %v7605_v44  ;;  %2783 = vmatmul.bf16.vlgmr.msra.gmra.mxu0 %v7045_v20  ;;  %v8589_v20 = vld [vmem:[#allocation31_spill] sm:$0xff] }
 0x256   : > { %3024 = vmatpush.bf16.msrb.mxu0 %v5657_v4  ;;  %3138 = vmatpush.bf16.msrb.mxu1 %v5668_v8  ;;  %v8570_v4 = vld [vmem:[#allocation5_spill] sm:$0xff]  ;;  %v8571_v8 = vld [vmem:[#allocation6_spill] sm:$0xff] }
 0x257   : > { %2796 = vmatmul.bf16.vlgmr.msra.gmra.mxu1 %v7055_v14  ;;  %v8590_v14 = vld [vmem:[#allocation24_spill] sm:$0xff] }
 0x258   : > { %2808 = vmatpush.bf16.msra.mxu2 %v7624_v15 }
 0x259   : > { %2821 = vmatpush.bf16.msra.mxu3 %v7628_v36 }
 0x25a   : > { %3025 = vmatpush.bf16.msrb.mxu0 %v5695_v17  ;;  %3139 = vmatpush.bf16.msrb.mxu1 %v5697_v18  ;;  %v8574_v17 = vld [vmem:[#allocation7_spill] sm:$0xff]  ;;  %v8575_v18 = vld [vmem:[#allocation8_spill] sm:$0xff] }
 0x25b   : > { %2809 = vmatmul.bf16.vlgmr.msra.gmra.mxu2 %v7100_v55  ;;  %v8591_v55 = vld [vmem:[#allocation25_spill] sm:$0xff] }
 0x25c   : > { %3252 = vmatpush.bf16.msrb.mxu2 %v5670_v9  ;;  %2822 = vmatmul.bf16.vlgmr.msra.gmra.mxu3 %v7116_v42  ;;  %v8572_v9 = vld [vmem:[#allocation9_spill] sm:$0xff]  ;;  %v8592_v42 = vld [vmem:[#allocation34_spill] sm:$0xff] }
 0x25d   : > { %3366 = vmatpush.bf16.msrb.mxu3 %v5682_v13  ;;  %v8573_v13 = vld [vmem:[#allocation10_spill] sm:$0xff] }
 0x25e   : > { %3026 = vmatpush.bf16.msrb.mxu0 %v5732_v30  ;;  %3140 = vmatpush.bf16.msrb.mxu1 %v5745_v34  ;;  %v8577_v30 = vld [vmem:[#allocation14_spill] sm:$0xff] }
 0x25f   : > { %v8578_v34 = vld [vmem:[#allocation22_spill] sm:$0xff] }
 0x260   : > { %3253 = vmatpush.bf16.msrb.mxu2 %v5709_v22  ;;  %v5495_v22 = vld [vmem:[%s5645_s12] sm:$0xff] }
 0x261   : > { %3367 = vmatpush.bf16.msrb.mxu3 %v5720_v26  ;;  %v8576_v26 = vld [vmem:[#allocation13_spill] sm:$0xff] }
 0x262   : > { %3027 = vmatpush.bf16.msrb.mxu0 %v5777_v45  ;;  %3141 = vmatpush.bf16.msrb.mxu1 %v5781_v46  ;;  %v8581_v45 = vld [vmem:[#allocation12_spill] sm:$0xff]  ;;  %v8582_v46 = vld [vmem:[#allocation26_spill] sm:$0xff] }
 0x264   : > { %3254 = vmatpush.bf16.msrb.mxu2 %v5747_v35  ;;  %v8579_v35 = vld [vmem:[#allocation11_spill] sm:$0xff] }
 0x265   : > { %3368 = vmatpush.bf16.msrb.mxu3 %v5759_v39  ;;  %v8580_v39 = vld [vmem:[#allocation23_spill] sm:$0xff] }
 0x266   : > { %3028 = vmatpush.bf16.msrb.mxu0 %v5813_v57  ;;  %3142 = vmatpush.bf16.msrb.mxu1 %v5817_v58  ;;  %v8585_v57 = vld [vmem:[#allocation16_spill] sm:$0xff] }
 0x267   : > { %v8586_v58 = vld [vmem:[#allocation20_spill] sm:$0xff] }
 0x268   : > { %3255 = vmatpush.bf16.msrb.mxu2 %v5783_v47  ;;  %v8583_v47 = vld [vmem:[#allocation15_spill] sm:$0xff] }
 0x269   : > { %3369 = vmatpush.bf16.msrb.mxu3 %v5795_v51  ;;  %v8584_v51 = vld [vmem:[#allocation27_spill] sm:$0xff] }
 0x26a   : > { %3029 = vmatpush.bf16.msrb.mxu0 %v5849_v6  ;;  %3143 = vmatpush.bf16.msrb.mxu1 %v5856_v10  ;;  %v8587_v6 = vld [vmem:[#allocation21_spill] sm:$0xff]  ;;  %v8588_v10 = vld [vmem:[#allocation30_spill] sm:$0xff] }
 0x26c   : > { %3256 = vmatpush.bf16.msrb.mxu2 %v8570_v4  ;;  %v8598_v4 = vld [vmem:[#allocation32_spill] sm:$0xff] }
 0x26d   : > { %3370 = vmatpush.bf16.msrb.mxu3 %v8571_v8  ;;  %v8599_v8 = vld [vmem:[#allocation33_spill] sm:$0xff] }
 0x26e   : > { %3030 = vmatpush.bf16.msrb.mxu0 %v8572_v9  ;;  %3144 = vmatpush.bf16.msrb.mxu1 %v8573_v13  ;;  %v8600_v9 = vld [vmem:[#allocation42_spill] sm:$0xff]  ;;  %v8601_v13 = vld [vmem:[#allocation43_spill] sm:$0xff] }
 0x270   : > { %3257 = vmatpush.bf16.msrb.mxu2 %v8574_v17  ;;  %v8602_v17 = vld [vmem:[#allocation36_spill] sm:$0xff] }
 0x271   : > { %3371 = vmatpush.bf16.msrb.mxu3 %v8575_v18  ;;  %v8603_v18 = vld [vmem:[#allocation37_spill] sm:$0xff] }
 0x272   : > { %3031 = vmatpush.bf16.msrb.mxu0 %v8576_v26  ;;  %3145 = vmatpush.bf16.msrb.mxu1 %v8577_v30  ;;  %v8605_v26 = vld [vmem:[#allocation46_spill] sm:$0xff]  ;;  %v8606_v30 = vld [vmem:[#allocation40_spill] sm:$0xff] }
 0x274   : > { %3258 = vmatpush.bf16.msrb.mxu2 %v8579_v35  ;;  %v8608_v35 = vld [vmem:[#allocation48_spill] sm:$0xff] }
 0x275   : > { %3372 = vmatpush.bf16.msrb.mxu3 %v8581_v45  ;;  %3032 = vmatmul.bf16.vlgmr.msrb.gmra.mxu0 %v5495_v22  ;;  %v7700_v45 = vld [vmem:[%s8309_s6] sm:$0xf] }
 0x276   : > { %4180 = vmatpush.bf16.msra.mxu0 %v8578_v34  ;;  %4193 = vmatpush.bf16.msra.mxu1 %v8580_v39  ;;  %v8607_v34 = vld [vmem:[#allocation41_spill] sm:$0xff]  ;;  %v5497_v39 = vld [vmem:[%s5645_s12 + $0x10] sm:$0xff]  ;;  %8609 = vst [vmem:[#allocation5_spill] sm:$0xff] %v7700_v45 }
 0x277   : > { %3146 = vmatmul.bf16.vlgmr.msrb.gmra.mxu1 %v5495_v22 }
 0x278   : > { %3259 = vmatpush.bf16.msrb.mxu2 %v8583_v47  ;;  %v8611_v47 = vld [vmem:[#allocation49_spill] sm:$0xff] }
 0x279   : > { %3373 = vmatpush.bf16.msrb.mxu3 %v8585_v57  ;;  %v8432_v57 = vperm.slane %v7700_v45, 0 }
 0x27a   : > { %4181 = vmatpush.bf16.msra.mxu0 %v8582_v46  ;;  %4194 = vmatpush.bf16.msra.mxu1 %v8584_v51  ;;  %v8610_v46 = vld [vmem:[#allocation45_spill] sm:$0xff]  ;;  %v8612_v51 = vld [vmem:[#allocation47_spill] sm:$0xff] }
 0x27b   : > { %3260 = vmatmul.bf16.vlgmr.msrb.gmra.mxu2 %v5495_v22 }
 0x27c   : > { %4206 = vmatpush.bf16.msra.mxu2 %v8586_v58  ;;  %3374 = vmatmul.bf16.vlgmr.msrb.gmra.mxu3 %v5495_v22  ;;  %v8604_v22 = vld [vmem:[#allocation44_spill] sm:$0xff]  ;;  %v8613_v58 = vld [vmem:[#allocation50_spill] sm:$0xff] }
 0x27d   : > { %4219 = vmatpush.bf16.msra.mxu3 %v8587_v6 }
 0x27e   : > { %4182 = vmatpush.bf16.msra.mxu0 %v8588_v10  ;;  %4195 = vmatpush.bf16.msra.mxu1 %v8589_v20  ;;  %v8616_v10 = vld [vmem:[#allocation53_spill] sm:$0xff]  ;;  %v8617_v20 = vld [vmem:[#allocation54_spill] sm:$0xff] }
 0x280   : > { %4207 = vmatpush.bf16.msra.mxu2 %v8590_v14 }
 0x281   : > { %4220 = vmatpush.bf16.msra.mxu3 %v8591_v55 }
 0x282   : > { %4183 = vmatpush.bf16.msra.mxu0 %v8592_v42  ;;  %4196 = vmatpush.bf16.msra.mxu1 %v8593_v32  ;;  %v8618_v42 = vld [vmem:[#allocation56_spill] sm:$0xff]  ;;  %v8619_v32 = vld [vmem:[#allocation55_spill] sm:$0xff] }
 0x284   : > { %4208 = vmatpush.bf16.msra.mxu2 %v8594_v16 }
 0x285   : > { %4221 = vmatpush.bf16.msra.mxu3 %v8595_v31  ;;  %3037 = vmatmul.bf16.gmra.mxu0 %v5496_v25  ;;  %v8621_v31 = vld [vmem:[#allocation60_spill] sm:$0xff] }
 0x286   : > { %4184 = vmatpush.bf16.msra.mxu0 %v8596_v27  ;;  %4197 = vmatpush.bf16.msra.mxu1 %v8597_v40  ;;  %v8622_v27 = vld [vmem:[#allocation61_spill] sm:$0xff]  ;;  %v8623_v40 = vld [vmem:[#allocation58_spill] sm:$0xff] }
 0x287   : > { %3151 = vmatmul.bf16.gmra.mxu1 %v5496_v25 }
 0x288   : > { %4209 = vmatpush.bf16.msra.mxu2 %v8598_v4  ;;  %v8624_v4 = vld [vmem:[#allocation59_spill] sm:$0xff] }
 0x289   : > { %4222 = vmatpush.bf16.msra.mxu3 %v8599_v8 }
 0x28a   : > { %4185 = vmatpush.bf16.msra.mxu0 %v8600_v9  ;;  %4198 = vmatpush.bf16.msra.mxu1 %v8601_v13  ;;  %v8625_v13 = vld [vmem:[#allocation64_spill] sm:$0xff] }
 0x28b   : > { %3265 = vmatmul.bf16.gmra.mxu2 %v5496_v25 }
 0x28c   : > { %4210 = vmatpush.bf16.msra.mxu2 %v8602_v17  ;;  %3379 = vmatmul.bf16.gmra.mxu3 %v5496_v25  ;;  %v8620_v25 = vld [vmem:[#allocation57_spill] sm:$0xff]  ;;  %v5498_v17 = vld [vmem:[%s5645_s12 + $0x18] sm:$0xff] }
 0x28d   : > { %4223 = vmatpush.bf16.msra.mxu3 %v8603_v18  ;;  %v8626_v18 = vld [vmem:[#allocation65_spill] sm:$0xff] }
 0x28e   : > { %4186 = vmatpush.bf16.msra.mxu0 %v8604_v22  ;;  %4199 = vmatpush.bf16.msra.mxu1 %v8605_v26  ;;  %v8627_v22 = vld [vmem:[#allocation62_spill] sm:$0xff]  ;;  %v8628_v26 = vld [vmem:[#allocation63_spill] sm:$0xff] }
 0x290   : > { %4211 = vmatpush.bf16.msra.mxu2 %v8606_v30 }
 0x291   : > { %4224 = vmatpush.bf16.msra.mxu3 %v8607_v34  ;;  %v2628_v6 = vpop.f32.mrf.mxu0  ;;  %v8629_v34 = vld [vmem:[#allocation68_spill] sm:$0xff] }
 0x292   : > { %4187 = vmatpush.bf16.msra.mxu0 %v6548_v60  ;;  %4200 = vmatpush.bf16.msra.mxu1 %v6566_v23  ;;  %v8614_v60 = vld [vmem:[#allocation51_spill] sm:$0xff]  ;;  %v8615_v23 = vld [vmem:[#allocation52_spill] sm:$0xff]  ;;  %v2629_v14 = vadd.f32 %v2628_v6, %v8432_v57  ;;  %v2641_v55 = vpop.f32.mrf.mxu1  ;;  %v8635_v6 = vld [vmem:[#allocation70_spill] sm:$0xff] }
 0x294   : > { %4212 = vmatpush.bf16.msra.mxu2 %v8610_v46  ;;  %v7716_v16 = vadd.f32 %v2641_v55, %v2629_v14  ;;  %v8631_v46 = vld [vmem:[#allocation66_spill] sm:$0xff]  ;;  %v8637_v14 = vld [vmem:[#allocation76_spill] sm:$0xff] }
 0x295   : > { %4225 = vmatpush.bf16.msra.mxu3 %v8612_v51  ;;  %3042 = vmatmul.bf16.gmra.mxu0 %v5497_v39  ;;  %v8632_v51 = vld [vmem:[#allocation67_spill] sm:$0xff] }
 0x296   : > { %4232 = vmatpush.bf16.msrb.mxu0 %v8608_v35  ;;  %4245 = vmatpush.bf16.msrb.mxu1 %v8611_v47 }
 0x297   : > { %3156 = vmatmul.bf16.gmra.mxu1 %v5497_v39 }
 0x298   : > { %4213 = vmatpush.bf16.msra.mxu2 %v8615_v23  ;;  %v8634_v23 = vld [vmem:[#allocation73_spill] sm:$0xff] }
 0x299   : > { %4226 = vmatpush.bf16.msra.mxu3 %v8616_v10  ;;  %v2630_v8 = vpop.f32.mrf.mxu0  ;;  %v8636_v10 = vld [vmem:[#allocation71_spill] sm:$0xff] }
 0x29a   : > { %4233 = vmatpush.bf16.msrb.mxu0 %v8613_v58  ;;  %4246 = vmatpush.bf16.msrb.mxu1 %v8614_v60  ;;  %v2643_v9 = vpop.f32.mrf.mxu1  ;;  %v8633_v60 = vld [vmem:[#allocation72_spill] sm:$0xff] }
 0x29b   : > { %3270 = vmatmul.bf16.gmra.mxu2 %v5497_v39 }
 0x29c   : > { %4258 = vmatpush.bf16.msrb.mxu2 %v8617_v20  ;;  %3384 = vmatmul.bf16.gmra.mxu3 %v5497_v39  ;;  %v8630_v39 = vld [vmem:[#allocation69_spill] sm:$0xff] }
 0x29d   : > { %4271 = vmatpush.bf16.msrb.mxu3 %v8619_v32  ;;  %v8639_v32 = vld [vmem:[#allocation74_spill] sm:$0xff] }
 0x29e   : > { %4234 = vmatpush.bf16.msrb.mxu0 %v8618_v42  ;;  %4247 = vmatpush.bf16.msrb.mxu1 %v8620_v25  ;;  %v2654_v30 = vpop.f32.mrf.mxu2  ;;  %v8638_v42 = vld [vmem:[#allocation77_spill] sm:$0xff] }
 0x29f   : > { %v7728_v35 = vpop.f32.mrf.mxu3 }
 0x2a0   : > { %4259 = vmatpush.bf16.msrb.mxu2 %v8623_v40  ;;  %v5499_v40 = vld [vmem:[%s5645_s12 + $0x20] sm:$0xff] }
 0x2a1   : > { %4272 = vmatpush.bf16.msrb.mxu3 %v8624_v4  ;;  %v2680_v47 = vpop.f32.mrf.mxu0 }
 0x2a2   : > { %4235 = vmatpush.bf16.msrb.mxu0 %v8621_v31  ;;  %4248 = vmatpush.bf16.msrb.mxu1 %v8622_v27  ;;  %v2693_v58 = vpop.f32.mrf.mxu1  ;;  %v8640_v31 = vld [vmem:[#allocation75_spill] sm:$0xff] }
 0x2a4   : > { %4260 = vmatpush.bf16.msrb.mxu2 %v8627_v22 }
 0x2a5   : > { %4273 = vmatpush.bf16.msrb.mxu3 %v8628_v26  ;;  %3047 = vmatmul.bf16.gmra.mxu0 %v5498_v17  ;;  %v5500_v26 = vld [vmem:[%s5645_s12 + $0x28] sm:$0xff] }
 0x2a6   : > { %4236 = vmatpush.bf16.msrb.mxu0 %v8625_v13  ;;  %4249 = vmatpush.bf16.msrb.mxu1 %v8626_v18  ;;  %v2656_v20 = vpop.f32.mrf.mxu2 }
 0x2a7   : > { %3161 = vmatmul.bf16.gmra.mxu1 %v5498_v17  ;;  %v2669_v55 = vpop.f32.mrf.mxu3 }
 0x2a8   : > { %4261 = vmatpush.bf16.msrb.mxu2 %v8631_v46  ;;  %v8430_v46 = vperm.slane %v7700_v45, 2 }
 0x2a9   : > { %4274 = vmatpush.bf16.msrb.mxu3 %v8632_v51  ;;  %v2682_v25 = vpop.f32.mrf.mxu0 }
 0x2aa   : > { %4237 = vmatpush.bf16.msrb.mxu0 %v8629_v34  ;;  %4250 = vmatpush.bf16.msrb.mxu1 %v8630_v39  ;;  %v2695_v27 = vpop.f32.mrf.mxu1  ;;  %v8431_v39 = vperm.slane %v7700_v45, 1  ;;  %v8429_v25 = vperm.slane %v7700_v45, 3 }
 0x2ab   : > { %3275 = vmatmul.bf16.gmra.mxu2 %v5498_v17 }
 0x2ac   : > { %4262 = vmatpush.bf16.msrb.mxu2 %v8635_v6  ;;  %3389 = vmatmul.bf16.gmra.mxu3 %v5498_v17  ;;  %v2681_v51 = vadd.f32 %v2680_v47, %v8431_v39 }
 0x2ad   : > { %4275 = vmatpush.bf16.msrb.mxu3 %v8636_v10 }
 0x2ae   : > { %4238 = vmatpush.bf16.msrb.mxu0 %v8633_v60  ;;  %4251 = vmatpush.bf16.msrb.mxu1 %v8634_v23  ;;  %v2706_v4 = vpop.f32.mrf.mxu2  ;;  %v5501_v60 = vld [vmem:[%s5645_s12 + $0x30] sm:$0xff]  ;;  %v2694_v6 = vadd.f32 %v2693_v58, %v2681_v51 }
 0x2af   : > { %v2719_v8 = vpop.f32.mrf.mxu3 }
 0x2b0   : > { %4263 = vmatpush.bf16.msrb.mxu2 %v8639_v32  ;;  %v2707_v20 = vadd.f32 %v2706_v4, %v2694_v6 }
 0x2b1   : > { %4276 = vmatpush.bf16.msrb.mxu3 %v8640_v31 }
 0x2b2   : > { %4239 = vmatpush.bf16.msrb.mxu0 %v8637_v14  ;;  %4252 = vmatpush.bf16.msrb.mxu1 %v8638_v42  ;;  %v2732_v9 = vpop.f32.mrf.mxu0  ;;  %v2655_v42 = vadd.f32 %v2654_v30, %v7716_v16  ;;  %v7756_v31 = vadd.f32 %v2719_v8, %v2707_v20 }
 0x2b3   : > { %v2733_v23 = vadd.f32 %v2732_v9, %v8430_v46 }
 0x2b4   : > { %4264 = vmatpush.bf16.msrb.mxu2 %v6975_v11  ;;  %v2745_v13 = vpop.f32.mrf.mxu1  ;;  %8641 = vst [vmem:[#allocation6_spill] sm:$0xff] %v7756_v31  ;;  %v7759_v47 = vadd.f32 %v7728_v35, %v2655_v42  ;;  %v2828_v16 = vmul.f32 %v7756_v31, %v7756_v31  ;;  %v8645_v42 = vld [vmem:[#allocation17_spill] sm:$0xff] }
 0x2b5   : > { %4277 = vmatpush.bf16.msrb.mxu3 %v6993_v12  ;;  %3052 = vmatmul.bf16.gmra.mxu0 %v5499_v40  ;;  %v2746_v14 = vadd.f32 %v2745_v13, %v2733_v23  ;;  %v5502_v13 = vld [vmem:[%s5645_s12 + $0x38] sm:$0xff] }
 0x2b6   : > { %v2708_v17 = vpop.f32.mrf.mxu2  ;;  %8642 = vst [vmem:[#allocation9_spill] sm:$0xff] %v7759_v47  ;;  %v2827_v4 = vmul.f32 %v7759_v47, %v7759_v47 }
 0x2b7   : > { %3166 = vmatmul.bf16.gmra.mxu1 %v5499_v40  ;;  %v2721_v18 = vpop.f32.mrf.mxu3  ;;  %v2833_v17 = vsel %vm2831_vm10, %v2828_v16, 0.0  ;;  %v8647_v16 = vld [vmem:[#allocation19_spill] sm:$0xff] }
 0x2b8   : > { %4265 = vmatpush.bf16.msrb.mxu2 %v6997_v37 }
 0x2b9   : > { %4278 = vmatpush.bf16.msrb.mxu3 %v7003_v63 }
 0x2ba   : > { %v2734_v22 = vpop.f32.mrf.mxu0 }
 0x2bb   : > { %3280 = vmatmul.bf16.gmra.mxu2 %v5499_v40 }
 0x2bc   : > { %3394 = vmatmul.bf16.gmra.mxu3 %v5499_v40  ;;  %v2747_v11 = vpop.f32.mrf.mxu1 }
 0x2bd   : > { %v2832_v11 = vsel %vm2831_vm10, %v2827_v4, 0.0 }
 0x2be   : > { %v2758_v34 = vpop.f32.mrf.mxu2 }
 0x2bf   : > { %v2771_v12 = vpop.f32.mrf.mxu3  ;;  %v2759_v32 = vadd.f32 %v2758_v34, %v2746_v14 }
 0x2c1   : > { %v7761_v27 = vadd.f32 %v2771_v12, %v2759_v32  ;;  %v2834_v12 = vadd.f32 %v2833_v17, %v2832_v11 }
 0x2c3   : > { %8643 = vst [vmem:[#allocation10_spill] sm:$0xff] %v7761_v27  ;;  %v2829_v8 = vmul.f32 %v7761_v27, %v7761_v27 }
 0x2c5   : > { %3057 = vmatmul.bf16.gmra.mxu0 %v5500_v26  ;;  %v2835_v34 = vsel %vm2831_vm10, %v2829_v8, 0.0 }
 0x2c6   : > { %v2760_v37 = vpop.f32.mrf.mxu2 }
 0x2c7   : > { %3171 = vmatmul.bf16.gmra.mxu1 %v5500_v26  ;;  %v2773_v63 = vpop.f32.mrf.mxu3 }
 0x2c8   : > { %v2836_v63 = vadd.f32 %v2835_v34, %v2834_v12 }
 0x2cb   : > { %3285 = vmatmul.bf16.gmra.mxu2 %v5500_v26 }
 0x2cc   : > { %3399 = vmatmul.bf16.gmra.mxu3 %v5500_v26 }
 0x2d2   : > { %v2784_v10 = vpop.f32.mrf.mxu0 }
 0x2d3   : > { %v2785_v58 = vadd.f32 %v2784_v10, %v8429_v25  ;;  %v5503_v10 = vld [vmem:[%s5645_s12 + $0x40] sm:$0xff] }
 0x2d4   : > { %v2797_v55 = vpop.f32.mrf.mxu1 }
 0x2d5   : > { %3062 = vmatmul.bf16.gmra.mxu0 %v5501_v60  ;;  %v2798_v9 = vadd.f32 %v2797_v55, %v2785_v58  ;;  %v8646_v58 = vld [vmem:[#allocation18_spill] sm:$0xff] }
 0x2d7   : > { %3176 = vmatmul.bf16.gmra.mxu1 %v5501_v60 }
 0x2da   : > { %v2786_v40 = vpop.f32.mrf.mxu0 }
 0x2db   : > { %3290 = vmatmul.bf16.gmra.mxu2 %v5501_v60 }
 0x2dc   : > { %3404 = vmatmul.bf16.gmra.mxu3 %v5501_v60  ;;  %v2799_v30 = vpop.f32.mrf.mxu1 }
 0x2de   : > { %v2810_v35 = vpop.f32.mrf.mxu2 }
 0x2df   : > { %v2811_v18 = vadd.f32 %v2810_v35, %v2798_v9  ;;  %v2823_v22 = vpop.f32.mrf.mxu3 }
 0x2e1   : > { %v7774_v26 = vadd.f32 %v2823_v22, %v2811_v18 }
 0x2e3   : > { %8644 = vst [vmem:[#allocation7_spill] sm:$0xff] %v7774_v26  ;;  %v2830_v37 = vmul.f32 %v7774_v26, %v7774_v26 }
 0x2e5   : > { %3067 = vmatmul.bf16.gmra.mxu0 %v5502_v13  ;;  %v2837_v51 = vsel %vm2831_vm10, %v2830_v37, 0.0 }
 0x2e6   : > { %v2812_v60 = vpop.f32.mrf.mxu2  ;;  %v2838_v23 = vadd.f32 %v2837_v51, %v2836_v63 }
 0x2e7   : > { %3181 = vmatmul.bf16.gmra.mxu1 %v5502_v13  ;;  %v2825_v6 = vpop.f32.mrf.mxu3  ;;  %v5504_v60 = vld [vmem:[%s5645_s12 + $0x48] sm:$0xff] }
 0x2e8   : > { %2839 = vadd.xlane.f32.xlu0 %v2838_v23 }
 0x2eb   : > { %3295 = vmatmul.bf16.gmra.mxu2 %v5502_v13 }
 0x2ec   : > { %3409 = vmatmul.bf16.gmra.mxu3 %v5502_v13 }
 0x2f2   : > { %v3033_v20 = vpop.f32.mrf.mxu0 }
 0x2f3   : > { %v3034_v55 = vadd.f32 %v3033_v20, %v5947_v61 }
 0x2f4   : > { %v3147_v14 = vpop.f32.mrf.mxu1 }
 0x2f5   : > { %3072 = vmatmul.bf16.gmra.mxu0 %v5503_v10  ;;  %v3148_v32 = vadd.f32 %v3147_v14, %v8645_v42  ;;  %v3648_v40 = vmul.f32 %v3034_v55, %v8646_v58  ;;  %vm3480_vm11 = vcmp.gt.f32.partialorder %v3034_v55, 0.0 }
 0x2f7   : > { %3186 = vmatmul.bf16.gmra.mxu1 %v5503_v10  ;;  %v3649_v30 = vmul.f32 %v3148_v32, %v8647_v16  ;;  %vm3481_vm12 = vcmp.gt.f32.partialorder %v3148_v32, 0.0  ;;  %v3816_v13 = vsel %vm3480_vm11, %v3034_v55, %v3648_v40 }
 0x2f9   : > { %v3817_v18 = vsel %vm3481_vm12, %v3148_v32, %v3649_v30 }
 0x2fa   : > { %v3035_v4 = vpop.f32.mrf.mxu0 }
 0x2fb   : > { %v3036_v8 = vadd.f32 %v3035_v4, %v5947_v61  ;;  %3300 = vmatmul.bf16.gmra.mxu2 %v5503_v10 }
 0x2fc   : > { %v3149_v9 = vpop.f32.mrf.mxu1  ;;  %3414 = vmatmul.bf16.gmra.mxu3 %v5503_v10 }
 0x2fd   : > { %v3150_v35 = vadd.f32 %v3149_v9, %v8645_v42  ;;  %vm3484_vm13 = vcmp.gt.f32.partialorder %v3036_v8, 0.0  ;;  %v3652_v17 = vmul.f32 %v3036_v8, %v8646_v58 }
 0x2fe   : > { %v3261_v11 = vpop.f32.mrf.mxu2 }
 0x2ff   : > { %vm3485_vm14 = vcmp.gt.f32.partialorder %v3150_v35, 0.0  ;;  %v3653_v22 = vmul.f32 %v3150_v35, %v8647_v16  ;;  %v3820_v34 = vsel %vm3484_vm13, %v3036_v8, %v3652_v17  ;;  %v3375_v12 = vpop.f32.mrf.mxu3  ;;  %v3262_v6 = vadd.f32 %v3261_v11, %v5963_v21 }
 0x300   : > { %v3984_v37 = vadd.f32 %v3820_v34, %v3816_v13  ;;  %v3376_v14 = vadd.f32 %v3375_v12, %v5965_v29 }
 0x301   : > { %v3821_v63 = vsel %vm3485_vm14, %v3150_v35, %v3653_v22  ;;  %vm3482_vm1 = vcmp.gt.f32.partialorder %v3262_v6, 0.0  ;;  %v3650_v4 = vmul.f32 %v3262_v6, %v5969_v38 }
 0x302   : > { %v4031_v51 = vadd.f32 %v3821_v63, %v3817_v18  ;;  %v3038_v23 = vpop.f32.mrf.mxu0  ;;  %v3651_v13 = vmul.f32 %v3376_v14, %v5975_v53  ;;  %vm3483_vm2 = vcmp.gt.f32.partialorder %v3376_v14, 0.0 }
 0x303   : > { %v3039_v10 = vadd.f32 %v3038_v23, %v5947_v61  ;;  %v3818_v23 = vsel %vm3482_vm1, %v3262_v6, %v3650_v4 }
 0x304   : > { %v3152_v20 = vpop.f32.mrf.mxu1 }
 0x305   : > { %v3153_v55 = vadd.f32 %v3152_v20, %v8645_v42  ;;  %vm3488_vm15 = vcmp.gt.f32.partialorder %v3039_v10, 0.0  ;;  %v3656_v32 = vmul.f32 %v3039_v10, %v8646_v58  ;;  %3077 = vmatmul.bf16.gmra.mxu0 %v5504_v60 }
 0x306   : > { %v3263_v30 = vpop.f32.mrf.mxu2 }
 0x307   : > { %vm3489_vm0 = vcmp.gt.f32.partialorder %v3153_v55, 0.0  ;;  %v3657_v40 = vmul.f32 %v3153_v55, %v8647_v16  ;;  %3191 = vmatmul.bf16.gmra.mxu1 %v5504_v60  ;;  %v3824_v8 = vsel %vm3488_vm15, %v3039_v10, %v3656_v32  ;;  %v3264_v9 = vadd.f32 %v3263_v30, %v5963_v21  ;;  %v3377_v35 = vpop.f32.mrf.mxu3 }
 0x308   : > { %v3985_v17 = vadd.f32 %v3984_v37, %v3824_v8  ;;  %v3378_v22 = vadd.f32 %v3377_v35, %v5965_v29  ;;  %v3819_v37 = vsel %vm3483_vm2, %v3376_v14, %v3651_v13 }
 0x309   : > { %v3825_v18 = vsel %vm3489_vm0, %v3153_v55, %v3657_v40  ;;  %vm3486_vm3 = vcmp.gt.f32.partialorder %v3264_v9, 0.0  ;;  %v3654_v34 = vmul.f32 %v3264_v9, %v5969_v38 }
 0x30a   : > { %v4032_v11 = vadd.f32 %v4031_v51, %v3825_v18  ;;  %vm3487_vm4 = vcmp.gt.f32.partialorder %v3378_v22, 0.0  ;;  %v3655_v12 = vmul.f32 %v3378_v22, %v5975_v53  ;;  %v3040_v63 = vpop.f32.mrf.mxu0 }
 0x30b   : > { %v3822_v10 = vsel %vm3486_vm3, %v3264_v9, %v3654_v34  ;;  %v3041_v20 = vadd.f32 %v3040_v63, %v5947_v61  ;;  %3305 = vmatmul.bf16.gmra.mxu2 %v5504_v60 }
 0x30c   : > { %v3154_v32 = vpop.f32.mrf.mxu1  ;;  %v4078_v55 = vadd.f32 %v3822_v10, %v3818_v23  ;;  %v3823_v40 = vsel %vm3487_vm4, %v3378_v22, %v3655_v12  ;;  %3419 = vmatmul.bf16.gmra.mxu3 %v5504_v60  ;;  %v5505_v12 = vld [vmem:[%s5645_s12 + $0x50] sm:$0xff] }
 0x30d   : > { %v3155_v30 = vadd.f32 %v3154_v32, %v8645_v42  ;;  %v4125_v51 = vadd.f32 %v3823_v40, %v3819_v37  ;;  %vm3492_vm5 = vcmp.gt.f32.partialorder %v3041_v20, 0.0  ;;  %v3660_v8 = vmul.f32 %v3041_v20, %v8646_v58 }
 0x30e   : > { %v3266_v6 = vpop.f32.mrf.mxu2 }
 0x30f   : > { %vm3493_vm6 = vcmp.gt.f32.partialorder %v3155_v30, 0.0  ;;  %v3661_v35 = vmul.f32 %v3155_v30, %v8647_v16  ;;  %v3828_v4 = vsel %vm3492_vm5, %v3041_v20, %v3660_v8  ;;  %v3267_v9 = vadd.f32 %v3266_v6, %v5963_v21  ;;  %v3380_v18 = vpop.f32.mrf.mxu3 }
 0x310   : > { %v3986_v34 = vadd.f32 %v3985_v17, %v3828_v4  ;;  %v3381_v13 = vadd.f32 %v3380_v18, %v5965_v29 }
 0x311   : > { %v3829_v14 = vsel %vm3493_vm6, %v3155_v30, %v3661_v35  ;;  %vm3490_vm7 = vcmp.gt.f32.partialorder %v3267_v9, 0.0  ;;  %v3658_v60 = vmul.f32 %v3267_v9, %v5969_v38 }
 0x312   : > { %v4033_v22 = vadd.f32 %v4032_v11, %v3829_v14  ;;  %vm3491_vm8 = vcmp.gt.f32.partialorder %v3381_v13, 0.0  ;;  %v3659_v63 = vmul.f32 %v3381_v13, %v5975_v53  ;;  %v3043_v23 = vpop.f32.mrf.mxu0 }
 0x313   : > { %v3826_v10 = vsel %vm3490_vm7, %v3267_v9, %v3658_v60  ;;  %v3044_v32 = vadd.f32 %v3043_v23, %v5947_v61 }
 0x314   : > { %v3157_v20 = vpop.f32.mrf.mxu1  ;;  %v4079_v37 = vadd.f32 %v4078_v55, %v3826_v10  ;;  %v3827_v40 = vsel %vm3491_vm8, %v3381_v13, %v3659_v63 }
 0x315   : > { %v3158_v17 = vadd.f32 %v3157_v20, %v8645_v42  ;;  %v4126_v30 = vadd.f32 %v4125_v51, %v3827_v40  ;;  %vm3496_vm9 = vcmp.gt.f32.partialorder %v3044_v32, 0.0  ;;  %v3664_v11 = vmul.f32 %v3044_v32, %v8646_v58  ;;  %3082 = vmatmul.bf16.gmra.mxu0 %v5505_v12 }
 0x316   : > { %v3268_v35 = vpop.f32.mrf.mxu2 }
 0x317   : > { %vm3497_vm11 = vcmp.gt.f32.partialorder %v3158_v17, 0.0  ;;  %v3665_v8 = vmul.f32 %v3158_v17, %v8647_v16  ;;  %3196 = vmatmul.bf16.gmra.mxu1 %v5505_v12  ;;  %v3832_v6 = vsel %vm3496_vm9, %v3044_v32, %v3664_v11  ;;  %v3269_v4 = vadd.f32 %v3268_v35, %v5963_v21  ;;  %v3382_v9 = vpop.f32.mrf.mxu3 }
 0x318   : > { %v3987_v18 = vadd.f32 %v3986_v34, %v3832_v6  ;;  %v3383_v55 = vadd.f32 %v3382_v9, %v5965_v29 }
 0x319   : > { %v3833_v14 = vsel %vm3497_vm11, %v3158_v17, %v3665_v8  ;;  %vm3494_vm12 = vcmp.gt.f32.partialorder %v3269_v4, 0.0  ;;  %v3662_v51 = vmul.f32 %v3269_v4, %v5969_v38 }
 0x31a   : > { %v4034_v13 = vadd.f32 %v4033_v22, %v3833_v14  ;;  %vm3495_vm13 = vcmp.gt.f32.partialorder %v3383_v55, 0.0  ;;  %v3663_v60 = vmul.f32 %v3383_v55, %v5975_v53  ;;  %v3045_v63 = vpop.f32.mrf.mxu0 }
 0x31b   : > { %v3830_v23 = vsel %vm3494_vm12, %v3269_v4, %v3662_v51  ;;  %v3046_v10 = vadd.f32 %v3045_v63, %v5947_v61  ;;  %3310 = vmatmul.bf16.gmra.mxu2 %v5505_v12 }
 0x31c   : > { %v3159_v20 = vpop.f32.mrf.mxu1  ;;  %v4080_v32 = vadd.f32 %v4079_v37, %v3830_v23  ;;  %v3831_v40 = vsel %vm3495_vm13, %v3383_v55, %v3663_v60  ;;  %3424 = vmatmul.bf16.gmra.mxu3 %v5505_v12 }
 0x31d   : > { %v3160_v34 = vadd.f32 %v3159_v20, %v8645_v42  ;;  %v4127_v17 = vadd.f32 %v4126_v30, %v3831_v40  ;;  %vm3500_vm14 = vcmp.gt.f32.partialorder %v3046_v10, 0.0  ;;  %v3668_v22 = vmul.f32 %v3046_v10, %v8646_v58  ;;  %v5506_v30 = vld [vmem:[%s5645_s12 + $0x58] sm:$0xff] }
 0x31e   : > { %v3271_v8 = vpop.f32.mrf.mxu2 }
 0x31f   : > { %vm3501_vm15 = vcmp.gt.f32.partialorder %v3160_v34, 0.0  ;;  %v3669_v11 = vmul.f32 %v3160_v34, %v8647_v16  ;;  %v3836_v35 = vsel %vm3500_vm14, %v3046_v10, %v3668_v22  ;;  %v3272_v6 = vadd.f32 %v3271_v8, %v5963_v21  ;;  %v3385_v4 = vpop.f32.mrf.mxu3 }
 0x320   : > { %v3988_v9 = vadd.f32 %v3987_v18, %v3836_v35  ;;  %v3386_v37 = vadd.f32 %v3385_v4, %v5965_v29 }
 0x321   : > { %v3837_v14 = vsel %vm3501_vm15, %v3160_v34, %v3669_v11  ;;  %vm3498_vm0 = vcmp.gt.f32.partialorder %v3272_v6, 0.0  ;;  %v3666_v12 = vmul.f32 %v3272_v6, %v5969_v38 }
 0x322   : > { %v4035_v55 = vadd.f32 %v4034_v13, %v3837_v14  ;;  %vm3499_vm1 = vcmp.gt.f32.partialorder %v3386_v37, 0.0  ;;  %v3667_v51 = vmul.f32 %v3386_v37, %v5975_v53  ;;  %v3048_v60 = vpop.f32.mrf.mxu0 }
 0x323   : > { %v3834_v63 = vsel %vm3498_vm0, %v3272_v6, %v3666_v12  ;;  %v3049_v23 = vadd.f32 %v3048_v60, %v5947_v61 }
 0x324   : > { %v3162_v10 = vpop.f32.mrf.mxu1  ;;  %v4081_v20 = vadd.f32 %v4080_v32, %v3834_v63  ;;  %v3835_v40 = vsel %vm3499_vm1, %v3386_v37, %v3667_v51 }
 0x325   : > { %v3163_v18 = vadd.f32 %v3162_v10, %v8645_v42  ;;  %v4128_v34 = vadd.f32 %v4127_v17, %v3835_v40  ;;  %vm3504_vm2 = vcmp.gt.f32.partialorder %v3049_v23, 0.0  ;;  %v3672_v13 = vmul.f32 %v3049_v23, %v8646_v58  ;;  %3087 = vmatmul.bf16.gmra.mxu0 %v5506_v30 }
 0x326   : > { %v3273_v11 = vpop.f32.mrf.mxu2 }
 0x327   : > { %vm3505_vm3 = vcmp.gt.f32.partialorder %v3163_v18, 0.0  ;;  %v3673_v22 = vmul.f32 %v3163_v18, %v8647_v16  ;;  %3201 = vmatmul.bf16.gmra.mxu1 %v5506_v30  ;;  %v3840_v8 = vsel %vm3504_vm2, %v3049_v23, %v3672_v13  ;;  %v3274_v35 = vadd.f32 %v3273_v11, %v5963_v21  ;;  %v3387_v6 = vpop.f32.mrf.mxu3 }
 0x328   : > { %v3989_v4 = vadd.f32 %v3988_v9, %v3840_v8  ;;  %v3388_v32 = vadd.f32 %v3387_v6, %v5965_v29 }
 0x329   : > { %v3841_v14 = vsel %vm3505_vm3, %v3163_v18, %v3673_v22  ;;  %vm3502_vm4 = vcmp.gt.f32.partialorder %v3274_v35, 0.0  ;;  %v3670_v17 = vmul.f32 %v3274_v35, %v5969_v38 }
 0x32a   : > { %v4036_v37 = vadd.f32 %v4035_v55, %v3841_v14  ;;  %vm3503_vm5 = vcmp.gt.f32.partialorder %v3388_v32, 0.0  ;;  %v3671_v12 = vmul.f32 %v3388_v32, %v5975_v53  ;;  %v3050_v51 = vpop.f32.mrf.mxu0 }
 0x32b   : > { %v3838_v60 = vsel %vm3502_vm4, %v3274_v35, %v3670_v17  ;;  %v3051_v63 = vadd.f32 %v3050_v51, %v5947_v61  ;;  %3315 = vmatmul.bf16.gmra.mxu2 %v5506_v30 }
 0x32c   : > { %v3164_v10 = vpop.f32.mrf.mxu1  ;;  %v4082_v23 = vadd.f32 %v4081_v20, %v3838_v60  ;;  %v3839_v40 = vsel %vm3503_vm5, %v3388_v32, %v3671_v12  ;;  %3429 = vmatmul.bf16.gmra.mxu3 %v5506_v30 }
 0x32d   : > { %v3165_v9 = vadd.f32 %v3164_v10, %v8645_v42  ;;  %v4129_v18 = vadd.f32 %v4128_v34, %v3839_v40  ;;  %vm3508_vm6 = vcmp.gt.f32.partialorder %v3051_v63, 0.0  ;;  %v3676_v55 = vmul.f32 %v3051_v63, %v8646_v58  ;;  %v5507_v34 = vld [vmem:[%s5645_s12 + $0x60] sm:$0xff] }
 0x32e   : > { %v3276_v22 = vpop.f32.mrf.mxu2 }
 0x32f   : > { %vm3509_vm7 = vcmp.gt.f32.partialorder %v3165_v9, 0.0  ;;  %v3677_v13 = vmul.f32 %v3165_v9, %v8647_v16  ;;  %v3844_v11 = vsel %vm3508_vm6, %v3051_v63, %v3676_v55  ;;  %v3277_v8 = vadd.f32 %v3276_v22, %v5963_v21  ;;  %v3390_v35 = vpop.f32.mrf.mxu3 }
 0x330   : > { %v3990_v6 = vadd.f32 %v3989_v4, %v3844_v11  ;;  %v3391_v20 = vadd.f32 %v3390_v35, %v5965_v29 }
 0x331   : > { %v3845_v14 = vsel %vm3509_vm7, %v3165_v9, %v3677_v13  ;;  %vm3506_vm8 = vcmp.gt.f32.partialorder %v3277_v8, 0.0  ;;  %v3674_v30 = vmul.f32 %v3277_v8, %v5969_v38 }
 0x332   : > { %v4037_v32 = vadd.f32 %v4036_v37, %v3845_v14  ;;  %vm3507_vm9 = vcmp.gt.f32.partialorder %v3391_v20, 0.0  ;;  %v3675_v17 = vmul.f32 %v3391_v20, %v5975_v53  ;;  %v3053_v12 = vpop.f32.mrf.mxu0 }
 0x333   : > { %v3842_v51 = vsel %vm3506_vm8, %v3277_v8, %v3674_v30  ;;  %v3054_v60 = vadd.f32 %v3053_v12, %v5947_v61 }
 0x334   : > { %v3167_v63 = vpop.f32.mrf.mxu1  ;;  %v4083_v10 = vadd.f32 %v4082_v23, %v3842_v51  ;;  %v3843_v40 = vsel %vm3507_vm9, %v3391_v20, %v3675_v17 }
 0x335   : > { %v3168_v4 = vadd.f32 %v3167_v63, %v8645_v42  ;;  %v4130_v9 = vadd.f32 %v4129_v18, %v3843_v40  ;;  %vm3512_vm11 = vcmp.gt.f32.partialorder %v3054_v60, 0.0  ;;  %v3680_v37 = vmul.f32 %v3054_v60, %v8646_v58  ;;  %3092 = vmatmul.bf16.gmra.mxu0 %v5507_v34 }
 0x336   : > { %v3278_v13 = vpop.f32.mrf.mxu2 }
 0x337   : > { %vm3513_vm12 = vcmp.gt.f32.partialorder %v3168_v4, 0.0  ;;  %v3681_v55 = vmul.f32 %v3168_v4, %v8647_v16  ;;  %3206 = vmatmul.bf16.gmra.mxu1 %v5507_v34  ;;  %v3848_v22 = vsel %vm3512_vm11, %v3054_v60, %v3680_v37  ;;  %v3279_v11 = vadd.f32 %v3278_v13, %v5963_v21  ;;  %v3392_v8 = vpop.f32.mrf.mxu3 }
 0x338   : > { %v3991_v35 = vadd.f32 %v3990_v6, %v3848_v22  ;;  %v3393_v23 = vadd.f32 %v3392_v8, %v5965_v29 }
 0x339   : > { %v3849_v14 = vsel %vm3513_vm12, %v3168_v4, %v3681_v55  ;;  %vm3510_vm13 = vcmp.gt.f32.partialorder %v3279_v11, 0.0  ;;  %v3678_v18 = vmul.f32 %v3279_v11, %v5969_v38 }
 0x33a   : > { %v4038_v20 = vadd.f32 %v4037_v32, %v3849_v14  ;;  %vm3511_vm14 = vcmp.gt.f32.partialorder %v3393_v23, 0.0  ;;  %v3679_v30 = vmul.f32 %v3393_v23, %v5975_v53  ;;  %v3055_v17 = vpop.f32.mrf.mxu0 }
 0x33b   : > { %v3846_v12 = vsel %vm3510_vm13, %v3279_v11, %v3678_v18  ;;  %v3056_v51 = vadd.f32 %v3055_v17, %v5947_v61  ;;  %3320 = vmatmul.bf16.gmra.mxu2 %v5507_v34 }
 0x33c   : > { %v3169_v63 = vpop.f32.mrf.mxu1  ;;  %v4084_v60 = vadd.f32 %v4083_v10, %v3846_v12  ;;  %v3847_v40 = vsel %vm3511_vm14, %v3393_v23, %v3679_v30  ;;  %3434 = vmatmul.bf16.gmra.mxu3 %v5507_v34 }
 0x33d   : > { %v3170_v6 = vadd.f32 %v3169_v63, %v8645_v42  ;;  %v4131_v4 = vadd.f32 %v4130_v9, %v3847_v40  ;;  %vm3516_vm15 = vcmp.gt.f32.partialorder %v3056_v51, 0.0  ;;  %v3684_v32 = vmul.f32 %v3056_v51, %v8646_v58  ;;  %v5508_v9 = vld [vmem:[%s5645_s12 + $0x68] sm:$0xff] }
 0x33e   : > { %v3281_v55 = vpop.f32.mrf.mxu2 }
 0x33f   : > { %vm3517_vm0 = vcmp.gt.f32.partialorder %v3170_v6, 0.0  ;;  %v3685_v37 = vmul.f32 %v3170_v6, %v8647_v16  ;;  %v3852_v13 = vsel %vm3516_vm15, %v3056_v51, %v3684_v32  ;;  %v3282_v22 = vadd.f32 %v3281_v55, %v5963_v21  ;;  %v3395_v11 = vpop.f32.mrf.mxu3 }
 0x340   : > { %v3992_v8 = vadd.f32 %v3991_v35, %v3852_v13  ;;  %v3396_v10 = vadd.f32 %v3395_v11, %v5965_v29 }
 0x341   : > { %v3853_v14 = vsel %vm3517_vm0, %v3170_v6, %v3685_v37  ;;  %vm3514_vm1 = vcmp.gt.f32.partialorder %v3282_v22, 0.0  ;;  %v3682_v34 = vmul.f32 %v3282_v22, %v5969_v38 }
 0x342   : > { %v4039_v23 = vadd.f32 %v4038_v20, %v3853_v14  ;;  %vm3515_vm2 = vcmp.gt.f32.partialorder %v3396_v10, 0.0  ;;  %v3683_v18 = vmul.f32 %v3396_v10, %v5975_v53  ;;  %v3058_v30 = vpop.f32.mrf.mxu0 }
 0x343   : > { %v3850_v17 = vsel %vm3514_vm1, %v3282_v22, %v3682_v34  ;;  %v3059_v12 = vadd.f32 %v3058_v30, %v5947_v61 }
 0x344   : > { %v3172_v51 = vpop.f32.mrf.mxu1  ;;  %v4085_v63 = vadd.f32 %v4084_v60, %v3850_v17  ;;  %v3851_v40 = vsel %vm3515_vm2, %v3396_v10, %v3683_v18 }
 0x345   : > { %v3173_v35 = vadd.f32 %v3172_v51, %v8645_v42  ;;  %v4132_v6 = vadd.f32 %v4131_v4, %v3851_v40  ;;  %vm3520_vm3 = vcmp.gt.f32.partialorder %v3059_v12, 0.0  ;;  %v3688_v20 = vmul.f32 %v3059_v12, %v8646_v58  ;;  %3097 = vmatmul.bf16.gmra.mxu0 %v5508_v9 }
 0x346   : > { %v3283_v37 = vpop.f32.mrf.mxu2 }
 0x347   : > { %vm3521_vm4 = vcmp.gt.f32.partialorder %v3173_v35, 0.0  ;;  %v3689_v32 = vmul.f32 %v3173_v35, %v8647_v16  ;;  %3211 = vmatmul.bf16.gmra.mxu1 %v5508_v9  ;;  %v3856_v55 = vsel %vm3520_vm3, %v3059_v12, %v3688_v20  ;;  %v3284_v13 = vadd.f32 %v3283_v37, %v5963_v21  ;;  %v3397_v22 = vpop.f32.mrf.mxu3 }
 0x348   : > { %v3993_v11 = vadd.f32 %v3992_v8, %v3856_v55  ;;  %v3398_v60 = vadd.f32 %v3397_v22, %v5965_v29 }
 0x349   : > { %v3857_v14 = vsel %vm3521_vm4, %v3173_v35, %v3689_v32  ;;  %vm3518_vm5 = vcmp.gt.f32.partialorder %v3284_v13, 0.0  ;;  %v3686_v4 = vmul.f32 %v3284_v13, %v5969_v38 }
 0x34a   : > { %v4040_v10 = vadd.f32 %v4039_v23, %v3857_v14  ;;  %vm3519_vm6 = vcmp.gt.f32.partialorder %v3398_v60, 0.0  ;;  %v3687_v34 = vmul.f32 %v3398_v60, %v5975_v53  ;;  %v3060_v18 = vpop.f32.mrf.mxu0 }
 0x34b   : > { %v3854_v30 = vsel %vm3518_vm5, %v3284_v13, %v3686_v4  ;;  %v3061_v17 = vadd.f32 %v3060_v18, %v5947_v61  ;;  %3325 = vmatmul.bf16.gmra.mxu2 %v5508_v9 }
 0x34c   : > { %v3174_v51 = vpop.f32.mrf.mxu1  ;;  %v4086_v12 = vadd.f32 %v4085_v63, %v3854_v30  ;;  %v3855_v40 = vsel %vm3519_vm6, %v3398_v60, %v3687_v34  ;;  %3439 = vmatmul.bf16.gmra.mxu3 %v5508_v9 }
 0x34d   : > { %v3175_v8 = vadd.f32 %v3174_v51, %v8645_v42  ;;  %v4133_v35 = vadd.f32 %v4132_v6, %v3855_v40  ;;  %vm3524_vm7 = vcmp.gt.f32.partialorder %v3061_v17, 0.0  ;;  %v3692_v23 = vmul.f32 %v3061_v17, %v8646_v58  ;;  %v5509_v6 = vld [vmem:[%s5645_s12 + $0x70] sm:$0xff] }
 0x34e   : > { %v3286_v32 = vpop.f32.mrf.mxu2 }
 0x34f   : > { %vm3525_vm8 = vcmp.gt.f32.partialorder %v3175_v8, 0.0  ;;  %v3693_v20 = vmul.f32 %v3175_v8, %v8647_v16  ;;  %v3860_v37 = vsel %vm3524_vm7, %v3061_v17, %v3692_v23  ;;  %v3287_v55 = vadd.f32 %v3286_v32, %v5963_v21  ;;  %v3400_v13 = vpop.f32.mrf.mxu3 }
 0x350   : > { %v3994_v22 = vadd.f32 %v3993_v11, %v3860_v37  ;;  %v3401_v63 = vadd.f32 %v3400_v13, %v5965_v29 }
 0x351   : > { %v3861_v14 = vsel %vm3525_vm8, %v3175_v8, %v3693_v20  ;;  %vm3522_vm9 = vcmp.gt.f32.partialorder %v3287_v55, 0.0  ;;  %v3690_v9 = vmul.f32 %v3287_v55, %v5969_v38 }
 0x352   : > { %v4041_v60 = vadd.f32 %v4040_v10, %v3861_v14  ;;  %vm3523_vm11 = vcmp.gt.f32.partialorder %v3401_v63, 0.0  ;;  %v3691_v4 = vmul.f32 %v3401_v63, %v5975_v53  ;;  %v3063_v34 = vpop.f32.mrf.mxu0 }
 0x353   : > { %v3858_v18 = vsel %vm3522_vm9, %v3287_v55, %v3690_v9  ;;  %v3064_v30 = vadd.f32 %v3063_v34, %v5947_v61 }
 0x354   : > { %v3177_v17 = vpop.f32.mrf.mxu1  ;;  %v4087_v51 = vadd.f32 %v4086_v12, %v3858_v18  ;;  %v3859_v40 = vsel %vm3523_vm11, %v3401_v63, %v3691_v4 }
 0x355   : > { %v3178_v11 = vadd.f32 %v3177_v17, %v8645_v42  ;;  %v4134_v8 = vadd.f32 %v4133_v35, %v3859_v40  ;;  %vm3528_vm12 = vcmp.gt.f32.partialorder %v3064_v30, 0.0  ;;  %v3696_v10 = vmul.f32 %v3064_v30, %v8646_v58  ;;  %3102 = vmatmul.bf16.gmra.mxu0 %v5509_v6 }
 0x356   : > { %v3288_v20 = vpop.f32.mrf.mxu2 }
 0x357   : > { %vm3529_vm13 = vcmp.gt.f32.partialorder %v3178_v11, 0.0  ;;  %v3697_v23 = vmul.f32 %v3178_v11, %v8647_v16  ;;  %3216 = vmatmul.bf16.gmra.mxu1 %v5509_v6  ;;  %v3864_v32 = vsel %vm3528_vm12, %v3064_v30, %v3696_v10  ;;  %v3289_v37 = vadd.f32 %v3288_v20, %v5963_v21  ;;  %v3402_v55 = vpop.f32.mrf.mxu3 }
 0x358   : > { %v3995_v13 = vadd.f32 %v3994_v22, %v3864_v32  ;;  %v3403_v12 = vadd.f32 %v3402_v55, %v5965_v29 }
 0x359   : > { %v3865_v14 = vsel %vm3529_vm13, %v3178_v11, %v3697_v23  ;;  %vm3526_vm14 = vcmp.gt.f32.partialorder %v3289_v37, 0.0  ;;  %v3694_v35 = vmul.f32 %v3289_v37, %v5969_v38 }
 0x35a   : > { %v4042_v63 = vadd.f32 %v4041_v60, %v3865_v14  ;;  %vm3527_vm15 = vcmp.gt.f32.partialorder %v3403_v12, 0.0  ;;  %v3695_v9 = vmul.f32 %v3403_v12, %v5975_v53  ;;  %v3065_v4 = vpop.f32.mrf.mxu0 }
 0x35b   : > { %v3862_v34 = vsel %vm3526_vm14, %v3289_v37, %v3694_v35  ;;  %v3066_v18 = vadd.f32 %v3065_v4, %v5947_v61  ;;  %3330 = vmatmul.bf16.gmra.mxu2 %v5509_v6 }
 0x35c   : > { %v3179_v17 = vpop.f32.mrf.mxu1  ;;  %v4088_v30 = vadd.f32 %v4087_v51, %v3862_v34  ;;  %v3863_v40 = vsel %vm3527_vm15, %v3403_v12, %v3695_v9  ;;  %3444 = vmatmul.bf16.gmra.mxu3 %v5509_v6 }
 0x35d   : > { %v3180_v22 = vadd.f32 %v3179_v17, %v8645_v42  ;;  %v4135_v11 = vadd.f32 %v4134_v8, %v3863_v40  ;;  %vm3532_vm0 = vcmp.gt.f32.partialorder %v3066_v18, 0.0  ;;  %v3700_v60 = vmul.f32 %v3066_v18, %v8646_v58  ;;  %v5510_v8 = vld [vmem:[%s5645_s12 + $0x78] sm:$0xff] }
 0x35e   : > { %v3291_v23 = vpop.f32.mrf.mxu2 }
 0x35f   : > { %vm3533_vm1 = vcmp.gt.f32.partialorder %v3180_v22, 0.0  ;;  %v3701_v10 = vmul.f32 %v3180_v22, %v8647_v16  ;;  %v3868_v20 = vsel %vm3532_vm0, %v3066_v18, %v3700_v60  ;;  %v3292_v32 = vadd.f32 %v3291_v23, %v5963_v21  ;;  %v3405_v37 = vpop.f32.mrf.mxu3 }
 0x360   : > { %v3996_v55 = vadd.f32 %v3995_v13, %v3868_v20  ;;  %v3406_v51 = vadd.f32 %v3405_v37, %v5965_v29 }
 0x361   : > { %v3869_v14 = vsel %vm3533_vm1, %v3180_v22, %v3701_v10  ;;  %vm3530_vm2 = vcmp.gt.f32.partialorder %v3292_v32, 0.0  ;;  %v3698_v6 = vmul.f32 %v3292_v32, %v5969_v38 }
 0x362   : > { %v4043_v12 = vadd.f32 %v4042_v63, %v3869_v14  ;;  %vm3531_vm3 = vcmp.gt.f32.partialorder %v3406_v51, 0.0  ;;  %v3699_v35 = vmul.f32 %v3406_v51, %v5975_v53  ;;  %v3068_v9 = vpop.f32.mrf.mxu0 }
 0x363   : > { %v3866_v4 = vsel %vm3530_vm2, %v3292_v32, %v3698_v6  ;;  %v3069_v34 = vadd.f32 %v3068_v9, %v5947_v61 }
 0x364   : > { %v3182_v18 = vpop.f32.mrf.mxu1  ;;  %v4089_v17 = vadd.f32 %v4088_v30, %v3866_v4  ;;  %v3867_v40 = vsel %vm3531_vm3, %v3406_v51, %v3699_v35 }
 0x365   : > { %v3183_v13 = vadd.f32 %v3182_v18, %v8645_v42  ;;  %v4136_v22 = vadd.f32 %v4135_v11, %v3867_v40  ;;  %vm3536_vm4 = vcmp.gt.f32.partialorder %v3069_v34, 0.0  ;;  %v3704_v63 = vmul.f32 %v3069_v34, %v8646_v58  ;;  %3107 = vmatmul.bf16.gmra.mxu0 %v5510_v8 }
 0x366   : > { %v3293_v10 = vpop.f32.mrf.mxu2 }
 0x367   : > { %vm3537_vm5 = vcmp.gt.f32.partialorder %v3183_v13, 0.0  ;;  %v3705_v60 = vmul.f32 %v3183_v13, %v8647_v16  ;;  %3221 = vmatmul.bf16.gmra.mxu1 %v5510_v8  ;;  %v3872_v23 = vsel %vm3536_vm4, %v3069_v34, %v3704_v63  ;;  %v3294_v20 = vadd.f32 %v3293_v10, %v5963_v21  ;;  %v3407_v32 = vpop.f32.mrf.mxu3 }
 0x368   : > { %v3997_v37 = vadd.f32 %v3996_v55, %v3872_v23  ;;  %v3408_v11 = vadd.f32 %v3407_v32, %v5965_v29 }
 0x369   : > { %v3873_v14 = vsel %vm3537_vm5, %v3183_v13, %v3705_v60  ;;  %vm3534_vm6 = vcmp.gt.f32.partialorder %v3294_v20, 0.0  ;;  %v3702_v51 = vmul.f32 %v3294_v20, %v5969_v38 }
 0x36a   : > { %v4044_v30 = vadd.f32 %v4043_v12, %v3873_v14  ;;  %v3070_v6 = vpop.f32.mrf.mxu0  ;;  %vm3535_vm7 = vcmp.gt.f32.partialorder %v3408_v11, 0.0  ;;  %v3703_v9 = vmul.f32 %v3408_v11, %v5975_v53 }
 0x36b   : > { %v3870_v35 = vsel %vm3534_vm6, %v3294_v20, %v3702_v51  ;;  %v3071_v4 = vadd.f32 %v3070_v6, %v5947_v61  ;;  %3335 = vmatmul.bf16.gmra.mxu2 %v5510_v8 }
 0x36c   : > { %v3184_v18 = vpop.f32.mrf.mxu1  ;;  %v4090_v34 = vadd.f32 %v4089_v17, %v3870_v35  ;;  %3449 = vmatmul.bf16.gmra.mxu3 %v5510_v8  ;;  %v3871_v55 = vsel %vm3535_vm7, %v3408_v11, %v3703_v9  ;;  %v5511_v11 = vld [vmem:[%s5645_s12 + $0x80] sm:$0xff] }
 0x36d   : > { %v3185_v40 = vadd.f32 %v3184_v18, %v8645_v42  ;;  %vm3540_vm8 = vcmp.gt.f32.partialorder %v3071_v4, 0.0  ;;  %v3708_v12 = vmul.f32 %v3071_v4, %v8646_v58  ;;  %v4137_v13 = vadd.f32 %v4136_v22, %v3871_v55 }
 0x36e   : > { %v3296_v60 = vpop.f32.mrf.mxu2 }
 0x36f   : > { %vm3541_vm9 = vcmp.gt.f32.partialorder %v3185_v40, 0.0  ;;  %v3709_v63 = vmul.f32 %v3185_v40, %v8647_v16  ;;  %v3876_v10 = vsel %vm3540_vm8, %v3071_v4, %v3708_v12  ;;  %v3297_v23 = vadd.f32 %v3296_v60, %v5963_v21  ;;  %v3410_v20 = vpop.f32.mrf.mxu3 }
 0x370   : > { %v3998_v32 = vadd.f32 %v3997_v37, %v3876_v10  ;;  %v3411_v17 = vadd.f32 %v3410_v20, %v5965_v29 }
 0x371   : > { %v3877_v14 = vsel %vm3541_vm9, %v3185_v40, %v3709_v63  ;;  %vm3538_vm11 = vcmp.gt.f32.partialorder %v3297_v23, 0.0  ;;  %v3706_v8 = vmul.f32 %v3297_v23, %v5969_v38 }
 0x372   : > { %v4045_v51 = vadd.f32 %v4044_v30, %v3877_v14  ;;  %vm3539_vm12 = vcmp.gt.f32.partialorder %v3411_v17, 0.0  ;;  %v3707_v22 = vmul.f32 %v3411_v17, %v5975_v53  ;;  %v3073_v6 = vpop.f32.mrf.mxu0 }
 0x373   : > { %v3874_v35 = vsel %vm3538_vm11, %v3297_v23, %v3706_v8  ;;  %v3074_v9 = vadd.f32 %v3073_v6, %v5947_v61 }
 0x374   : > { %v3187_v4 = vpop.f32.mrf.mxu1  ;;  %v4091_v18 = vadd.f32 %v4090_v34, %v3874_v35  ;;  %v3875_v55 = vsel %vm3539_vm12, %v3411_v17, %v3707_v22 }
 0x375   : > { %v3188_v37 = vadd.f32 %v3187_v4, %v8645_v42  ;;  %v4138_v40 = vadd.f32 %v4137_v13, %v3875_v55  ;;  %vm3544_vm13 = vcmp.gt.f32.partialorder %v3074_v9, 0.0  ;;  %v3712_v30 = vmul.f32 %v3074_v9, %v8646_v58  ;;  %3112 = vmatmul.bf16.gmra.mxu0 %v5511_v11 }
 0x376   : > { %v3298_v63 = vpop.f32.mrf.mxu2 }
 0x377   : > { %vm3545_vm14 = vcmp.gt.f32.partialorder %v3188_v37, 0.0  ;;  %v3713_v12 = vmul.f32 %v3188_v37, %v8647_v16  ;;  %3226 = vmatmul.bf16.gmra.mxu1 %v5511_v11  ;;  %v3880_v60 = vsel %vm3544_vm13, %v3074_v9, %v3712_v30  ;;  %v3299_v10 = vadd.f32 %v3298_v63, %v5963_v21  ;;  %v3412_v23 = vpop.f32.mrf.mxu3 }
 0x378   : > { %v3999_v20 = vadd.f32 %v3998_v32, %v3880_v60  ;;  %v3413_v34 = vadd.f32 %v3412_v23, %v5965_v29 }
 0x379   : > { %v3881_v14 = vsel %vm3545_vm14, %v3188_v37, %v3713_v12  ;;  %vm3542_vm15 = vcmp.gt.f32.partialorder %v3299_v10, 0.0  ;;  %v3710_v13 = vmul.f32 %v3299_v10, %v5969_v38 }
 0x37a   : > { %v4046_v17 = vadd.f32 %v4045_v51, %v3881_v14  ;;  %vm3543_vm0 = vcmp.gt.f32.partialorder %v3413_v34, 0.0  ;;  %v3711_v8 = vmul.f32 %v3413_v34, %v5975_v53  ;;  %v3075_v22 = vpop.f32.mrf.mxu0 }
 0x37b   : > { %v3878_v6 = vsel %vm3542_vm15, %v3299_v10, %v3710_v13  ;;  %v3076_v35 = vadd.f32 %v3075_v22, %v5947_v61  ;;  %3340 = vmatmul.bf16.gmra.mxu2 %v5511_v11 }
 0x37c   : > { %v3189_v4 = vpop.f32.mrf.mxu1  ;;  %v4092_v9 = vadd.f32 %v4091_v18, %v3878_v6  ;;  %v3879_v55 = vsel %vm3543_vm0, %v3413_v34, %v3711_v8  ;;  %3454 = vmatmul.bf16.gmra.mxu3 %v5511_v11 }
 0x37d   : > { %v3190_v32 = vadd.f32 %v3189_v4, %v8645_v42  ;;  %v4139_v37 = vadd.f32 %v4138_v40, %v3879_v55  ;;  %vm3548_vm1 = vcmp.gt.f32.partialorder %v3076_v35, 0.0  ;;  %v3716_v51 = vmul.f32 %v3076_v35, %v8646_v58  ;;  %v5512_v40 = vld [vmem:[%s5645_s12 + $0x88] sm:$0xff] }
 0x37e   : > { %v3301_v12 = vpop.f32.mrf.mxu2 }
 0x37f   : > { %vm3549_vm2 = vcmp.gt.f32.partialorder %v3190_v32, 0.0  ;;  %v3717_v30 = vmul.f32 %v3190_v32, %v8647_v16  ;;  %v3884_v63 = vsel %vm3548_vm1, %v3076_v35, %v3716_v51  ;;  %v3302_v60 = vadd.f32 %v3301_v12, %v5963_v21  ;;  %v3415_v10 = vpop.f32.mrf.mxu3 }
 0x380   : > { %v4000_v23 = vadd.f32 %v3999_v20, %v3884_v63  ;;  %v3416_v18 = vadd.f32 %v3415_v10, %v5965_v29 }
 0x381   : > { %v3885_v14 = vsel %vm3549_vm2, %v3190_v32, %v3717_v30  ;;  %vm3546_vm3 = vcmp.gt.f32.partialorder %v3302_v60, 0.0  ;;  %v3714_v11 = vmul.f32 %v3302_v60, %v5969_v38 }
 0x382   : > { %v4047_v34 = vadd.f32 %v4046_v17, %v3885_v14  ;;  %vm3547_vm4 = vcmp.gt.f32.partialorder %v3416_v18, 0.0  ;;  %v3715_v13 = vmul.f32 %v3416_v18, %v5975_v53  ;;  %v3078_v8 = vpop.f32.mrf.mxu0 }
 0x383   : > { %v3882_v22 = vsel %vm3546_vm3, %v3302_v60, %v3714_v11  ;;  %v3079_v6 = vadd.f32 %v3078_v8, %v5947_v61 }
 0x384   : > { %v3192_v35 = vpop.f32.mrf.mxu1  ;;  %v4093_v4 = vadd.f32 %v4092_v9, %v3882_v22  ;;  %v3883_v55 = vsel %vm3547_vm4, %v3416_v18, %v3715_v13 }
 0x385   : > { %v3193_v20 = vadd.f32 %v3192_v35, %v8645_v42  ;;  %v4140_v32 = vadd.f32 %v4139_v37, %v3883_v55  ;;  %vm3552_vm5 = vcmp.gt.f32.partialorder %v3079_v6, 0.0  ;;  %v3720_v17 = vmul.f32 %v3079_v6, %v8646_v58  ;;  %3117 = vmatmul.bf16.gmra.mxu0 %v5512_v40 }
 0x386   : > { %v3303_v30 = vpop.f32.mrf.mxu2 }
 0x387   : > { %vm3553_vm6 = vcmp.gt.f32.partialorder %v3193_v20, 0.0  ;;  %v3721_v51 = vmul.f32 %v3193_v20, %v8647_v16  ;;  %3231 = vmatmul.bf16.gmra.mxu1 %v5512_v40  ;;  %v3888_v12 = vsel %vm3552_vm5, %v3079_v6, %v3720_v17  ;;  %v3304_v63 = vadd.f32 %v3303_v30, %v5963_v21  ;;  %v3417_v60 = vpop.f32.mrf.mxu3 }
 0x388   : > { %v4001_v10 = vadd.f32 %v4000_v23, %v3888_v12  ;;  %v3418_v9 = vadd.f32 %v3417_v60, %v5965_v29  ;;  %v5513_v60 = vld [vmem:[%s5645_s12 + $0x90] sm:$0xff] }
 0x389   : > { %v3889_v14 = vsel %vm3553_vm6, %v3193_v20, %v3721_v51  ;;  %vm3550_vm7 = vcmp.gt.f32.partialorder %v3304_v63, 0.0  ;;  %v3718_v37 = vmul.f32 %v3304_v63, %v5969_v38 }
 0x38a   : > { %v4048_v18 = vadd.f32 %v4047_v34, %v3889_v14  ;;  %vm3551_vm8 = vcmp.gt.f32.partialorder %v3418_v9, 0.0  ;;  %v3719_v11 = vmul.f32 %v3418_v9, %v5975_v53  ;;  %v3080_v13 = vpop.f32.mrf.mxu0 }
 0x38b   : > { %v3886_v8 = vsel %vm3550_vm7, %v3304_v63, %v3718_v37  ;;  %v3081_v22 = vadd.f32 %v3080_v13, %v5947_v61  ;;  %3345 = vmatmul.bf16.gmra.mxu2 %v5512_v40 }
 0x38c   : > { %v3194_v35 = vpop.f32.mrf.mxu1  ;;  %v4094_v6 = vadd.f32 %v4093_v4, %v3886_v8  ;;  %v3887_v55 = vsel %vm3551_vm8, %v3418_v9, %v3719_v11  ;;  %3459 = vmatmul.bf16.gmra.mxu3 %v5512_v40 }
 0x38d   : > { %v3195_v23 = vadd.f32 %v3194_v35, %v8645_v42  ;;  %v4141_v20 = vadd.f32 %v4140_v32, %v3887_v55  ;;  %v3724_v17 = vmul.f32 %v3081_v22, %v8646_v58  ;;  %vm3556_vm9 = vcmp.gt.f32.partialorder %v3081_v22, 0.0 }
 0x38e   : > { %v3306_v34 = vpop.f32.mrf.mxu2 }
 0x38f   : > { %v3307_v51 = vadd.f32 %v3306_v34, %v5963_v21  ;;  %v3420_v30 = vpop.f32.mrf.mxu3  ;;  %v3725_v12 = vmul.f32 %v3195_v23, %v8647_v16  ;;  %vm3557_vm11 = vcmp.gt.f32.partialorder %v3195_v23, 0.0  ;;  %v3892_v14 = vsel %vm3556_vm9, %v3081_v22, %v3724_v17 }
 0x390   : > { %v3421_v63 = vadd.f32 %v3420_v30, %v5965_v29  ;;  %v4002_v25 = vadd.f32 %v4001_v10, %v3892_v14 }
 0x391   : > { %vm3554_vm12 = vcmp.gt.f32.partialorder %v3307_v51, 0.0  ;;  %v3722_v4 = vmul.f32 %v3307_v51, %v5969_v38  ;;  %v3893_v13 = vsel %vm3557_vm11, %v3195_v23, %v3725_v12 }
 0x392   : > { %vm3555_vm13 = vcmp.gt.f32.partialorder %v3421_v63, 0.0  ;;  %v3723_v40 = vmul.f32 %v3421_v63, %v5975_v53  ;;  %v3083_v32 = vpop.f32.mrf.mxu0  ;;  %v4049_v17 = vadd.f32 %v4048_v18, %v3893_v13 }
 0x393   : > { %v3890_v9 = vsel %vm3554_vm12, %v3307_v51, %v3722_v4  ;;  %v3084_v37 = vadd.f32 %v3083_v32, %v5947_v61 }
 0x394   : > { %v3197_v11 = vpop.f32.mrf.mxu1  ;;  %v4095_v8 = vadd.f32 %v4094_v6, %v3890_v9  ;;  %v3891_v35 = vsel %vm3555_vm13, %v3421_v63, %v3723_v40 }
 0x395   : > { %v3198_v55 = vadd.f32 %v3197_v11, %v8645_v42  ;;  %v4142_v34 = vadd.f32 %v4141_v20, %v3891_v35  ;;  %vm3560_vm14 = vcmp.gt.f32.partialorder %v3084_v37, 0.0  ;;  %v3728_v30 = vmul.f32 %v3084_v37, %v8646_v58  ;;  %3122 = vmatmul.bf16.gmra.mxu0 %v5513_v60 }
 0x396   : > { %v3308_v22 = vpop.f32.mrf.mxu2 }
 0x397   : > { %vm3561_vm15 = vcmp.gt.f32.partialorder %v3198_v55, 0.0  ;;  %v3729_v46 = vmul.f32 %v3198_v55, %v8647_v16  ;;  %3236 = vmatmul.bf16.gmra.mxu1 %v5513_v60  ;;  %v3896_v51 = vsel %vm3560_vm14, %v3084_v37, %v3728_v30  ;;  %v3309_v4 = vadd.f32 %v3308_v22, %v5963_v21  ;;  %v3422_v23 = vpop.f32.mrf.mxu3 }
 0x398   : > { %v4003_v6 = vadd.f32 %v4002_v25, %v3896_v51  ;;  %v3423_v63 = vadd.f32 %v3422_v23, %v5965_v29 }
 0x399   : > { %v3897_v12 = vsel %vm3561_vm15, %v3198_v55, %v3729_v46  ;;  %v3726_v32 = vmul.f32 %v3309_v4, %v5969_v38  ;;  %vm3558_vm0 = vcmp.gt.f32.partialorder %v3309_v4, 0.0 }
 0x39a   : > { %v4050_v20 = vadd.f32 %v4049_v17, %v3897_v12  ;;  %v3085_v40 = vpop.f32.mrf.mxu0  ;;  %v3727_v9 = vmul.f32 %v3423_v63, %v5975_v53  ;;  %vm3559_vm1 = vcmp.gt.f32.partialorder %v3423_v63, 0.0  ;;  %v5514_v17 = vld [vmem:[%s5645_s12 + $0x98] sm:$0xff] }
 0x39b   : > { %v3086_v10 = vadd.f32 %v3085_v40, %v5947_v61  ;;  %3350 = vmatmul.bf16.gmra.mxu2 %v5513_v60  ;;  %v3894_v46 = vsel %vm3558_vm0, %v3309_v4, %v3726_v32 }
 0x39c   : > { %v3199_v14 = vpop.f32.mrf.mxu1  ;;  %3464 = vmatmul.bf16.gmra.mxu3 %v5513_v60  ;;  %v3895_v35 = vsel %vm3559_vm1, %v3423_v63, %v3727_v9  ;;  %v4096_v60 = vadd.f32 %v4095_v8, %v3894_v46 }
 0x39d   : > { %v3200_v18 = vadd.f32 %v3199_v14, %v8645_v42  ;;  %v3732_v37 = vmul.f32 %v3086_v10, %v8646_v58  ;;  %vm3564_vm2 = vcmp.gt.f32.partialorder %v3086_v10, 0.0  ;;  %v4143_v23 = vadd.f32 %v4142_v34, %v3895_v35 }
 0x39e   : > { %v3311_v25 = vpop.f32.mrf.mxu2 }
 0x39f   : > { %v3312_v11 = vadd.f32 %v3311_v25, %v5963_v21  ;;  %v3425_v13 = vpop.f32.mrf.mxu3  ;;  %v3733_v55 = vmul.f32 %v3200_v18, %v8647_v16  ;;  %vm3565_vm3 = vcmp.gt.f32.partialorder %v3200_v18, 0.0  ;;  %v3900_v12 = vsel %vm3564_vm2, %v3086_v10, %v3732_v37 }
 0x3a0   : > { %v3426_v30 = vadd.f32 %v3425_v13, %v5965_v29  ;;  %v4004_v8 = vadd.f32 %v4003_v6, %v3900_v12 }
 0x3a1   : > { %vm3562_vm4 = vcmp.gt.f32.partialorder %v3312_v11, 0.0  ;;  %v3730_v22 = vmul.f32 %v3312_v11, %v5969_v38  ;;  %v3901_v14 = vsel %vm3565_vm3, %v3200_v18, %v3733_v55 }
 0x3a2   : > { %vm3563_vm5 = vcmp.gt.f32.partialorder %v3426_v30, 0.0  ;;  %v3731_v51 = vmul.f32 %v3426_v30, %v5975_v53  ;;  %v3088_v4 = vpop.f32.mrf.mxu0  ;;  %v4051_v10 = vadd.f32 %v4050_v20, %v3901_v14 }
 0x3a3   : > { %v3898_v40 = vsel %vm3562_vm4, %v3312_v11, %v3730_v22  ;;  %v3089_v63 = vadd.f32 %v3088_v4, %v5947_v61 }
 0x3a4   : > { %v3202_v32 = vpop.f32.mrf.mxu1  ;;  %v4097_v9 = vadd.f32 %v4096_v60, %v3898_v40  ;;  %v3899_v25 = vsel %vm3563_vm5, %v3426_v30, %v3731_v51 }
 0x3a5   : > { %v3203_v13 = vadd.f32 %v3202_v32, %v8645_v42  ;;  %v4144_v39 = vadd.f32 %v4143_v23, %v3899_v25  ;;  %vm3568_vm6 = vcmp.gt.f32.partialorder %v3089_v63, 0.0  ;;  %v3736_v57 = vmul.f32 %v3089_v63, %v8646_v58  ;;  %3127 = vmatmul.bf16.gmra.mxu0 %v5514_v17 }
 0x3a6   : > { %v3313_v34 = vpop.f32.mrf.mxu2 }
 0x3a7   : > { %vm3569_vm7 = vcmp.gt.f32.partialorder %v3203_v13, 0.0  ;;  %v3737_v46 = vmul.f32 %v3203_v13, %v8647_v16  ;;  %3241 = vmatmul.bf16.gmra.mxu1 %v5514_v17  ;;  %v3904_v37 = vsel %vm3568_vm6, %v3089_v63, %v3736_v57  ;;  %v3314_v11 = vadd.f32 %v3313_v34, %v5963_v21  ;;  %v3427_v18 = vpop.f32.mrf.mxu3 }
 0x3a8   : > { %v4005_v35 = vadd.f32 %v4004_v8, %v3904_v37  ;;  %v3428_v30 = vadd.f32 %v3427_v18, %v5965_v29 }
 0x3a9   : > { %v3905_v55 = vsel %vm3569_vm7, %v3203_v13, %v3737_v46  ;;  %v3734_v51 = vmul.f32 %v3314_v11, %v5969_v38  ;;  %vm3566_vm8 = vcmp.gt.f32.partialorder %v3314_v11, 0.0  ;;  %v5515_v46 = vld [vmem:[%s5645_s12 + $0xa0] sm:$0xff]  ;;  %s5583_s12 = smov [#allocation2]  }
 0x3aa   : > { %v4052_v22 = vadd.f32 %v4051_v10, %v3905_v55  ;;  %v3090_v60 = vpop.f32.mrf.mxu0  ;;  %v3735_v23 = vmul.f32 %v3428_v30, %v5975_v53  ;;  %vm3567_vm9 = vcmp.gt.f32.partialorder %v3428_v30, 0.0  ;;  %s4441_s30 = sshll.u32 %s5583_s12, 4  ;;  %s4442_s30 = int_to_ptr.vmem [resolvable:$true] %s4441_s30 }
 0x3ab   : > { %v3091_v6 = vadd.f32 %v3090_v60, %v5947_v61  ;;  %3355 = vmatmul.bf16.gmra.mxu2 %v5514_v17  ;;  %v3902_v12 = vsel %vm3566_vm8, %v3314_v11, %v3734_v51 }
 0x3ac   : > { %v3204_v4 = vpop.f32.mrf.mxu1  ;;  %3469 = vmatmul.bf16.gmra.mxu3 %v5514_v17  ;;  %v3903_v14 = vsel %vm3567_vm9, %v3428_v30, %v3735_v23  ;;  %v4098_v17 = vadd.f32 %v4097_v9, %v3902_v12 }
 0x3ad   : > { %v3205_v57 = vadd.f32 %v3204_v4, %v8645_v42  ;;  %v3740_v40 = vmul.f32 %v3091_v6, %v8646_v58  ;;  %vm3572_vm11 = vcmp.gt.f32.partialorder %v3091_v6, 0.0  ;;  %v4145_v37 = vadd.f32 %v4144_v39, %v3903_v14 }
 0x3ae   : > { %v3316_v20 = vpop.f32.mrf.mxu2 }
 0x3af   : > { %v3317_v63 = vadd.f32 %v3316_v20, %v5963_v21  ;;  %v3430_v32 = vpop.f32.mrf.mxu3  ;;  %v3741_v25 = vmul.f32 %v3205_v57, %v8647_v16  ;;  %vm3573_vm12 = vcmp.gt.f32.partialorder %v3205_v57, 0.0  ;;  %v3908_v11 = vsel %vm3572_vm11, %v3091_v6, %v3740_v40 }
 0x3b0   : > { %v3431_v13 = vadd.f32 %v3430_v32, %v5965_v29  ;;  %v4006_v9 = vadd.f32 %v4005_v35, %v3908_v11 }
 0x3b1   : > { %vm3570_vm13 = vcmp.gt.f32.partialorder %v3317_v63, 0.0  ;;  %v3738_v8 = vmul.f32 %v3317_v63, %v5969_v38  ;;  %v3909_v60 = vsel %vm3573_vm12, %v3205_v57, %v3741_v25 }
 0x3b2   : > { %vm3571_vm14 = vcmp.gt.f32.partialorder %v3431_v13, 0.0  ;;  %v3739_v34 = vmul.f32 %v3431_v13, %v5975_v53  ;;  %v3093_v10 = vpop.f32.mrf.mxu0  ;;  %v4053_v6 = vadd.f32 %v4052_v22, %v3909_v60 }
 0x3b3   : > { %v3906_v18 = vsel %vm3570_vm13, %v3317_v63, %v3738_v8  ;;  %v3094_v55 = vadd.f32 %v3093_v10, %v5947_v61 }
 0x3b4   : > { %v3207_v30 = vpop.f32.mrf.mxu1  ;;  %v4099_v51 = vadd.f32 %v4098_v17, %v3906_v18  ;;  %v3907_v4 = vsel %vm3571_vm14, %v3431_v13, %v3739_v34 }
 0x3b5   : > { %v3208_v23 = vadd.f32 %v3207_v30, %v8645_v42  ;;  %v4146_v20 = vadd.f32 %v4145_v37, %v3907_v4  ;;  %vm3576_vm15 = vcmp.gt.f32.partialorder %v3094_v55, 0.0  ;;  %v3744_v32 = vmul.f32 %v3094_v55, %v8646_v58  ;;  %3132 = vmatmul.bf16.gmra.mxu0 %v5515_v46 }
 0x3b6   : > { %v3318_v39 = vpop.f32.mrf.mxu2 }
 0x3b7   : > { %vm3577_vm0 = vcmp.gt.f32.partialorder %v3208_v23, 0.0  ;;  %v3745_v12 = vmul.f32 %v3208_v23, %v8647_v16  ;;  %3246 = vmatmul.bf16.gmra.mxu1 %v5515_v46  ;;  %v3912_v40 = vsel %vm3576_vm15, %v3094_v55, %v3744_v32  ;;  %v3319_v63 = vadd.f32 %v3318_v39, %v5963_v21  ;;  %v3432_v57 = vpop.f32.mrf.mxu3 }
 0x3b8   : > { %v4007_v14 = vadd.f32 %v4006_v9, %v3912_v40  ;;  %v3433_v13 = vadd.f32 %v3432_v57, %v5965_v29 }
 0x3b9   : > { %v3913_v25 = vsel %vm3577_vm0, %v3208_v23, %v3745_v12  ;;  %v3742_v34 = vmul.f32 %v3319_v63, %v5969_v38  ;;  %vm3574_vm1 = vcmp.gt.f32.partialorder %v3319_v63, 0.0 }
 0x3ba   : > { %v4054_v8 = vadd.f32 %v4053_v6, %v3913_v25  ;;  %v3095_v17 = vpop.f32.mrf.mxu0  ;;  %v3743_v37 = vmul.f32 %v3433_v13, %v5975_v53  ;;  %vm3575_vm2 = vcmp.gt.f32.partialorder %v3433_v13, 0.0 }
 0x3bb   : > { %v3096_v35 = vadd.f32 %v3095_v17, %v5947_v61  ;;  %3360 = vmatmul.bf16.gmra.mxu2 %v5515_v46  ;;  %v3910_v18 = vsel %vm3574_vm1, %v3319_v63, %v3742_v34 }
 0x3bc   : > { %v3209_v10 = vpop.f32.mrf.mxu1  ;;  %3474 = vmatmul.bf16.gmra.mxu3 %v5515_v46  ;;  %v3911_v4 = vsel %vm3575_vm2, %v3433_v13, %v3743_v37  ;;  %v4100_v12 = vadd.f32 %v4099_v51, %v3910_v18 }
 0x3bd   : > { %v3210_v22 = vadd.f32 %v3209_v10, %v8645_v42  ;;  %v3748_v55 = vmul.f32 %v3096_v35, %v8646_v58  ;;  %vm3580_vm3 = vcmp.gt.f32.partialorder %v3096_v35, 0.0  ;;  %v4147_v6 = vadd.f32 %v4146_v20, %v3911_v4 }
 0x3be   : > { %v3321_v11 = vpop.f32.mrf.mxu2 }
 0x3bf   : > { %v3322_v30 = vadd.f32 %v3321_v11, %v5963_v21  ;;  %v3435_v60 = vpop.f32.mrf.mxu3  ;;  %v3749_v23 = vmul.f32 %v3210_v22, %v8647_v16  ;;  %vm3581_vm4 = vcmp.gt.f32.partialorder %v3210_v22, 0.0  ;;  %v3916_v40 = vsel %vm3580_vm3, %v3096_v35, %v3748_v55 }
 0x3c0   : > { %v3436_v32 = vadd.f32 %v3435_v60, %v5965_v29  ;;  %v4008_v51 = vadd.f32 %v4007_v14, %v3916_v40 }
 0x3c1   : > { %vm3578_vm5 = vcmp.gt.f32.partialorder %v3322_v30, 0.0  ;;  %v3746_v9 = vmul.f32 %v3322_v30, %v5969_v38  ;;  %v3917_v13 = vsel %vm3581_vm4, %v3210_v22, %v3749_v23 }
 0x3c2   : > { %vm3579_vm6 = vcmp.gt.f32.partialorder %v3436_v32, 0.0  ;;  %v3747_v46 = vmul.f32 %v3436_v32, %v5975_v53  ;;  %v3098_v39 = vpop.f32.mrf.mxu0  ;;  %v4055_v20 = vadd.f32 %v4054_v8, %v3917_v13 }
 0x3c3   : > { %v3914_v63 = vsel %vm3578_vm5, %v3322_v30, %v3746_v9  ;;  %v3099_v57 = vadd.f32 %v3098_v39, %v5947_v61 }
 0x3c4   : > { %v3212_v25 = vpop.f32.mrf.mxu1  ;;  %v4101_v17 = vadd.f32 %v4100_v12, %v3914_v63  ;;  %v3915_v34 = vsel %vm3579_vm6, %v3436_v32, %v3747_v46 }
 0x3c5   : > { %v3213_v10 = vadd.f32 %v3212_v25, %v8645_v42  ;;  %v4148_v37 = vadd.f32 %v4147_v6, %v3915_v34  ;;  %vm3584_vm7 = vcmp.gt.f32.partialorder %v3099_v57, 0.0  ;;  %v3752_v11 = vmul.f32 %v3099_v57, %v8646_v58 }
 0x3c6   : > { %v3323_v60 = vpop.f32.mrf.mxu2 }
 0x3c7   : > { %vm3585_vm8 = vcmp.gt.f32.partialorder %v3213_v10, 0.0  ;;  %v3753_v18 = vmul.f32 %v3213_v10, %v8647_v16  ;;  %v3920_v35 = vsel %vm3584_vm7, %v3099_v57, %v3752_v11  ;;  %v3324_v55 = vadd.f32 %v3323_v60, %v5963_v21  ;;  %v3437_v30 = vpop.f32.mrf.mxu3 }
 0x3c8   : > { %v4009_v4 = vadd.f32 %v4008_v51, %v3920_v35  ;;  %v3438_v23 = vadd.f32 %v3437_v30, %v5965_v29 }
 0x3c9   : > { %v3921_v22 = vsel %vm3585_vm8, %v3213_v10, %v3753_v18  ;;  %v3750_v12 = vmul.f32 %v3324_v55, %v5969_v38  ;;  %vm3582_vm9 = vcmp.gt.f32.partialorder %v3324_v55, 0.0 }
 0x3ca   : > { %v4056_v32 = vadd.f32 %v4055_v20, %v3921_v22  ;;  %v3100_v9 = vpop.f32.mrf.mxu0  ;;  %v3751_v39 = vmul.f32 %v3438_v23, %v5975_v53  ;;  %vm3583_vm11 = vcmp.gt.f32.partialorder %v3438_v23, 0.0 }
 0x3cb   : > { %v3101_v46 = vadd.f32 %v3100_v9, %v5947_v61  ;;  %v3918_v57 = vsel %vm3582_vm9, %v3324_v55, %v3750_v12 }
 0x3cc   : > { %v3214_v14 = vpop.f32.mrf.mxu1  ;;  %v3919_v10 = vsel %vm3583_vm11, %v3438_v23, %v3751_v39  ;;  %v4102_v35 = vadd.f32 %v4101_v17, %v3918_v57 }
 0x3cd   : > { %v3215_v8 = vadd.f32 %v3214_v14, %v8645_v42  ;;  %vm3588_vm12 = vcmp.gt.f32.partialorder %v3101_v46, 0.0  ;;  %v3756_v6 = vmul.f32 %v3101_v46, %v8646_v58  ;;  %v4149_v9 = vadd.f32 %v4148_v37, %v3919_v10 }
 0x3ce   : > { %v3326_v63 = vpop.f32.mrf.mxu2 }
 0x3cf   : > { %vm3589_vm13 = vcmp.gt.f32.partialorder %v3215_v8, 0.0  ;;  %v3757_v40 = vmul.f32 %v3215_v8, %v8647_v16  ;;  %v3924_v25 = vsel %vm3588_vm12, %v3101_v46, %v3756_v6  ;;  %v3327_v13 = vadd.f32 %v3326_v63, %v5963_v21  ;;  %v3440_v34 = vpop.f32.mrf.mxu3 }
 0x3d0   : > { %v4010_v11 = vadd.f32 %v4009_v4, %v3924_v25  ;;  %v3441_v18 = vadd.f32 %v3440_v34, %v5965_v29 }
 0x3d1   : > { %v3925_v51 = vsel %vm3589_vm13, %v3215_v8, %v3757_v40  ;;  %vm3586_vm14 = vcmp.gt.f32.partialorder %v3327_v13, 0.0  ;;  %v3754_v20 = vmul.f32 %v3327_v13, %v5969_v38 }
 0x3d2   : > { %v4057_v60 = vadd.f32 %v4056_v32, %v3925_v51  ;;  %vm3587_vm15 = vcmp.gt.f32.partialorder %v3441_v18, 0.0  ;;  %v3755_v30 = vmul.f32 %v3441_v18, %v5975_v53  ;;  %v3103_v22 = vpop.f32.mrf.mxu0 }
 0x3d3   : > { %v3922_v55 = vsel %vm3586_vm14, %v3327_v13, %v3754_v20  ;;  %v3104_v12 = vadd.f32 %v3103_v22, %v5947_v61 }
 0x3d4   : > { %v3217_v46 = vpop.f32.mrf.mxu1  ;;  %v4103_v14 = vadd.f32 %v4102_v35, %v3922_v55  ;;  %v3923_v23 = vsel %vm3587_vm15, %v3441_v18, %v3755_v30 }
 0x3d5   : > { %v3218_v4 = vadd.f32 %v3217_v46, %v8645_v42  ;;  %v4150_v39 = vadd.f32 %v4149_v9, %v3923_v23  ;;  %vm3592_vm0 = vcmp.gt.f32.partialorder %v3104_v12, 0.0  ;;  %v3760_v32 = vmul.f32 %v3104_v12, %v8646_v58 }
 0x3d6   : > { %v3328_v8 = vpop.f32.mrf.mxu2 }
 0x3d7   : > { %vm3593_vm1 = vcmp.gt.f32.partialorder %v3218_v4, 0.0  ;;  %v3761_v17 = vmul.f32 %v3218_v4, %v8647_v16  ;;  %v3928_v6 = vsel %vm3592_vm0, %v3104_v12, %v3760_v32  ;;  %v3329_v40 = vadd.f32 %v3328_v8, %v5963_v21  ;;  %v3442_v37 = vpop.f32.mrf.mxu3 }
 0x3d8   : > { %v4011_v63 = vadd.f32 %v4010_v11, %v3928_v6  ;;  %v3443_v25 = vadd.f32 %v3442_v37, %v5965_v29 }
 0x3d9   : > { %v3929_v57 = vsel %vm3593_vm1, %v3218_v4, %v3761_v17  ;;  %vm3590_vm2 = vcmp.gt.f32.partialorder %v3329_v40, 0.0  ;;  %v3758_v34 = vmul.f32 %v3329_v40, %v5969_v38 }
 0x3da   : > { %v4058_v13 = vadd.f32 %v4057_v60, %v3929_v57  ;;  %vm3591_vm3 = vcmp.gt.f32.partialorder %v3443_v25, 0.0  ;;  %v3759_v10 = vmul.f32 %v3443_v25, %v5975_v53  ;;  %v3105_v51 = vpop.f32.mrf.mxu0 }
 0x3db   : > { %v3926_v18 = vsel %vm3590_vm2, %v3329_v40, %v3758_v34  ;;  %v3106_v20 = vadd.f32 %v3105_v51, %v5947_v61 }
 0x3dc   : > { %v3219_v35 = vpop.f32.mrf.mxu1  ;;  %v4104_v30 = vadd.f32 %v4103_v14, %v3926_v18  ;;  %v3927_v22 = vsel %vm3591_vm3, %v3443_v25, %v3759_v10 }
 0x3dd   : > { %v3220_v9 = vadd.f32 %v3219_v35, %v8645_v42  ;;  %v4151_v11 = vadd.f32 %v4150_v39, %v3927_v22  ;;  %vm3596_vm4 = vcmp.gt.f32.partialorder %v3106_v20, 0.0  ;;  %v3764_v55 = vmul.f32 %v3106_v20, %v8646_v58 }
 0x3de   : > { %v3331_v12 = vpop.f32.mrf.mxu2 }
 0x3df   : > { %vm3597_vm5 = vcmp.gt.f32.partialorder %v3220_v9, 0.0  ;;  %v3765_v60 = vmul.f32 %v3220_v9, %v8647_v16  ;;  %v3932_v46 = vsel %vm3596_vm4, %v3106_v20, %v3764_v55  ;;  %v3332_v23 = vadd.f32 %v3331_v12, %v5963_v21  ;;  %v3445_v4 = vpop.f32.mrf.mxu3 }
 0x3e0   : > { %v4012_v32 = vadd.f32 %v4011_v63, %v3932_v46  ;;  %v3446_v8 = vadd.f32 %v3445_v4, %v5965_v29 }
 0x3e1   : > { %v3933_v17 = vsel %vm3597_vm5, %v3220_v9, %v3765_v60  ;;  %vm3594_vm6 = vcmp.gt.f32.partialorder %v3332_v23, 0.0  ;;  %v3762_v6 = vmul.f32 %v3332_v23, %v5969_v38 }
 0x3e2   : > { %v4059_v14 = vadd.f32 %v4058_v13, %v3933_v17  ;;  %vm3595_vm7 = vcmp.gt.f32.partialorder %v3446_v8, 0.0  ;;  %v3763_v39 = vmul.f32 %v3446_v8, %v5975_v53  ;;  %v3108_v40 = vpop.f32.mrf.mxu0 }
 0x3e3   : > { %v3930_v37 = vsel %vm3594_vm6, %v3332_v23, %v3762_v6  ;;  %v3109_v57 = vadd.f32 %v3108_v40, %v5947_v61 }
 0x3e4   : > { %v3222_v25 = vpop.f32.mrf.mxu1  ;;  %v4105_v34 = vadd.f32 %v4104_v30, %v3930_v37  ;;  %v3931_v10 = vsel %vm3595_vm7, %v3446_v8, %v3763_v39 }
 0x3e5   : > { %v3223_v51 = vadd.f32 %v3222_v25, %v8645_v42  ;;  %v4152_v63 = vadd.f32 %v4151_v11, %v3931_v10  ;;  %vm3600_vm8 = vcmp.gt.f32.partialorder %v3109_v57, 0.0  ;;  %v3768_v18 = vmul.f32 %v3109_v57, %v8646_v58 }
 0x3e6   : > { %v3333_v20 = vpop.f32.mrf.mxu2 }
 0x3e7   : > { %vm3601_vm9 = vcmp.gt.f32.partialorder %v3223_v51, 0.0  ;;  %v3769_v13 = vmul.f32 %v3223_v51, %v8647_v16  ;;  %v3936_v35 = vsel %vm3600_vm8, %v3109_v57, %v3768_v18  ;;  %v3334_v22 = vadd.f32 %v3333_v20, %v5963_v21  ;;  %v3447_v9 = vpop.f32.mrf.mxu3 }
 0x3e8   : > { %v8035_v55 = vadd.f32 %v4012_v32, %v3936_v35  ;;  %v3448_v30 = vadd.f32 %v3447_v9, %v5965_v29 }
 0x3e9   : > { %v3937_v60 = vsel %vm3601_vm9, %v3223_v51, %v3769_v13  ;;  %vm3598_vm11 = vcmp.gt.f32.partialorder %v3334_v22, 0.0  ;;  %v3766_v11 = vmul.f32 %v3334_v22, %v5969_v38 }
 0x3ea   : > { %v8038_v12 = vadd.f32 %v4059_v14, %v3937_v60  ;;  %vm3599_vm12 = vcmp.gt.f32.partialorder %v3448_v30, 0.0  ;;  %v3767_v46 = vmul.f32 %v3448_v30, %v5975_v53  ;;  %v3110_v23 = vpop.f32.mrf.mxu0 }
 0x3eb   : > { %v3934_v4 = vsel %vm3598_vm11, %v3334_v22, %v3766_v11 }
 0x3ec   : > { %v3224_v17 = vpop.f32.mrf.mxu1  ;;  %v4106_v8 = vadd.f32 %v4105_v34, %v3934_v4  ;;  %v3935_v6 = vsel %vm3599_vm12, %v3448_v30, %v3767_v46 }
 0x3ed   : > { %v4153_v39 = vadd.f32 %v4152_v63, %v3935_v6 }
 0x3ee   : > { %v3336_v40 = vpop.f32.mrf.mxu2 }
 0x3ef   : > { %v3337_v32 = vadd.f32 %v3336_v40, %v5963_v21  ;;  %v3450_v37 = vpop.f32.mrf.mxu3  ;;  %v3111_v40 = vadd.f32 %v3110_v23, %v5947_v61 }
 0x3f0   : > { %v3451_v57 = vadd.f32 %v3450_v37, %v5965_v29 }
 0x3f1   : > { %vm3602_vm13 = vcmp.gt.f32.partialorder %v3337_v32, 0.0  ;;  %v3770_v14 = vmul.f32 %v3337_v32, %v5969_v38  ;;  %vm3604_vm15 = vcmp.gt.f32.partialorder %v3111_v40, 0.0 }
 0x3f2   : > { %vm3603_vm14 = vcmp.gt.f32.partialorder %v3451_v57, 0.0  ;;  %v3771_v25 = vmul.f32 %v3451_v57, %v5975_v53  ;;  %v3113_v10 = vpop.f32.mrf.mxu0 }
 0x3f3   : > { %v3938_v51 = vsel %vm3602_vm13, %v3337_v32, %v3770_v14  ;;  %v3225_v32 = vadd.f32 %v3224_v17, %v8645_v42 }
 0x3f4   : > { %v3227_v18 = vpop.f32.mrf.mxu1  ;;  %v8046_v13 = vadd.f32 %v4106_v8, %v3938_v51  ;;  %v3939_v34 = vsel %vm3603_vm14, %v3451_v57, %v3771_v25  ;;  %v3114_v25 = vadd.f32 %v3113_v10, %v5947_v61 }
 0x3f5   : > { %v8048_v20 = vadd.f32 %v4153_v39, %v3939_v34  ;;  %v3772_v39 = vmul.f32 %v3111_v40, %v8646_v58  ;;  %v3773_v57 = vmul.f32 %v3225_v32, %v8647_v16  ;;  %vm3605_vm0 = vcmp.gt.f32.partialorder %v3225_v32, 0.0 }
 0x3f6   : > { %v3338_v63 = vpop.f32.mrf.mxu2  ;;  %v3228_v51 = vadd.f32 %v3227_v18, %v8645_v42  ;;  %vm3608_vm1 = vcmp.gt.f32.partialorder %v3114_v25, 0.0  ;;  %v3776_v31 = vmul.f32 %v3114_v25, %v8646_v58 }
 0x3f7   : > { %v3452_v35 = vpop.f32.mrf.mxu3  ;;  %v3339_v23 = vadd.f32 %v3338_v63, %v5963_v21  ;;  %v3940_v17 = vsel %vm3604_vm15, %v3111_v40, %v3772_v39  ;;  %v3941_v26 = vsel %vm3605_vm0, %v3225_v32, %v3773_v57 }
 0x3f8   : > { %v3777_v47 = vmul.f32 %v3228_v51, %v8647_v16  ;;  %v3453_v45 = vadd.f32 %v3452_v35, %v5965_v29  ;;  %vm3609_vm2 = vcmp.gt.f32.partialorder %v3228_v51, 0.0  ;;  %v4014_v32 = vadd.f32 %v8035_v55, %v3940_v17 }
 0x3f9   : > { %v3774_v10 = vmul.f32 %v3339_v23, %v5969_v38  ;;  %vm3606_vm3 = vcmp.gt.f32.partialorder %v3339_v23, 0.0  ;;  %v4061_v39 = vadd.f32 %v8038_v12, %v3941_v26  ;;  %v3944_v15 = vsel %vm3608_vm1, %v3114_v25, %v3776_v31 }
 0x3fa   : > { %v3115_v22 = vpop.f32.mrf.mxu0  ;;  %v3945_v44 = vsel %vm3609_vm2, %v3228_v51, %v3777_v47  ;;  %vm3607_vm4 = vcmp.gt.f32.partialorder %v3453_v45, 0.0  ;;  %v3775_v35 = vmul.f32 %v3453_v45, %v5975_v53  ;;  %v4015_v25 = vadd.f32 %v4014_v32, %v3944_v15 }
 0x3fb   : > { %v3116_v18 = vadd.f32 %v3115_v22, %v5947_v61  ;;  %v3942_v56 = vsel %vm3606_vm3, %v3339_v23, %v3774_v10  ;;  %v4062_v51 = vadd.f32 %v4061_v39, %v3945_v44 }
 0x3fc   : > { %v3229_v9 = vpop.f32.mrf.mxu1  ;;  %v4108_v17 = vadd.f32 %v8046_v13, %v3942_v56  ;;  %v3943_v10 = vsel %vm3607_vm4, %v3453_v45, %v3775_v35 }
 0x3fd   : > { %v3230_v63 = vadd.f32 %v3229_v9, %v8645_v42  ;;  %vm3612_vm5 = vcmp.gt.f32.partialorder %v3116_v18, 0.0  ;;  %v3780_v22 = vmul.f32 %v3116_v18, %v8646_v58 }
 0x3fe   : > { %v3341_v60 = vpop.f32.mrf.mxu2 }
 0x3ff   : > { %v3455_v30 = vpop.f32.mrf.mxu3  ;;  %v3342_v40 = vadd.f32 %v3341_v60, %v5963_v21  ;;  %v3781_v9 = vmul.f32 %v3230_v63, %v8647_v16  ;;  %vm3613_vm6 = vcmp.gt.f32.partialorder %v3230_v63, 0.0  ;;  %v3948_v33 = vsel %vm3612_vm5, %v3116_v18, %v3780_v22 }
 0x400   : > { %v3456_v55 = vadd.f32 %v3455_v30, %v5965_v29  ;;  %v4155_v18 = vadd.f32 %v8048_v20, %v3943_v10 }
 0x401   : > { %v3778_v60 = vmul.f32 %v3342_v40, %v5969_v38  ;;  %vm3610_vm7 = vcmp.gt.f32.partialorder %v3342_v40, 0.0  ;;  %v3949_v30 = vsel %vm3613_vm6, %v3230_v63, %v3781_v9  ;;  %v4016_v63 = vadd.f32 %v4015_v25, %v3948_v33 }
 0x402   : > { %v3118_v11 = vpop.f32.mrf.mxu0  ;;  %vm3611_vm8 = vcmp.gt.f32.partialorder %v3456_v55, 0.0  ;;  %v4063_v39 = vadd.f32 %v4062_v51, %v3949_v30 }
 0x403   : > { %v3119_v26 = vadd.f32 %v3118_v11, %v5947_v61  ;;  %v3946_v1 = vsel %vm3610_vm7, %v3342_v40, %v3778_v60  ;;  %v3779_v11 = vmul.f32 %v3456_v55, %v5975_v53 }
 0x404   : > { %v3232_v46 = vpop.f32.mrf.mxu1  ;;  %v4109_v35 = vadd.f32 %v4108_v17, %v3946_v1 }
 0x405   : > { %v3233_v31 = vadd.f32 %v3232_v46, %v8645_v42  ;;  %v3784_v46 = vmul.f32 %v3119_v26, %v8646_v58  ;;  %vm3616_vm9 = vcmp.gt.f32.partialorder %v3119_v26, 0.0 }
 0x406   : > { %v3343_v4 = vpop.f32.mrf.mxu2 }
 0x407   : > { %v3457_v6 = vpop.f32.mrf.mxu3  ;;  %v3344_v47 = vadd.f32 %v3343_v4, %v5963_v21  ;;  %v3785_v4 = vmul.f32 %v3233_v31, %v8647_v16  ;;  %vm3617_vm11 = vcmp.gt.f32.partialorder %v3233_v31, 0.0  ;;  %v3952_v22 = vsel %vm3616_vm9, %v3119_v26, %v3784_v46 }
 0x408   : > { %v3458_v15 = vadd.f32 %v3457_v6, %v5965_v29  ;;  %v3947_v6 = vsel %vm3611_vm8, %v3456_v55, %v3779_v11  ;;  %v4017_v51 = vadd.f32 %v4016_v63, %v3952_v22 }
 0x409   : > { %v3782_v44 = vmul.f32 %v3344_v47, %v5969_v38  ;;  %vm3614_vm12 = vcmp.gt.f32.partialorder %v3344_v47, 0.0  ;;  %v3953_v9 = vsel %vm3617_vm11, %v3233_v31, %v3785_v4  ;;  %v4156_v31 = vadd.f32 %v4155_v18, %v3947_v6 }
 0x40a   : > { %v8052_v37 = vpop.f32.mrf.mxu0  ;;  %vm3615_vm13 = vcmp.gt.f32.partialorder %v3458_v15, 0.0  ;;  %v4064_v17 = vadd.f32 %v4063_v39, %v3953_v9 }
 0x40b   : > { %v3121_v56 = vadd.f32 %v8052_v37, %v5947_v61  ;;  %v3950_v60 = vsel %vm3614_vm12, %v3344_v47, %v3782_v44  ;;  %v3783_v37 = vmul.f32 %v3458_v15, %v5975_v53 }
 0x40c   : > { %v8054_v8 = vpop.f32.mrf.mxu1  ;;  %v4110_v10 = vadd.f32 %v4109_v35, %v3950_v60 }
 0x40d   : > { %v3235_v45 = vadd.f32 %v8054_v8, %v8645_v42  ;;  %vm3620_vm14 = vcmp.gt.f32.partialorder %v3121_v56, 0.0  ;;  %v3788_v59 = vmul.f32 %v3121_v56, %v8646_v58 }
 0x40e   : > { %v8058_v14 = vpop.f32.mrf.mxu2 }
 0x40f   : > { %v8062_v34 = vpop.f32.mrf.mxu3  ;;  %v3347_v40 = vadd.f32 %v8058_v14, %v5963_v21  ;;  %v3789_v33 = vmul.f32 %v3235_v45, %v8647_v16  ;;  %vm3621_vm15 = vcmp.gt.f32.partialorder %v3235_v45, 0.0  ;;  %v3956_v11 = vsel %vm3620_vm14, %v3121_v56, %v3788_v59 }
 0x410   : > { %v3461_v20 = vadd.f32 %v8062_v34, %v5965_v29  ;;  %v3951_v34 = vsel %vm3615_vm13, %v3458_v15, %v3783_v37 }
 0x411   : > { %v3786_v1 = vmul.f32 %v3347_v40, %v5969_v38  ;;  %vm3618_vm0 = vcmp.gt.f32.partialorder %v3347_v40, 0.0  ;;  %v3957_v46 = vsel %vm3621_vm15, %v3235_v45, %v3789_v33  ;;  %v4157_v63 = vadd.f32 %v4156_v31, %v3951_v34 }
 0x412   : > { %v8065_v27 = vpop.f32.mrf.mxu0  ;;  %vm3619_vm1 = vcmp.gt.f32.partialorder %v3461_v20, 0.0  ;;  %v4065_v39 = vadd.f32 %v4064_v17, %v3957_v46 }
 0x413   : > { %v3124_v55 = vadd.f32 %v8065_v27, %v5947_v61  ;;  %v3787_v27 = vmul.f32 %v3461_v20, %v5975_v53 }
 0x414   : > { %v8070_v36 = vpop.f32.mrf.mxu1 }
 0x415   : > { %v3238_v26 = vadd.f32 %v8070_v36, %v8645_v42  ;;  %v3954_v36 = vsel %vm3618_vm0, %v3347_v40, %v3786_v1  ;;  %vm3624_vm2 = vcmp.gt.f32.partialorder %v3124_v55, 0.0  ;;  %v4018_v40 = vadd.f32 %v4017_v51, %v3956_v11 }
 0x416   : > { %v3348_v57 = vpop.f32.mrf.mxu2  ;;  %v4111_v6 = vadd.f32 %v4110_v10, %v3954_v36  ;;  %v3955_v22 = vsel %vm3619_vm1, %v3461_v20, %v3787_v27 }
 0x417   : > { %v3462_v28 = vpop.f32.mrf.mxu3  ;;  %v3349_v47 = vadd.f32 %v3348_v57, %v5963_v21  ;;  %v3792_v57 = vmul.f32 %v3124_v55, %v8646_v58  ;;  %vm3625_vm3 = vcmp.gt.f32.partialorder %v3238_v26, 0.0  ;;  %v4158_v20 = vadd.f32 %v4157_v63, %v3955_v22 }
 0x418   : > { %v3463_v25 = vadd.f32 %v3462_v28, %v5965_v29  ;;  %v3793_v28 = vmul.f32 %v3238_v26, %v8647_v16 }
 0x419   : > { %v3790_v44 = vmul.f32 %v3349_v47, %v5969_v38  ;;  %vm3622_vm4 = vcmp.gt.f32.partialorder %v3349_v47, 0.0  ;;  %v3960_v9 = vsel %vm3624_vm2, %v3124_v55, %v3792_v57 }
 0x41a   : > { %v8086_v12 = vpop.f32.mrf.mxu0  ;;  %v3791_v15 = vmul.f32 %v3463_v25, %v5975_v53  ;;  %vm3623_vm5 = vcmp.gt.f32.partialorder %v3463_v25, 0.0  ;;  %v3961_v60 = vsel %vm3625_vm3, %v3238_v26, %v3793_v28 }
 0x41b   : > { %v3126_v59 = vadd.f32 %v8086_v12, %v5947_v61  ;;  %v3958_v12 = vsel %vm3622_vm4, %v3349_v47, %v3790_v44  ;;  %v4019_v47 = vadd.f32 %v4018_v40, %v3960_v9 }
 0x41c   : > { %v8088_v23 = vpop.f32.mrf.mxu1  ;;  %v3959_v37 = vsel %vm3623_vm5, %v3463_v25, %v3791_v15  ;;  %v4066_v25 = vadd.f32 %v4065_v39, %v3961_v60  ;;  %v4112_v10 = vadd.f32 %v4111_v6, %v3958_v12 }
 0x41d   : > { %v3240_v56 = vadd.f32 %v8088_v23, %v8645_v42  ;;  %vm3628_vm6 = vcmp.gt.f32.partialorder %v3126_v59, 0.0  ;;  %v3796_v33 = vmul.f32 %v3126_v59, %v8646_v58  ;;  %v4159_v34 = vadd.f32 %v4158_v20, %v3959_v37 }
 0x41e   : > { %v3351_v32 = vpop.f32.mrf.mxu2 }
 0x41f   : > { %v8102_v13 = vpop.f32.mrf.mxu3  ;;  %v3352_v45 = vadd.f32 %v3351_v32, %v5963_v21  ;;  %v3797_v23 = vmul.f32 %v3240_v56, %v8647_v16  ;;  %vm3629_vm7 = vcmp.gt.f32.partialorder %v3240_v56, 0.0  ;;  %v3964_v11 = vsel %vm3628_vm6, %v3126_v59, %v3796_v33 }
 0x420   : > { %v3466_v1 = vadd.f32 %v8102_v13, %v5965_v29 }
 0x421   : > { %v3794_v32 = vmul.f32 %v3352_v45, %v5969_v38  ;;  %vm3626_vm8 = vcmp.gt.f32.partialorder %v3352_v45, 0.0  ;;  %v3965_v13 = vsel %vm3629_vm7, %v3240_v56, %v3797_v23 }
 0x422   : > { %v3128_v8 = vpop.f32.mrf.mxu0  ;;  %vm3627_vm11 = vcmp.gt.f32.partialorder %v3466_v1, 0.0 }
 0x423   : > { %v3129_v31 = vadd.f32 %v3128_v8, %v5947_v61  ;;  %v3962_v27 = vsel %vm3626_vm8, %v3352_v45, %v3794_v32  ;;  %v3795_v8 = vmul.f32 %v3466_v1, %v5975_v53  ;;  %v4020_v45 = vadd.f32 %v4019_v47, %v3964_v11 }
 0x424   : > { %v3242_v14 = vpop.f32.mrf.mxu1  ;;  %v4113_v40 = vadd.f32 %v4112_v10, %v3962_v27 }
 0x425   : > { %v3243_v55 = vadd.f32 %v3242_v14, %v8645_v42  ;;  %v3800_v36 = vmul.f32 %v3129_v31, %v8646_v58  ;;  %vm3632_vm9 = vcmp.gt.f32.partialorder %v3129_v31, 0.0  ;;  %v3963_v6 = vsel %vm3627_vm11, %v3466_v1, %v3795_v8 }
 0x426   : > { %v3353_v30 = vpop.f32.mrf.mxu2 }
 0x427   : > { %v8124_v4 = vpop.f32.mrf.mxu3  ;;  %v3801_v14 = vmul.f32 %v3243_v55, %v8647_v16  ;;  %v3354_v28 = vadd.f32 %v3353_v30, %v5963_v21  ;;  %vm3633_vm12 = vcmp.gt.f32.partialorder %v3243_v55, 0.0  ;;  %v3968_v39 = vsel %vm3632_vm9, %v3129_v31, %v3800_v36 }
 0x428   : > { %v4021_v23 = vadd.f32 %v4020_v45, %v3968_v39 }
 0x429   : > { %v3969_v22 = vsel %vm3633_vm12, %v3243_v55, %v3801_v14  ;;  %v3798_v9 = vmul.f32 %v3354_v28, %v5969_v38  ;;  %vm3630_vm15 = vcmp.gt.f32.partialorder %v3354_v28, 0.0 }
 0x42a   : > { %v3130_v18 = vpop.f32.mrf.mxu0 }
 0x42b   : > { %v3131_v17 = vadd.f32 %v3130_v18, %v5947_v61  ;;  %v4067_v18 = vadd.f32 %v4066_v25, %v3965_v13  ;;  %v3966_v47 = vsel %vm3630_vm15, %v3354_v28, %v3798_v9 }
 0x42c   : > { %v3244_v35 = vpop.f32.mrf.mxu1 }
 0x42d   : > { %v3245_v46 = vadd.f32 %v3244_v35, %v8645_v42  ;;  %v3804_v59 = vmul.f32 %v3131_v17, %v8646_v58  ;;  %vm3636_vm13 = vcmp.gt.f32.partialorder %v3131_v17, 0.0  ;;  %v3468_v35 = vadd.f32 %v8124_v4, %v5965_v29 }
 0x42e   : > { %v3356_v51 = vpop.f32.mrf.mxu2  ;;  %v4160_v4 = vadd.f32 %v4159_v34, %v3963_v6  ;;  %v4068_v20 = vadd.f32 %v4067_v18, %v3969_v22  ;;  %v4114_v18 = vadd.f32 %v4113_v40, %v3966_v47 }
 0x42f   : > { %v3470_v26 = vpop.f32.mrf.mxu3  ;;  %v3805_v63 = vmul.f32 %v3245_v46, %v8647_v16  ;;  %vm3637_vm14 = vcmp.gt.f32.partialorder %v3245_v46, 0.0  ;;  %v3972_v37 = vsel %vm3636_vm13, %v3131_v17, %v3804_v59  ;;  %v3357_v31 = vadd.f32 %v3356_v51, %v5963_v21 }
 0x430   : > { %vm3631_vm2 = vcmp.gt.f32.partialorder %v3468_v35, 0.0  ;;  %v3799_v1 = vmul.f32 %v3468_v35, %v5975_v53  ;;  %v4022_v25 = vadd.f32 %v4021_v23, %v3972_v37  ;;  %v3471_v27 = vadd.f32 %v3470_v26, %v5965_v29 }
 0x431   : > { %v3973_v32 = vsel %vm3637_vm14, %v3245_v46, %v3805_v63  ;;  %vm3634_vm3 = vcmp.gt.f32.partialorder %v3357_v31, 0.0  ;;  %v3802_v28 = vmul.f32 %v3357_v31, %v5969_v38 }
 0x432   : > { %v3133_v57 = vpop.f32.mrf.mxu0  ;;  %v4069_v13 = vadd.f32 %v4068_v20, %v3973_v32  ;;  %v3803_v59 = vmul.f32 %v3471_v27, %v5975_v53  ;;  %vm3635_vm6 = vcmp.gt.f32.partialorder %v3471_v27, 0.0 }
 0x433   : > { %v3134_v44 = vadd.f32 %v3133_v57, %v5947_v61  ;;  %v3970_v22 = vsel %vm3634_vm3, %v3357_v31, %v3802_v28 }
 0x434   : > { %v3247_v15 = vpop.f32.mrf.mxu1 }
 0x435   : > { %v3248_v56 = vadd.f32 %v3247_v15, %v8645_v42  ;;  %v3808_v60 = vmul.f32 %v3134_v44, %v8646_v58  ;;  %vm3640_vm0 = vcmp.gt.f32.partialorder %v3134_v44, 0.0 }
 0x436   : > { %v3358_v30 = vpop.f32.mrf.mxu2 }
 0x437   : > { %v3472_v12 = vpop.f32.mrf.mxu3  ;;  %v3809_v33 = vmul.f32 %v3248_v56, %v8647_v16  ;;  %vm3641_vm1 = vcmp.gt.f32.partialorder %v3248_v56, 0.0  ;;  %v3976_v10 = vsel %vm3640_vm0, %v3134_v44, %v3808_v60  ;;  %v3359_v51 = vadd.f32 %v3358_v30, %v5963_v21 }
 0x438   : > { %v4023_v36 = vadd.f32 %v4022_v25, %v3976_v10  ;;  %v3473_v57 = vadd.f32 %v3472_v12, %v5965_v29  ;;  %v3971_v12 = vsel %vm3635_vm6, %v3471_v27, %v3803_v59 }
 0x439   : > { %v3977_v8 = vsel %vm3641_vm1, %v3248_v56, %v3809_v33  ;;  %v3806_v63 = vmul.f32 %v3359_v51, %v5969_v38  ;;  %vm3638_vm7 = vcmp.gt.f32.partialorder %v3359_v51, 0.0 }
 0x43a   : > { %v3135_v55 = vpop.f32.mrf.mxu0  ;;  %v4070_v44 = vadd.f32 %v4069_v13, %v3977_v8  ;;  %v3807_v30 = vmul.f32 %v3473_v57, %v5975_v53  ;;  %vm3639_vm8 = vcmp.gt.f32.partialorder %v3473_v57, 0.0 }
 0x43b   : > { %v3136_v11 = vadd.f32 %v3135_v55, %v5947_v61  ;;  %v3974_v23 = vsel %vm3638_vm7, %v3359_v51, %v3806_v63 }
 0x43c   : > { %v3249_v17 = vpop.f32.mrf.mxu1  ;;  %v3975_v20 = vsel %vm3639_vm8, %v3473_v57, %v3807_v30 }
 0x43d   : > { %v3250_v46 = vadd.f32 %v3249_v17, %v8645_v42  ;;  %vm3644_vm4 = vcmp.gt.f32.partialorder %v3136_v11, 0.0  ;;  %v3812_v34 = vmul.f32 %v3136_v11, %v8646_v58 }
 0x43e   : > { %v3361_v61 = vpop.f32.mrf.mxu2 }
 0x43f   : > { %vm3645_vm5 = vcmp.gt.f32.partialorder %v3250_v46, 0.0  ;;  %v3813_v14 = vmul.f32 %v3250_v46, %v8647_v16  ;;  %v3980_v26 = vsel %vm3644_vm4, %v3136_v11, %v3812_v34  ;;  %v3362_v15 = vadd.f32 %v3361_v61, %v5963_v21  ;;  %v3475_v42 = vpop.f32.mrf.mxu3 }
 0x440   : > { %v4024_v56 = vadd.f32 %v4023_v36, %v3980_v26  ;;  %v3476_v58 = vadd.f32 %v3475_v42, %v5965_v29  ;;  %v3967_v16 = vsel %vm3631_vm2, %v3468_v35, %v3799_v1  ;;  %v4115_v35 = vadd.f32 %v4114_v18, %v3970_v22 }
 0x441   : > { %v3981_v45 = vsel %vm3645_vm5, %v3250_v46, %v3813_v14  ;;  %v3810_v60 = vmul.f32 %v3362_v15, %v5969_v38  ;;  %vm3642_vm9 = vcmp.gt.f32.partialorder %v3362_v15, 0.0  ;;  %v4161_v33 = vadd.f32 %v4160_v4, %v3967_v16 }
 0x442   : > { %v4071_v39 = vadd.f32 %v4070_v44, %v3981_v45  ;;  %v4025_v6 = vrot.slane %v4024_v56, 4  ;;  %v3811_v40 = vmul.f32 %v3476_v58, %v5975_v53  ;;  %vm3643_vm11 = vcmp.gt.f32.partialorder %v3476_v58, 0.0 }
 0x443   : > { %v4162_v47 = vadd.f32 %v4161_v33, %v3971_v12  ;;  %v3978_v31 = vsel %vm3642_vm9, %v3362_v15, %v3810_v60  ;;  %v4116_v17 = vadd.f32 %v4115_v35, %v3974_v23  ;;  %v8654_v33 = vld [vmem:[#allocation88_spill] sm:$0xff]  ;;  %v8657_v23 = vld [vmem:[#allocation83_spill] sm:$0xff]  ;;  %v8659_v35 = vld [vmem:[#allocation86_spill] sm:$0xff]  ;;  %vm4433_vm4 = vcmask 0  }
 0x444   : > { %v4072_v9 = vrot.slane %v4071_v39, 4  ;;  %v4026_v37 = vadd.f32 %v4025_v6, %v4024_v56  ;;  %v3979_v27 = vsel %vm3643_vm11, %v3476_v58, %v3811_v40  ;;  %v8653_v40 = vld [vmem:[#allocation81_spill] sm:$0xff] }
 0x445   : > { %v4163_v46 = vadd.f32 %v4162_v47, %v3975_v20  ;;  %v4117_v36 = vadd.f32 %v4116_v17, %v3978_v31  ;;  %v8660_v20 = vld [vmem:[#allocation87_spill] sm:$0xff]  ;;  %v8663_v47 = vld [vmem:[#allocation90_spill] sm:$0xff]  ;;  %v8665_v31 = vld [vmem:[#allocation97_spill] sm:$0xff] }
 0x446   : > { %v4073_v32 = vadd.f32 %v4072_v9, %v4071_v39  ;;  %v4027_v1 = vrot.slane %v4026_v37, 2  ;;  %v3363_v55 = vpop.f32.mrf.mxu2  ;;  %v8669_v17 = vld [vmem:[#allocation99_spill] sm:$0xff] }
 0x447   : > { %v3364_v10 = vadd.f32 %v3363_v55, %v5963_v21  ;;  %v3477_v11 = vpop.f32.mrf.mxu3  ;;  %v4164_v61 = vadd.f32 %v4163_v46, %v3979_v27  ;;  %v8662_v55 = vld [vmem:[#allocation96_spill] sm:$0xff]  ;;  %v8671_v27 = vld [vmem:[#allocation105_spill] sm:$0xff] }
 0x448   : > { %v4074_v25 = vrot.slane %v4073_v32, 2  ;;  %v4028_v13 = vadd.f32 %v4027_v1, %v4026_v37  ;;  %v3478_v8 = vadd.f32 %v3477_v11, %v5965_v29  ;;  %v8661_v1 = vld [vmem:[#allocation95_spill] sm:$0xff]  ;;  %v8668_v11 = vld [vmem:[#allocation94_spill] sm:$0xff]  ;;  %v8673_v46 = vld [vmem:[#allocation101_spill] sm:$0xff] }
 0x449   : > { %vm3646_vm12 = vcmp.gt.f32.partialorder %v3364_v10, 0.0  ;;  %v3814_v51 = vmul.f32 %v3364_v10, %v5969_v38 }
 0x44a   : > { %v4075_v4 = vadd.f32 %v4074_v25, %v4073_v32  ;;  %v4029_v34 = vrot.slane %v4028_v13, 1  ;;  %vm3647_vm13 = vcmp.gt.f32.partialorder %v3478_v8, 0.0  ;;  %v3815_v57 = vmul.f32 %v3478_v8, %v5975_v53  ;;  %v8658_v32 = vld [vmem:[#allocation92_spill] sm:$0xff]  ;;  %v8664_v25 = vld [vmem:[#allocation91_spill] sm:$0xff] }
 0x44b   : > { %v3982_v28 = vsel %vm3646_vm12, %v3364_v10, %v3814_v51  ;;  %v8667_v10 = vld [vmem:[#allocation93_spill] sm:$0xff] }
 0x44c   : > { %v4076_v14 = vrot.slane %v4075_v4, 1  ;;  %v4030_v21 = vadd.f32 %v4029_v34, %v4028_v13  ;;  %v4118_v44 = vadd.f32 %v4117_v36, %v3982_v28  ;;  %v3983_v26 = vsel %vm3647_vm13, %v3478_v8, %v3815_v57  ;;  %v8670_v13 = vld [vmem:[#allocation100_spill] sm:$0xff]  ;;  %v8672_v8 = vld [vmem:[#allocation106_spill] sm:$0xff]  ;;  %v8675_v51 = vld [vmem:[#allocation109_spill] sm:$0xff] }
 0x44d   : > { %v4165_v42 = vadd.f32 %v4164_v61, %v3983_v26  ;;  %v8676_v34 = vld [vmem:[#allocation110_spill] sm:$0xff]  ;;  %v8677_v36 = vld [vmem:[#allocation103_spill] sm:$0xff]  ;;  %v8682_v61 = vld [vmem:[#allocation108_spill] sm:$0xff] }
 0x44e   : > { %v4077_v15 = vadd.f32 %v4076_v14, %v4075_v4  ;;  %v4119_v59 = vrot.slane %v4118_v44, 4  ;;  %v4172_v29 = vmul.f32 %v4030_v21, %v7027_v48  ;;  %v8674_v4 = vld [vmem:[#allocation102_spill] sm:$0xff]  ;;  %v8681_v14 = vld [vmem:[#allocation107_spill] sm:$0xff]  ;;  %v8683_v28 = vld [vmem:[#allocation117_spill] sm:$0xff] }
 0x44f   : > { %v4166_v56 = vrot.slane %v4165_v42, 4  ;;  %v8680_v57 = vld [vmem:[#allocation114_spill] sm:$0xff]  ;;  %v8686_v26 = vld [vmem:[#allocation112_spill] sm:$0xff] }
 0x450   : > { %v4173_v45 = vmul.f32 %v4077_v15, %v7027_v48  ;;  %v4120_v38 = vadd.f32 %v4119_v59, %v4118_v44  ;;  %v8186_v58 = vpack.c.bf16 %v4172_v29, %v4172_v29  ;;  %v8684_v21 = vld [vmem:[#allocation118_spill] sm:$0xff]  ;;  %v8685_v44 = vld [vmem:[#allocation111_spill] sm:$0xff] }
 0x451   : > { %v4167_v18 = vadd.f32 %v4166_v56, %v4165_v42  ;;  %v8687_v15 = vld [vmem:[#allocation115_spill] sm:$0xff]  ;;  %v8688_v42 = vld [vmem:[#allocation116_spill] sm:$0xff] }
 0x452   : > { %v8188_v63 = vpack.c.bf16 %v4173_v45, %v4173_v45  ;;  %v4121_v53 = vrot.slane %v4120_v38, 2  ;;  %4188 = vmatmul.bf16.vlgmr.msra.gmra.mxu0 %v8186_v58  ;;  %v8689_v59 = vld [vmem:[#allocation123_spill] sm:$0xff]  ;;  %v8691_v56 = vld [vmem:[#allocation120_spill] sm:$0xff]  ;;  %v8692_v45 = vld [vmem:[#allocation121_spill] sm:$0xff] }
 0x453   : > { %v4168_v39 = vrot.slane %v4167_v18, 2  ;;  %4284 = vmatpush.bf16.msra.mxu0 %v7043_v50  ;;  %v8690_v29 = vld [vmem:[#allocation119_spill] sm:$0xff] }
 0x454   : > { %4201 = vmatmul.bf16.vlgmr.msra.gmra.mxu1 %v8188_v63  ;;  %v4122_v16 = vadd.f32 %v4121_v53, %v4120_v38  ;;  %v8695_v38 = vld [vmem:[#allocation125_spill] sm:$0xff] }
 0x455   : > { %4297 = vmatpush.bf16.msra.mxu1 %v7047_v0  ;;  %v4169_v30 = vadd.f32 %v4168_v39, %v4167_v18  ;;  %v8696_v18 = vld [vmem:[#allocation126_spill] sm:$0xff] }
 0x456   : > { %v4123_v6 = vrot.slane %v4122_v16, 1 }
 0x457   : > { %v4170_v22 = vrot.slane %v4169_v30, 1  ;;  %4285 = vmatpush.bf16.msra.mxu0 %v7066_v41  ;;  %v8648_v41 = vld [vmem:[#allocation78_spill] sm:$0xff] }
 0x458   : > { %v4124_v9 = vadd.f32 %v4123_v6, %v4122_v16 }
 0x459   : > { %4298 = vmatpush.bf16.msra.mxu1 %v7078_v49  ;;  %v4171_v60 = vadd.f32 %v4170_v22, %v4169_v30  ;;  %v8649_v49 = vld [vmem:[#allocation79_spill] sm:$0xff] }
 0x45a   : > { %v4174_v12 = vmul.f32 %v4124_v9, %v7027_v48 }
 0x45b   : > { %4286 = vmatpush.bf16.msra.mxu0 %v7104_v2  ;;  %v4175_v37 = vmul.f32 %v4171_v60, %v7027_v48  ;;  %v8650_v48 = vld [vmem:[#allocation84_spill] sm:$0xff]  ;;  %v8651_v2 = vld [vmem:[#allocation85_spill] sm:$0xff] }
 0x45c   : > { %v8200_v50 = vpack.c.bf16 %v4174_v12, %v4174_v12 }
 0x45d   : > { %4299 = vmatpush.bf16.msra.mxu1 %v7118_v52  ;;  %v8202_v0 = vpack.c.bf16 %v4175_v37, %v4175_v37  ;;  %v8652_v52 = vld [vmem:[#allocation80_spill] sm:$0xff] }
 0x45e   : > { %4214 = vmatmul.bf16.vlgmr.msra.gmra.mxu2 %v8200_v50 }
 0x45f   : > { %4227 = vmatmul.bf16.vlgmr.msra.gmra.mxu3 %v8202_v0  ;;  %4287 = vmatpush.bf16.msra.mxu0 %v7144_v5  ;;  %v8655_v5 = vld [vmem:[#allocation89_spill] sm:$0xff] }
 0x460   : > { %4310 = vmatpush.bf16.msra.mxu2 %v8648_v41  ;;  %4323 = vmatpush.bf16.msra.mxu3 %v8649_v49 }
 0x461   : > { %4300 = vmatpush.bf16.msra.mxu1 %v7153_v19  ;;  %v8656_v19 = vld [vmem:[#allocation82_spill] sm:$0xff] }
 0x462   : > { %4240 = vmatmul.bf16.vlgmr.msrb.gmra.mxu0 %v8186_v58 }
 0x463   : > { %4288 = vmatpush.bf16.msra.mxu0 %v8650_v48 }
 0x464   : > { %4253 = vmatmul.bf16.vlgmr.msrb.gmra.mxu1 %v8188_v63  ;;  %4311 = vmatpush.bf16.msra.mxu2 %v8652_v52 }
 0x465   : > { %4301 = vmatpush.bf16.msra.mxu1 %v8651_v2  ;;  %4324 = vmatpush.bf16.msra.mxu3 %v8653_v40 }
 0x467   : > { %4289 = vmatpush.bf16.msra.mxu0 %v8654_v33 }
 0x468   : > { %4312 = vmatpush.bf16.msra.mxu2 %v8656_v19 }
 0x469   : > { %4302 = vmatpush.bf16.msra.mxu1 %v8655_v5  ;;  %4325 = vmatpush.bf16.msra.mxu3 %v8657_v23 }
 0x46b   : > { %4290 = vmatpush.bf16.msra.mxu0 %v7264_v24  ;;  %v8666_v24 = vld [vmem:[#allocation98_spill] sm:$0xff] }
 0x46c   : > { %4313 = vmatpush.bf16.msra.mxu2 %v8659_v35 }
 0x46d   : > { %4303 = vmatpush.bf16.msra.mxu1 %v8658_v32  ;;  %4326 = vmatpush.bf16.msra.mxu3 %v8660_v20 }
 0x46e   : > { %4266 = vmatmul.bf16.vlgmr.msrb.gmra.mxu2 %v8200_v50 }
 0x46f   : > { %4279 = vmatmul.bf16.vlgmr.msrb.gmra.mxu3 %v8202_v0  ;;  %4291 = vmatpush.bf16.msra.mxu0 %v8661_v1 }
 0x470   : > { %4314 = vmatpush.bf16.msra.mxu2 %v8663_v47 }
 0x471   : > { %4304 = vmatpush.bf16.msra.mxu1 %v8662_v55  ;;  %4327 = vmatpush.bf16.msra.mxu3 %v8664_v25 }
 0x472   : > { %4292 = vmatmul.bf16.vlgmr.msra.gmra.mxu0 %v8186_v58 }
 0x473   : > { %4336 = vmatpush.bf16.msrb.mxu0 %v8665_v31 }
 0x474   : > { %4305 = vmatmul.bf16.vlgmr.msra.gmra.mxu1 %v8188_v63  ;;  %4315 = vmatpush.bf16.msra.mxu2 %v8667_v10 }
 0x475   : > { %4349 = vmatpush.bf16.msrb.mxu1 %v8666_v24  ;;  %4328 = vmatpush.bf16.msra.mxu3 %v8668_v11 }
 0x477   : > { %4337 = vmatpush.bf16.msrb.mxu0 %v7365_v62  ;;  %v8678_v62 = vld [vmem:[#allocation104_spill] sm:$0xff] }
 0x478   : > { %4316 = vmatpush.bf16.msra.mxu2 %v8669_v17 }
 0x479   : > { %4350 = vmatpush.bf16.msrb.mxu1 %v7367_v54  ;;  %4329 = vmatpush.bf16.msra.mxu3 %v8670_v13  ;;  %v8679_v54 = vld [vmem:[#allocation113_spill] sm:$0xff] }
 0x47b   : > { %4338 = vmatpush.bf16.msrb.mxu0 %v8671_v27 }
 0x47c   : > { %4317 = vmatpush.bf16.msra.mxu2 %v8673_v46 }
 0x47d   : > { %4351 = vmatpush.bf16.msrb.mxu1 %v8672_v8  ;;  %4330 = vmatpush.bf16.msra.mxu3 %v8674_v4 }
 0x47f   : > { %4339 = vmatpush.bf16.msrb.mxu0 %v8675_v51  ;;  %4318 = vmatmul.bf16.vlgmr.msra.gmra.mxu2 %v8200_v50 }
 0x480   : > { %4362 = vmatpush.bf16.msrb.mxu2 %v8677_v36  ;;  %4331 = vmatmul.bf16.vlgmr.msra.gmra.mxu3 %v8202_v0 }
 0x481   : > { %4352 = vmatpush.bf16.msrb.mxu1 %v8676_v34  ;;  %4375 = vmatpush.bf16.msrb.mxu3 %v8678_v62 }
 0x483   : > { %4340 = vmatpush.bf16.msrb.mxu0 %v8679_v54 }
 0x484   : > { %4363 = vmatpush.bf16.msrb.mxu2 %v8681_v14 }
 0x485   : > { %4353 = vmatpush.bf16.msrb.mxu1 %v8680_v57  ;;  %4376 = vmatpush.bf16.msrb.mxu3 %v8682_v61 }
 0x487   : > { %4341 = vmatpush.bf16.msrb.mxu0 %v8683_v28 }
 0x488   : > { %4364 = vmatpush.bf16.msrb.mxu2 %v8685_v44 }
 0x489   : > { %4354 = vmatpush.bf16.msrb.mxu1 %v8684_v21  ;;  %4377 = vmatpush.bf16.msrb.mxu3 %v8686_v26 }
 0x48b   : > { %4342 = vmatpush.bf16.msrb.mxu0 %v7555_v3  ;;  %v8693_v3 = vld [vmem:[#allocation122_spill] sm:$0xff] }
 0x48c   : > { %4365 = vmatpush.bf16.msrb.mxu2 %v8687_v15 }
 0x48d   : > { %4355 = vmatpush.bf16.msrb.mxu1 %v7557_v43  ;;  %4378 = vmatpush.bf16.msrb.mxu3 %v8688_v42  ;;  %v8694_v43 = vld [vmem:[#allocation124_spill] sm:$0xff] }
 0x48f   : > { %4343 = vmatpush.bf16.msrb.mxu0 %v7591_v7  ;;  %v8697_v7 = vld [vmem:[#allocation127_spill] sm:$0xff] }
 0x490   : > { %4366 = vmatpush.bf16.msrb.mxu2 %v8690_v29 }
 0x491   : > { %4356 = vmatpush.bf16.msrb.mxu1 %v8689_v59  ;;  %4379 = vmatpush.bf16.msrb.mxu3 %v8691_v56 }
 0x492   : > { %4344 = vmatmul.bf16.vlgmr.msrb.gmra.mxu0 %v8186_v58  ;;  %v8698_v58 = vld [vmem:[#allocation5_spill] sm:$0xff] }
 0x493   : > { %v8699_v39 = vperm.slane %v8698_v58, 0  ;;  %v8700_v25 = vperm.slane %v8698_v58, 1  ;;  %v8701_v24 = vperm.slane %v8698_v58, 2  ;;  %v8702_v62 = vperm.slane %v8698_v58, 3 }
 0x494   : > { %4357 = vmatmul.bf16.vlgmr.msrb.gmra.mxu1 %v8188_v63  ;;  %4367 = vmatpush.bf16.msrb.mxu2 %v8692_v45 }
 0x495   : > { %4380 = vmatpush.bf16.msrb.mxu3 %v8693_v3 }
 0x498   : > { %4368 = vmatpush.bf16.msrb.mxu2 %v8694_v43 }
 0x499   : > { %4381 = vmatpush.bf16.msrb.mxu3 %v8695_v38 }
 0x49c   : > { %4369 = vmatpush.bf16.msrb.mxu2 %v8696_v18 }
 0x49d   : > { %4382 = vmatpush.bf16.msrb.mxu3 %v8697_v7 }
 0x49f   : > { %4370 = vmatmul.bf16.vlgmr.msrb.gmra.mxu2 %v8200_v50 }
 0x4a0   : > { %4383 = vmatmul.bf16.vlgmr.msrb.gmra.mxu3 %v8202_v0 }
 0x4cf   : > { %v4189_v53 = vpop.f32.mrf.mxu0 }
 0x4d0   : > { %v4190_v63 = vadd.f32 %v4189_v53, %v8699_v39  ;;  %v2840_v53 = vpop.xlane.xlu0 %2839 }
 0x4d1   : > { %v4202_v16 = vpop.f32.mrf.mxu1  ;;  %v2841_v58 = vmax.f32 %v2840_v53, 1e-12 }
 0x4d2   : > { %v4203_v30 = vadd.f32 %v4202_v16, %v4190_v63 }
 0x4d3   : > { %5537 = vrsqrt.f32 %v2841_v58  ;;  %vm2848_vm15 = vweird.f32 %v2841_v58 }
 0x4d7   : > { %v4191_v6 = vpop.f32.mrf.mxu0 }
 0x4d9   : > { %v4204_v22 = vpop.f32.mrf.mxu1  ;;  %v5538_v39 = vpop.eup %5537 }
 0x4da   : > { %v2843_v63 = vmul.f32 %v5538_v39, %v2841_v58  ;;  %vm2849_vm14 = vweird.f32 %v5538_v39 }
 0x4db   : > { %vm2850_vm0 = vmor %vm2848_vm15, %vm2849_vm14 }
 0x4df   : > { %v4241_v9 = vpop.f32.mrf.mxu0 }
 0x4e0   : > { %v4242_v31 = vadd.f32 %v4241_v9, %v8700_v25 }
 0x4e1   : > { %v4254_v60 = vpop.f32.mrf.mxu1  ;;  %v4215_v12 = vpop.f32.mrf.mxu2 }
 0x4e2   : > { %v4228_v37 = vpop.f32.mrf.mxu3  ;;  %v4255_v11 = vadd.f32 %v4254_v60, %v4242_v31  ;;  %v4216_v46 = vadd.f32 %v4215_v12, %v4203_v30  ;;  %v2844_v30 = vmul.f32 %v5538_v39, %v2843_v63 }
 0x4e4   : > { %v4229_v34 = vadd.f32 %v4228_v37, %v4216_v46  ;;  %v2845_v22 = vmul.f32 0.5, %v2844_v30 }
 0x4e6   : > { %v4388_v14 = vmul.f32 %v4229_v34, %v4229_v34  ;;  %v2846_v60 = vsub.f32 1.5, %v2845_v22 }
 0x4e7   : > { %v4243_v41 = vpop.f32.mrf.mxu0 }
 0x4e8   : > { %v4392_v42 = vsel %vm2831_vm10, %v4388_v14, 0.0  ;;  %v2847_v41 = vmul.f32 %v5538_v39, %v2846_v60 }
 0x4e9   : > { %v4256_v49 = vpop.f32.mrf.mxu1  ;;  %v4217_v48 = vpop.f32.mrf.mxu2 }
 0x4ea   : > { %v4230_v2 = vpop.f32.mrf.mxu3 }
 0x4eb   : > { %v2851_v2 = vsel %vm2850_vm0, %v5538_v39, %v2847_v41 }
 0x4ef   : > { %v4293_v52 = vpop.f32.mrf.mxu0 }
 0x4f0   : > { %v4294_v10 = vadd.f32 %v4293_v52, %v8701_v24 }
 0x4f1   : > { %v4306_v50 = vpop.f32.mrf.mxu1  ;;  %v4267_v40 = vpop.f32.mrf.mxu2 }
 0x4f2   : > { %v4280_v0 = vpop.f32.mrf.mxu3  ;;  %v4307_v17 = vadd.f32 %v4306_v50, %v4294_v10  ;;  %v4268_v13 = vadd.f32 %v4267_v40, %v4255_v11  ;;  %v8703_v40 = vld [vmem:[#allocation9_spill] sm:$0xff] }
 0x4f4   : > { %v4281_v51 = vadd.f32 %v4280_v0, %v4268_v13  ;;  %v2852_v0 = vmul.f32 %v2851_v2, %v8703_v40 }
 0x4f6   : > { %v4389_v57 = vmul.f32 %v4281_v51, %v4281_v51 }
 0x4f7   : > { %v4295_v33 = vpop.f32.mrf.mxu0 }
 0x4f8   : > { %v4393_v44 = vsel %vm2831_vm10, %v4389_v57, 0.0  ;;  %v8704_v33 = vld [vmem:[#allocation6_spill] sm:$0xff] }
 0x4f9   : > { %v4308_v5 = vpop.f32.mrf.mxu1  ;;  %v4269_v19 = vpop.f32.mrf.mxu2  ;;  %v4394_v56 = vadd.f32 %v4393_v44, %v4392_v42 }
 0x4fa   : > { %v4282_v23 = vpop.f32.mrf.mxu3  ;;  %v2853_v5 = vmul.f32 %v2851_v2, %v8704_v33  ;;  %v8705_v19 = vld [vmem:[#allocation10_spill] sm:$0xff] }
 0x4fb   : > { %v2854_v23 = vmul.f32 %v2851_v2, %v8705_v19 }
 0x502   : > { %v4319_v32 = vpop.f32.mrf.mxu2 }
 0x503   : > { %v4332_v35 = vpop.f32.mrf.mxu3  ;;  %v4320_v4 = vadd.f32 %v4319_v32, %v4307_v17 }
 0x505   : > { %v4333_v36 = vadd.f32 %v4332_v35, %v4320_v4 }
 0x507   : > { %v4390_v61 = vmul.f32 %v4333_v36, %v4333_v36 }
 0x509   : > { %v4395_v29 = vsel %vm2831_vm10, %v4390_v61, 0.0 }
 0x50a   : > { %v4321_v20 = vpop.f32.mrf.mxu2  ;;  %v4396_v3 = vadd.f32 %v4395_v29, %v4394_v56 }
 0x50b   : > { %v4334_v1 = vpop.f32.mrf.mxu3 }
 0x50f   : > { %v4345_v55 = vpop.f32.mrf.mxu0 }
 0x510   : > { %v4346_v54 = vadd.f32 %v4345_v55, %v8702_v62  ;;  %v8706_v55 = vld [vmem:[#allocation7_spill] sm:$0xff] }
 0x511   : > { %v4358_v47 = vpop.f32.mrf.mxu1 }
 0x512   : > { %v4359_v28 = vadd.f32 %v4358_v47, %v4346_v54  ;;  %v2855_v47 = vmul.f32 %v2851_v2, %v8706_v55 }
 0x517   : > { %v4347_v27 = vpop.f32.mrf.mxu0 }
 0x519   : > { %v4360_v8 = vpop.f32.mrf.mxu1 }
 0x522   : > { %v4371_v21 = vpop.f32.mrf.mxu2 }
 0x523   : > { %v4372_v26 = vadd.f32 %v4371_v21, %v4359_v28  ;;  %v4384_v15 = vpop.f32.mrf.mxu3 }
 0x525   : > { %v4385_v59 = vadd.f32 %v4384_v15, %v4372_v26 }
 0x527   : > { %v4391_v45 = vmul.f32 %v4385_v59, %v4385_v59 }
 0x529   : > { %v4397_v43 = vsel %vm2831_vm10, %v4391_v45, 0.0 }
 0x52a   : > { %v4373_v38 = vpop.f32.mrf.mxu2  ;;  %v4398_v18 = vadd.f32 %v4397_v43, %v4396_v3 }
 0x52b   : > { %v4386_v7 = vpop.f32.mrf.mxu3 }
 0x52c   : > { %4399 = vadd.xlane.f32.xlu0 %v4398_v18 }
 0x59f   : > { %v4400_v16 = vpop.xlane.xlu0 %4399 }
 0x5a0   : > { %v4401_v6 = vmax.f32 %v4400_v16, 1e-12 }
 0x5a2   : > { %5539 = vrsqrt.f32 %v4401_v6  ;;  %vm4408_vm2 = vweird.f32 %v4401_v6 }
 0x5a8   : > { %v5540_v9 = vpop.eup %5539 }
 0x5a9   : > { %v4403_v12 = vmul.f32 %v5540_v9, %v4401_v6  ;;  %vm4409_vm1 = vweird.f32 %v5540_v9 }
 0x5aa   : > { %vm4410_vm3 = vmor %vm4408_vm2, %vm4409_vm1 }
 0x5ab   : > { %v4404_v37 = vmul.f32 %v5540_v9, %v4403_v12 }
 0x5ad   : > { %v4405_v49 = vmul.f32 0.5, %v4404_v37 }
 0x5af   : > { %v4406_v48 = vsub.f32 1.5, %v4405_v49 }
 0x5b1   : > { %v4407_v52 = vmul.f32 %v5540_v9, %v4406_v48 }
 0x5b3   : > { %v4411_v50 = vsel %vm4410_vm3, %v5540_v9, %v4407_v52 }
 0x5b4   : > { %v4412_v32 = vmul.f32 %v4411_v50, %v4229_v34  ;;  %v4413_v35 = vmul.f32 %v4411_v50, %v4281_v51  ;;  %v4414_v20 = vmul.f32 %v4411_v50, %v4333_v36  ;;  %v4415_v1 = vmul.f32 %v4411_v50, %v4385_v59  ;;  %v4429_v36 = vld [vmem:[#allocation2] sm:$0x1] }
 0x5b6   : > { %v4416_v25 = vmul.f32 %v4412_v32, %v2852_v0  ;;  %v4417_v31 = vmul.f32 %v4413_v35, %v2853_v5  ;;  %v4418_v24 = vmul.f32 %v4414_v20, %v2854_v23  ;;  %v4419_v10 = vmul.f32 %v4415_v1, %v2855_v47 }
 0x5b8   : > { %v4420_v11 = vsel %vm2831_vm10, %v4416_v25, 0.0  ;;  %v4421_v17 = vsel %vm2831_vm10, %v4417_v31, 0.0  ;;  %v4423_v27 = vsel %vm2831_vm10, %v4418_v24, 0.0  ;;  %v4425_v46 = vsel %vm2831_vm10, %v4419_v10, 0.0 }
 0x5b9   : > { %v4422_v13 = vadd.f32 %v4421_v17, %v4420_v11 }
 0x5bb   : > { %v4424_v8 = vadd.f32 %v4423_v27, %v4422_v13 }
 0x5bd   : > { %v4426_v4 = vadd.f32 %v4425_v46, %v4424_v8 }
 0x5bf   : > { %4427 = vadd.xlane.f32.xlu1 %v4426_v4 }
 0x632   : > { %v4428_v51 = vpop.xlane.xlu1 %4427 }
 0x633   : > { %v4430_v34 = vsub.f32 1.0, %v4428_v51 }
 0x635   : > { %v4431_v62 = vmul.f32 0.5, %v4430_v34 }
 0x637   : > { %v4432_v54 = vadd.f32 %v4431_v62, %v4429_v36 }
 0x639   : > { %4434 = vst.msk [vmem:[#allocation2] sm:$0x1] %vm4433_vm4, %v4432_v54 }
 0x63a   : > { %5519 = dma.vmem_to_hbm [thread:$0]  (%p5522_p6), %s4442_s30, 16, %s4444_s11, [#allocation3]  }
 0x63b   : > { %5574 = dma.done.wait (%p5522_p6), [#allocation3], 16  }
 0x63c   : > { %5576 = vsyncadd (%p5522_p6), [#allocation3], 4294967280 }
 0x63d PF: > { %s18_s24 = sadd.s32 1, %s5579_s24  }
 0x63e   : > { %p15_p7 = scmp.ge.s32.totalorder %s18_s24, 4  }
 0x640   :  { %17 = sbr.rel (!%p15_p7) target bundleno = 1 (0x1), region = 82 }
 0x645   :  { %4457 = vsyncpa [#allocation3], 1 }
 0x646   :  { %4459 = vsyncpa [#allocation3 + $0x1], 1 }

</bundles_post_ra>
